<compile_context>
chip_gen: v6e
topology: v6e:2x2x1
jax: 0.10.0
libtpu: 0.0.40
codegen_flags: <defaults>
</compile_context>

<pallas_src>
import math

import jax
import jax.numpy as jnp
from jax import lax
from jax.experimental import pallas as pl
from jax.experimental.pallas import tpu as pltpu

# ----------------------------- model hyperparams (small) -----------------------------
IMG = 16                       # spatial size
CHANS = 3                      # in_chans=3 as in the module
PATCH = 4
NP_TOK = (IMG // PATCH) ** 2   # 16 tokens
EMBED = 128                    # lane-aligned embed dim
HEADS = 4
HEAD_DIM = EMBED // HEADS      # 32
MLP_HIDDEN = 4 * EMBED         # 512
NUM_LAYERS = 2
PATCH_FEAT = CHANS * PATCH * PATCH   # 48 (padded to 128 lanes at the kernel boundary)
LN_EPS = 1e-5


# --------------------------------- fused Pallas kernel --------------------------------
def _fused_forward_kernel(
    patches_ref, temb_ref,
    patch_w_ref, patch_b_ref, pos_ref,
    ln1_g_ref, ln1_b_ref, wqkv_ref, bqkv_ref, wo_ref, bo_ref,
    ln2_g_ref, ln2_b_ref, w1_ref, b1_ref, w2_ref, b2_ref,
    lnf_g_ref, lnf_b_ref,
    tw1_ref, tb1_ref, tw2_ref, tb2_ref,
    dw1_ref, db1_ref, dw2_ref, db2_ref,
    out_ref,
):
    f32, bf16 = jnp.float32, jnp.bfloat16
    D, H, hd = EMBED, HEADS, HEAD_DIM
    scale = 1.0 / math.sqrt(hd)

    def mm(x, w):
        # bf16 operands on the MXU, f32 accumulation.
        return lax.dot_general(
            x.astype(bf16), w.astype(bf16),
            dimension_numbers=(((x.ndim - 1,), (0,)), ((), ())),
            preferred_element_type=f32)

    def layer_norm(x, g, b):
        mu = jnp.mean(x, axis=-1, keepdims=True)
        var = jnp.mean((x - mu) ** 2, axis=-1, keepdims=True)
        return (x - mu) * lax.rsqrt(var + LN_EPS) * g + b

    def erf_approx(x):
        # Abramowitz & Stegun 7.1.26 (~1.5e-7 abs err) -> near-exact GELU, exp-only (EUP).
        ax = jnp.abs(x)
        t = 1.0 / (1.0 + 0.3275911 * ax)
        poly = ((((1.061405429 * t - 1.453152027) * t + 1.421413741) * t
                 - 0.284496736) * t + 0.254829592) * t
        y = 1.0 - poly * jnp.exp(-ax * ax)
        return jnp.where(x >= 0.0, y, -y)

    def gelu(x):
        return 0.5 * x * (1.0 + erf_approx(x * (1.0 / math.sqrt(2.0))))

    def silu(x):
        return x * jax.nn.sigmoid(x)

    # ---------------- encoder: patch embed + positional ----------------
    x = mm(patches_ref[...], patch_w_ref[...]) + patch_b_ref[...]       # (N, D)
    x = x + pos_ref[...]

    # ---------------- transformer blocks (pre-LN) ----------------
    for l in range(NUM_LAYERS):                                          # static unroll
        x2 = layer_norm(x, ln1_g_ref[l], ln1_b_ref[l])
        qkv = mm(x2, wqkv_ref[l]) + bqkv_ref[l]                         # (N, 3D)
        q = qkv[:, 0 * D:1 * D]
        k = qkv[:, 1 * D:2 * D]
        v = qkv[:, 2 * D:3 * D]

        head_outs = []
        for h in range(H):                                              # static unroll
            sl = slice(h * hd, (h + 1) * hd)
            qh = q[:, sl].astype(bf16)
            kh = k[:, sl].astype(bf16)
            vh = v[:, sl].astype(bf16)
            # q @ k^T without materializing a transpose (contract last axes of both).
            s = lax.dot_general(qh, kh,
                                dimension_numbers=(((1,), (1,)), ((), ())),
                                preferred_element_type=f32) * scale
            s = s - jnp.max(s, axis=-1, keepdims=True)
            p = jnp.exp(s)
            # softmax normalization via EUP approx reciprocal (frees VPU slots).
            p = p * pl.reciprocal(jnp.sum(p, axis=-1, keepdims=True), approx=True)
            o = lax.dot_general(p.astype(bf16), vh,
                                dimension_numbers=(((1,), (0,)), ((), ())),
                                preferred_element_type=f32)
            head_outs.append(o)
        attn = jnp.concatenate(head_outs, axis=-1)                      # (N, D)

        x = x + mm(attn, wo_ref[l]) + bo_ref[l]

        x2 = layer_norm(x, ln2_g_ref[l], ln2_b_ref[l])
        h1 = gelu(mm(x2, w1_ref[l]) + b1_ref[l])
        x = x + mm(h1, w2_ref[l]) + b2_ref[l]

    latent = layer_norm(x, lnf_g_ref[...], lnf_b_ref[...])              # (N, D)

    # ---------------- decoder: timestep MLP (single row) + projection ----------------
    te = temb_ref[...]                                                  # (1, D) sinusoidal
    te = silu(mm(te, tw1_ref[...]) + tb1_ref[...])
    te = mm(te, tw2_ref[...]) + tb2_ref[...]                            # (1, D)
    hdec = latent + te                                                  # broadcast over N
    h1 = gelu(mm(hdec, dw1_ref[...]) + db1_ref[...])                    # (N, 4D)
    out = mm(h1, dw2_ref[...]) + db2_ref[...]                           # (N, 128) 48 valid
    out_ref[...] = out.astype(out_ref.dtype)


def fused_forward(params, patches_padded, temb_row):
    B = patches_padded.shape[0]
    patches_spec = pl.BlockSpec((None, NP_TOK, EMBED), lambda b: (b, 0, 0))
    temb_spec = pl.BlockSpec((None, 1, EMBED), lambda b: (b, 0, 0))

    weights = [
        params["patch_w"], params["patch_b"], params["pos"],
        params["ln1_g"], params["ln1_b"], params["wqkv"], params["bqkv"],
        params["wo"], params["bo"], params["ln2_g"], params["ln2_b"],
        params["w1"], params["b1"], params["w2"], params["b2"],
        params["lnf_g"], params["lnf_b"],
        params["tw1"], params["tb1"], params["tw2"], params["tb2"],
        params["dw1"], params["db1"], params["dw2"], params["db2"],
    ]

    def wspec(arr):
        nd = arr.ndim
        # Full-extent block, constant index_map -> stays resident in VMEM across the grid.
        return pl.BlockSpec(arr.shape, lambda b, _nd=nd: (0,) * _nd)

    in_specs = [patches_spec, temb_spec] + [wspec(w) for w in weights]

    return pl.pallas_call(
        _fused_forward_kernel,
        out_shape=jax.ShapeDtypeStruct((B, NP_TOK, EMBED), jnp.float32),
        grid=(B,),
        in_specs=in_specs,
        out_specs=pl.BlockSpec((None, NP_TOK, EMBED), lambda b: (b, 0, 0)),
        compiler_params=pltpu.CompilerParams(
            dimension_semantics=("parallel",)),   # batch-parallel -> v7x megacore
    )(patches_padded, temb_row, *weights)


# ------------------------------ parameter initialization -----------------------------
def init_params(key):
    D, Hd, L = EMBED, MLP_HIDDEN, NUM_LAYERS

    def nrm(k, shape, scale=0.02, dtype=jnp.bfloat16):
        return (scale * jax.random.normal(k, shape, dtype=jnp.float32)).astype(dtype)

    keys = iter(jax.random.split(key, 64))

    # Patch-embed weight padded (48 -> 128 rows, zero rows) so the input is lane-dense.
    patch_w = jnp.zeros((D, D), jnp.float32)
    patch_w = patch_w.at[:PATCH_FEAT, :].set(
        0.02 * jax.random.normal(next(keys), (PATCH_FEAT, D), dtype=jnp.float32))
    # Decoder output projection padded (48 -> 128 cols) for unmasked lane-dense stores.
    dw2 = jnp.zeros((Hd, D), jnp.float32)
    dw2 = dw2.at[:, :PATCH_FEAT].set(
        0.02 * jax.random.normal(next(keys), (Hd, PATCH_FEAT), dtype=jnp.float32))

    return {
        "patch_w": patch_w.astype(jnp.bfloat16),
        "patch_b": jnp.zeros((1, D), jnp.float32),
        "pos": nrm(next(keys), (NP_TOK, D), dtype=jnp.float32),
        # transformer blocks, stacked on a leading layer axis
        "ln1_g": jnp.ones((L, 1, D), jnp.float32),
        "ln1_b": jnp.zeros((L, 1, D), jnp.float32),
        "wqkv": nrm(next(keys), (L, D, 3 * D)),
        "bqkv": jnp.zeros((L, 1, 3 * D), jnp.float32),
        "wo": nrm(next(keys), (L, D, D)),
        "bo": jnp.zeros((L, 1, D), jnp.float32),
        "ln2_g": jnp.ones((L, 1, D), jnp.float32),
        "ln2_b": jnp.zeros((L, 1, D), jnp.float32),
        "w1": nrm(next(keys), (L, D, Hd)),
        "b1": jnp.zeros((L, 1, Hd), jnp.float32),
        "w2": nrm(next(keys), (L, Hd, D)),
        "b2": jnp.zeros((L, 1, D), jnp.float32),
        "lnf_g": jnp.ones((1, D), jnp.float32),
        "lnf_b": jnp.zeros((1, D), jnp.float32),
        # decoder
        "tw1": nrm(next(keys), (D, D)),
        "tb1": jnp.zeros((1, D), jnp.float32),
        "tw2": nrm(next(keys), (D, D)),
        "tb2": jnp.zeros((1, D), jnp.float32),
        "dw1": nrm(next(keys), (D, Hd)),
        "db1": jnp.zeros((1, Hd), jnp.float32),
        "dw2": dw2.astype(jnp.bfloat16),
        "db2": jnp.zeros((1, D), jnp.float32),
    }


# ------------------------------------ model glue --------------------------------------
def patchify(x):
    """NCHW (B,C,H,W) -> (B, Np, C*p*p), feature order (C, ph, pw)."""
    B, C, H, W = x.shape
    hp, wp = H // PATCH, W // PATCH
    x = x.reshape(B, C, hp, PATCH, wp, PATCH)
    x = x.transpose(0, 2, 4, 1, 3, 5)
    return x.reshape(B, hp * wp, C * PATCH * PATCH)


def unpatchify(x, H, W):
    """(B, Np, C*p*p) -> NCHW (B,C,H,W)."""
    B = x.shape[0]
    hp, wp = H // PATCH, W // PATCH
    x = x.reshape(B, hp, wp, CHANS, PATCH, PATCH)
    x = x.transpose(0, 3, 1, 4, 2, 5)
    return x.reshape(B, CHANS, H, W)


def timestep_embedding(t, dim):
    half = dim // 2
    freqs = jnp.exp(-math.log(10000.0) * jnp.arange(half, dtype=jnp.float32) / half)
    args = t.astype(jnp.float32)[:, None] * freqs[None, :]
    # TODO(synk): reference MyDecoder unknown — [sin, cos] ordering assumed.
    return jnp.concatenate([jnp.sin(args), jnp.cos(args)], axis=-1)


def new_model_forward(params, x, timesteps):
    B = x.shape[0]
    patches = patchify(x)                                                # (B, Np, 48)
    patches = jnp.pad(patches, ((0, 0), (0, 0), (0, EMBED - PATCH_FEAT)))  # lane-dense
    temb = timestep_embedding(timesteps, EMBED)[:, None, :]              # (B, 1, D)
    out = fused_forward(params, patches, temb)                           # (B, Np, 128)
    out = out[:, :, :PATCH_FEAT]                                         # valid 48 cols
    return unpatchify(out, IMG, IMG)


# -------------------------------------- main -------------------------------------------
if __name__ == "__main__":
    key = jax.random.PRNGKey(0)
    kp, kx, kt = jax.random.split(key, 3)
    params = init_params(kp)

    x = jax.random.normal(kx, (2, CHANS, IMG, IMG), dtype=jnp.float32)   # NCHW input
    timesteps = jax.random.randint(kt, (2,), 0, 1000, dtype=jnp.int32)

    out = jax.jit(new_model_forward)(params, x, timesteps)
    out = jax.block_until_ready(out)
    assert out.shape == (2, CHANS, IMG, IMG), out.shape
    print("KERNEL_OK")
</pallas_src>

<mosaic_0001>
module attributes {stable_mosaic.version = 11 : i64} {
  func.func @_fused_forward_kernel(%arg0: i32, %arg1: memref<1x16x128xf32, #tpu.memory_space<vmem>>, %arg2: memref<1x1x128xf32, #tpu.memory_space<vmem>>, %arg3: memref<128x128xbf16, #tpu.memory_space<vmem>>, %arg4: memref<1x128xf32, #tpu.memory_space<vmem>>, %arg5: memref<16x128xf32, #tpu.memory_space<vmem>>, %arg6: memref<2x1x128xf32, #tpu.memory_space<vmem>>, %arg7: memref<2x1x128xf32, #tpu.memory_space<vmem>>, %arg8: memref<2x128x384xbf16, #tpu.memory_space<vmem>>, %arg9: memref<2x1x384xf32, #tpu.memory_space<vmem>>, %arg10: memref<2x128x128xbf16, #tpu.memory_space<vmem>>, %arg11: memref<2x1x128xf32, #tpu.memory_space<vmem>>, %arg12: memref<2x1x128xf32, #tpu.memory_space<vmem>>, %arg13: memref<2x1x128xf32, #tpu.memory_space<vmem>>, %arg14: memref<2x128x512xbf16, #tpu.memory_space<vmem>>, %arg15: memref<2x1x512xf32, #tpu.memory_space<vmem>>, %arg16: memref<2x512x128xbf16, #tpu.memory_space<vmem>>, %arg17: memref<2x1x128xf32, #tpu.memory_space<vmem>>, %arg18: memref<1x128xf32, #tpu.memory_space<vmem>>, %arg19: memref<1x128xf32, #tpu.memory_space<vmem>>, %arg20: memref<128x128xbf16, #tpu.memory_space<vmem>>, %arg21: memref<1x128xf32, #tpu.memory_space<vmem>>, %arg22: memref<128x128xbf16, #tpu.memory_space<vmem>>, %arg23: memref<1x128xf32, #tpu.memory_space<vmem>>, %arg24: memref<128x512xbf16, #tpu.memory_space<vmem>>, %arg25: memref<1x512xf32, #tpu.memory_space<vmem>>, %arg26: memref<512x128xbf16, #tpu.memory_space<vmem>>, %arg27: memref<1x128xf32, #tpu.memory_space<vmem>>, %arg28: memref<1x16x128xf32, #tpu.memory_space<vmem>>) attributes {dimension_semantics = [#tpu.dimension_semantics<parallel>], iteration_bounds = array<i64: 2>, scalar_prefetch = 0 : i64, scratch_operands = 0 : i64, tpu.core_type = #tpu.core_type<tc>, window_params = [{transform_indices = @transform_0, window_bounds = array<i64: 1, 16, 128>}, {transform_indices = @transform_1, window_bounds = array<i64: 1, 1, 128>}, {pipeline_mode = #tpu.pipeline_mode<synchronous>, transform_indices = @transform_2, window_bounds = array<i64: 128, 128>}, {pipeline_mode = #tpu.pipeline_mode<synchronous>, transform_indices = @transform_3, window_bounds = array<i64: 1, 128>}, {pipeline_mode = #tpu.pipeline_mode<synchronous>, transform_indices = @transform_4, window_bounds = array<i64: 16, 128>}, {pipeline_mode = #tpu.pipeline_mode<synchronous>, transform_indices = @transform_5, window_bounds = array<i64: 2, 1, 128>}, {pipeline_mode = #tpu.pipeline_mode<synchronous>, transform_indices = @transform_6, window_bounds = array<i64: 2, 1, 128>}, {pipeline_mode = #tpu.pipeline_mode<synchronous>, transform_indices = @transform_7, window_bounds = array<i64: 2, 128, 384>}, {pipeline_mode = #tpu.pipeline_mode<synchronous>, transform_indices = @transform_8, window_bounds = array<i64: 2, 1, 384>}, {pipeline_mode = #tpu.pipeline_mode<synchronous>, transform_indices = @transform_9, window_bounds = array<i64: 2, 128, 128>}, {pipeline_mode = #tpu.pipeline_mode<synchronous>, transform_indices = @transform_10, window_bounds = array<i64: 2, 1, 128>}, {pipeline_mode = #tpu.pipeline_mode<synchronous>, transform_indices = @transform_11, window_bounds = array<i64: 2, 1, 128>}, {pipeline_mode = #tpu.pipeline_mode<synchronous>, transform_indices = @transform_12, window_bounds = array<i64: 2, 1, 128>}, {pipeline_mode = #tpu.pipeline_mode<synchronous>, transform_indices = @transform_13, window_bounds = array<i64: 2, 128, 512>}, {pipeline_mode = #tpu.pipeline_mode<synchronous>, transform_indices = @transform_14, window_bounds = array<i64: 2, 1, 512>}, {pipeline_mode = #tpu.pipeline_mode<synchronous>, transform_indices = @transform_15, window_bounds = array<i64: 2, 512, 128>}, {pipeline_mode = #tpu.pipeline_mode<synchronous>, transform_indices = @transform_16, window_bounds = array<i64: 2, 1, 128>}, {pipeline_mode = #tpu.pipeline_mode<synchronous>, transform_indices = @transform_17, window_bounds = array<i64: 1, 128>}, {pipeline_mode = #tpu.pipeline_mode<synchronous>, transform_indices = @transform_18, window_bounds = array<i64: 1, 128>}, {pipeline_mode = #tpu.pipeline_mode<synchronous>, transform_indices = @transform_19, window_bounds = array<i64: 128, 128>}, {pipeline_mode = #tpu.pipeline_mode<synchronous>, transform_indices = @transform_20, window_bounds = array<i64: 1, 128>}, {pipeline_mode = #tpu.pipeline_mode<synchronous>, transform_indices = @transform_21, window_bounds = array<i64: 128, 128>}, {pipeline_mode = #tpu.pipeline_mode<synchronous>, transform_indices = @transform_22, window_bounds = array<i64: 1, 128>}, {pipeline_mode = #tpu.pipeline_mode<synchronous>, transform_indices = @transform_23, window_bounds = array<i64: 128, 512>}, {pipeline_mode = #tpu.pipeline_mode<synchronous>, transform_indices = @transform_24, window_bounds = array<i64: 1, 512>}, {pipeline_mode = #tpu.pipeline_mode<synchronous>, transform_indices = @transform_25, window_bounds = array<i64: 512, 128>}, {pipeline_mode = #tpu.pipeline_mode<synchronous>, transform_indices = @transform_26, window_bounds = array<i64: 1, 128>}, {transform_indices = @transform_27, window_bounds = array<i64: 1, 16, 128>}]} {
    %c0 = arith.constant 0 : index
    %c0_0 = arith.constant 0 : index
    %c0_1 = arith.constant 0 : index
    %0 = vector.load %arg1[%c0, %c0_0, %c0_1] : memref<1x16x128xf32, #tpu.memory_space<vmem>>, vector<1x16x128xf32>
    %1 = vector.shape_cast %0 : vector<1x16x128xf32> to vector<16x128xf32>
    %c0_2 = arith.constant 0 : index
    %c0_3 = arith.constant 0 : index
    %2 = vector.load %arg3[%c0_2, %c0_3] : memref<128x128xbf16, #tpu.memory_space<vmem>>, vector<128x128xbf16>
    %3 = arith.truncf %1 : vector<16x128xf32> to vector<16x128xbf16>
    %cst = arith.constant dense<0.000000e+00> : vector<16x128xf32>
    %4 = tpu.matmul %3, %2, %cst {dimension_numbers = #tpu.dot_dimension_numbers<[1], [0], [0], [1], [0, 0, 1, 1], [], []>} : vector<16x128xbf16>, vector<128x128xbf16>, vector<16x128xf32> -> vector<16x128xf32>
    %c0_4 = arith.constant 0 : index
    %c0_5 = arith.constant 0 : index
    %5 = vector.load %arg4[%c0_4, %c0_5] : memref<1x128xf32, #tpu.memory_space<vmem>>, vector<1x128xf32>
    %6 = vector.broadcast %5 : vector<1x128xf32> to vector<16x128xf32>
    %7 = arith.addf %4, %6 : vector<16x128xf32>
    %c0_6 = arith.constant 0 : index
    %c0_7 = arith.constant 0 : index
    %8 = vector.load %arg5[%c0_6, %c0_7] : memref<16x128xf32, #tpu.memory_space<vmem>>, vector<16x128xf32>
    %9 = arith.addf %7, %8 : vector<16x128xf32>
    %c0_8 = arith.constant 0 : index
    %c0_9 = arith.constant 0 : index
    %c0_10 = arith.constant 0 : index
    %10 = vector.load %arg6[%c0_8, %c0_9, %c0_10] : memref<2x1x128xf32, #tpu.memory_space<vmem>>, vector<1x1x128xf32>
    %11 = vector.shape_cast %10 : vector<1x1x128xf32> to vector<1x128xf32>
    %c0_11 = arith.constant 0 : index
    %c0_12 = arith.constant 0 : index
    %c0_13 = arith.constant 0 : index
    %12 = vector.load %arg7[%c0_11, %c0_12, %c0_13] : memref<2x1x128xf32, #tpu.memory_space<vmem>>, vector<1x1x128xf32>
    %13 = vector.shape_cast %12 : vector<1x1x128xf32> to vector<1x128xf32>
    %cst_14 = arith.constant dense<0.000000e+00> : vector<16xf32>
    %14 = vector.multi_reduction <add>, %9, %cst_14 [1] : vector<16x128xf32> to vector<16xf32>
    %15 = vector.shape_cast %14 : vector<16xf32> to vector<16x1xf32>
    %cst_15 = arith.constant 1.280000e+02 : f32
    %16 = vector.broadcast %cst_15 : f32 to vector<16x1xf32>
    %17 = arith.divf %15, %16 : vector<16x1xf32>
    %18 = vector.broadcast %17 : vector<16x1xf32> to vector<16x128xf32>
    %19 = arith.subf %9, %18 : vector<16x128xf32>
    %20 = arith.mulf %19, %19 : vector<16x128xf32>
    %cst_16 = arith.constant dense<0.000000e+00> : vector<16xf32>
    %21 = vector.multi_reduction <add>, %20, %cst_16 [1] : vector<16x128xf32> to vector<16xf32>
    %22 = vector.shape_cast %21 : vector<16xf32> to vector<16x1xf32>
    %cst_17 = arith.constant 1.280000e+02 : f32
    %23 = vector.broadcast %cst_17 : f32 to vector<16x1xf32>
    %24 = arith.divf %22, %23 : vector<16x1xf32>
    %25 = vector.broadcast %17 : vector<16x1xf32> to vector<16x128xf32>
    %26 = arith.subf %9, %25 : vector<16x128xf32>
    %cst_18 = arith.constant 9.99999974E-6 : f32
    %27 = vector.broadcast %cst_18 : f32 to vector<16x1xf32>
    %28 = arith.addf %24, %27 : vector<16x1xf32>
    %29 = math.rsqrt %28 : vector<16x1xf32>
    %30 = vector.broadcast %29 : vector<16x1xf32> to vector<16x128xf32>
    %31 = arith.mulf %26, %30 : vector<16x128xf32>
    %32 = vector.broadcast %11 : vector<1x128xf32> to vector<16x128xf32>
    %33 = arith.mulf %31, %32 : vector<16x128xf32>
    %34 = vector.broadcast %13 : vector<1x128xf32> to vector<16x128xf32>
    %35 = arith.addf %33, %34 : vector<16x128xf32>
    %c0_19 = arith.constant 0 : index
    %c0_20 = arith.constant 0 : index
    %c0_21 = arith.constant 0 : index
    %36 = vector.load %arg8[%c0_19, %c0_20, %c0_21] : memref<2x128x384xbf16, #tpu.memory_space<vmem>>, vector<1x128x384xbf16>
    %37 = vector.shape_cast %36 : vector<1x128x384xbf16> to vector<128x384xbf16>
    %38 = arith.truncf %35 : vector<16x128xf32> to vector<16x128xbf16>
    %cst_22 = arith.constant dense<0.000000e+00> : vector<16x384xf32>
    %39 = tpu.matmul %38, %37, %cst_22 {dimension_numbers = #tpu.dot_dimension_numbers<[1], [0], [0], [1], [0, 0, 1, 1], [], []>} : vector<16x128xbf16>, vector<128x384xbf16>, vector<16x384xf32> -> vector<16x384xf32>
    %c0_23 = arith.constant 0 : index
    %c0_24 = arith.constant 0 : index
    %c0_25 = arith.constant 0 : index
    %40 = vector.load %arg9[%c0_23, %c0_24, %c0_25] : memref<2x1x384xf32, #tpu.memory_space<vmem>>, vector<1x1x384xf32>
    %41 = vector.shape_cast %40 : vector<1x1x384xf32> to vector<1x384xf32>
    %42 = vector.broadcast %41 : vector<1x384xf32> to vector<16x384xf32>
    %43 = arith.addf %39, %42 : vector<16x384xf32>
    %44 = vector.extract_strided_slice %43 {offsets = [0, 0], sizes = [16, 128], strides = [1, 1]} : vector<16x384xf32> to vector<16x128xf32>
    %45 = vector.extract_strided_slice %43 {offsets = [0, 128], sizes = [16, 128], strides = [1, 1]} : vector<16x384xf32> to vector<16x128xf32>
    %46 = vector.extract_strided_slice %43 {offsets = [0, 256], sizes = [16, 128], strides = [1, 1]} : vector<16x384xf32> to vector<16x128xf32>
    %47 = vector.extract_strided_slice %44 {offsets = [0, 0], sizes = [16, 32], strides = [1, 1]} : vector<16x128xf32> to vector<16x32xf32>
    %48 = arith.truncf %47 : vector<16x32xf32> to vector<16x32xbf16>
    %49 = vector.extract_strided_slice %45 {offsets = [0, 0], sizes = [16, 32], strides = [1, 1]} : vector<16x128xf32> to vector<16x32xf32>
    %50 = arith.truncf %49 : vector<16x32xf32> to vector<16x32xbf16>
    %51 = vector.extract_strided_slice %46 {offsets = [0, 0], sizes = [16, 32], strides = [1, 1]} : vector<16x128xf32> to vector<16x32xf32>
    %52 = arith.truncf %51 : vector<16x32xf32> to vector<16x32xbf16>
    %cst_26 = arith.constant dense<0.000000e+00> : vector<16x16xf32>
    %53 = tpu.matmul %48, %50, %cst_26 {dimension_numbers = #tpu.dot_dimension_numbers<[1], [1], [0], [0], [0, 0, 1, 0], [], []>} : vector<16x32xbf16>, vector<16x32xbf16>, vector<16x16xf32> -> vector<16x16xf32>
    %cst_27 = arith.constant 0.176776692 : f32
    %54 = vector.broadcast %cst_27 : f32 to vector<16x16xf32>
    %55 = arith.mulf %53, %54 : vector<16x16xf32>
    %cst_28 = arith.constant dense<0xFF800000> : vector<16xf32>
    %56 = vector.multi_reduction <maximumf>, %55, %cst_28 [1] : vector<16x16xf32> to vector<16xf32>
    %57 = vector.shape_cast %56 : vector<16xf32> to vector<16x1xf32>
    %58 = vector.broadcast %57 : vector<16x1xf32> to vector<16x16xf32>
    %59 = arith.subf %55, %58 : vector<16x16xf32>
    %60 = math.exp %59 : vector<16x16xf32>
    %cst_29 = arith.constant dense<0.000000e+00> : vector<16xf32>
    %61 = vector.multi_reduction <add>, %60, %cst_29 [1] : vector<16x16xf32> to vector<16xf32>
    %62 = vector.shape_cast %61 : vector<16xf32> to vector<16x1xf32>
    %63 = tpu.reciprocal %62 {approx = true} : vector<16x1xf32> -> vector<16x1xf32>
    %64 = vector.broadcast %63 : vector<16x1xf32> to vector<16x16xf32>
    %65 = arith.mulf %60, %64 : vector<16x16xf32>
    %66 = arith.truncf %65 : vector<16x16xf32> to vector<16x16xbf16>
    %cst_30 = arith.constant dense<0.000000e+00> : vector<16x32xf32>
    %67 = tpu.matmul %66, %52, %cst_30 {dimension_numbers = #tpu.dot_dimension_numbers<[1], [0], [0], [1], [0, 0, 1, 1], [], []>} : vector<16x16xbf16>, vector<16x32xbf16>, vector<16x32xf32> -> vector<16x32xf32>
    %68 = vector.extract_strided_slice %44 {offsets = [0, 32], sizes = [16, 32], strides = [1, 1]} : vector<16x128xf32> to vector<16x32xf32>
    %69 = arith.truncf %68 : vector<16x32xf32> to vector<16x32xbf16>
    %70 = vector.extract_strided_slice %45 {offsets = [0, 32], sizes = [16, 32], strides = [1, 1]} : vector<16x128xf32> to vector<16x32xf32>
    %71 = arith.truncf %70 : vector<16x32xf32> to vector<16x32xbf16>
    %72 = vector.extract_strided_slice %46 {offsets = [0, 32], sizes = [16, 32], strides = [1, 1]} : vector<16x128xf32> to vector<16x32xf32>
    %73 = arith.truncf %72 : vector<16x32xf32> to vector<16x32xbf16>
    %cst_31 = arith.constant dense<0.000000e+00> : vector<16x16xf32>
    %74 = tpu.matmul %69, %71, %cst_31 {dimension_numbers = #tpu.dot_dimension_numbers<[1], [1], [0], [0], [0, 0, 1, 0], [], []>} : vector<16x32xbf16>, vector<16x32xbf16>, vector<16x16xf32> -> vector<16x16xf32>
    %cst_32 = arith.constant 0.176776692 : f32
    %75 = vector.broadcast %cst_32 : f32 to vector<16x16xf32>
    %76 = arith.mulf %74, %75 : vector<16x16xf32>
    %cst_33 = arith.constant dense<0xFF800000> : vector<16xf32>
    %77 = vector.multi_reduction <maximumf>, %76, %cst_33 [1] : vector<16x16xf32> to vector<16xf32>
    %78 = vector.shape_cast %77 : vector<16xf32> to vector<16x1xf32>
    %79 = vector.broadcast %78 : vector<16x1xf32> to vector<16x16xf32>
    %80 = arith.subf %76, %79 : vector<16x16xf32>
    %81 = math.exp %80 : vector<16x16xf32>
    %cst_34 = arith.constant dense<0.000000e+00> : vector<16xf32>
    %82 = vector.multi_reduction <add>, %81, %cst_34 [1] : vector<16x16xf32> to vector<16xf32>
    %83 = vector.shape_cast %82 : vector<16xf32> to vector<16x1xf32>
    %84 = tpu.reciprocal %83 {approx = true} : vector<16x1xf32> -> vector<16x1xf32>
    %85 = vector.broadcast %84 : vector<16x1xf32> to vector<16x16xf32>
    %86 = arith.mulf %81, %85 : vector<16x16xf32>
    %87 = arith.truncf %86 : vector<16x16xf32> to vector<16x16xbf16>
    %cst_35 = arith.constant dense<0.000000e+00> : vector<16x32xf32>
    %88 = tpu.matmul %87, %73, %cst_35 {dimension_numbers = #tpu.dot_dimension_numbers<[1], [0], [0], [1], [0, 0, 1, 1], [], []>} : vector<16x16xbf16>, vector<16x32xbf16>, vector<16x32xf32> -> vector<16x32xf32>
    %89 = vector.extract_strided_slice %44 {offsets = [0, 64], sizes = [16, 32], strides = [1, 1]} : vector<16x128xf32> to vector<16x32xf32>
    %90 = arith.truncf %89 : vector<16x32xf32> to vector<16x32xbf16>
    %91 = vector.extract_strided_slice %45 {offsets = [0, 64], sizes = [16, 32], strides = [1, 1]} : vector<16x128xf32> to vector<16x32xf32>
    %92 = arith.truncf %91 : vector<16x32xf32> to vector<16x32xbf16>
    %93 = vector.extract_strided_slice %46 {offsets = [0, 64], sizes = [16, 32], strides = [1, 1]} : vector<16x128xf32> to vector<16x32xf32>
    %94 = arith.truncf %93 : vector<16x32xf32> to vector<16x32xbf16>
    %cst_36 = arith.constant dense<0.000000e+00> : vector<16x16xf32>
    %95 = tpu.matmul %90, %92, %cst_36 {dimension_numbers = #tpu.dot_dimension_numbers<[1], [1], [0], [0], [0, 0, 1, 0], [], []>} : vector<16x32xbf16>, vector<16x32xbf16>, vector<16x16xf32> -> vector<16x16xf32>
    %cst_37 = arith.constant 0.176776692 : f32
    %96 = vector.broadcast %cst_37 : f32 to vector<16x16xf32>
    %97 = arith.mulf %95, %96 : vector<16x16xf32>
    %cst_38 = arith.constant dense<0xFF800000> : vector<16xf32>
    %98 = vector.multi_reduction <maximumf>, %97, %cst_38 [1] : vector<16x16xf32> to vector<16xf32>
    %99 = vector.shape_cast %98 : vector<16xf32> to vector<16x1xf32>
    %100 = vector.broadcast %99 : vector<16x1xf32> to vector<16x16xf32>
    %101 = arith.subf %97, %100 : vector<16x16xf32>
    %102 = math.exp %101 : vector<16x16xf32>
    %cst_39 = arith.constant dense<0.000000e+00> : vector<16xf32>
    %103 = vector.multi_reduction <add>, %102, %cst_39 [1] : vector<16x16xf32> to vector<16xf32>
    %104 = vector.shape_cast %103 : vector<16xf32> to vector<16x1xf32>
    %105 = tpu.reciprocal %104 {approx = true} : vector<16x1xf32> -> vector<16x1xf32>
    %106 = vector.broadcast %105 : vector<16x1xf32> to vector<16x16xf32>
    %107 = arith.mulf %102, %106 : vector<16x16xf32>
    %108 = arith.truncf %107 : vector<16x16xf32> to vector<16x16xbf16>
    %cst_40 = arith.constant dense<0.000000e+00> : vector<16x32xf32>
    %109 = tpu.matmul %108, %94, %cst_40 {dimension_numbers = #tpu.dot_dimension_numbers<[1], [0], [0], [1], [0, 0, 1, 1], [], []>} : vector<16x16xbf16>, vector<16x32xbf16>, vector<16x32xf32> -> vector<16x32xf32>
    %110 = vector.extract_strided_slice %44 {offsets = [0, 96], sizes = [16, 32], strides = [1, 1]} : vector<16x128xf32> to vector<16x32xf32>
    %111 = arith.truncf %110 : vector<16x32xf32> to vector<16x32xbf16>
    %112 = vector.extract_strided_slice %45 {offsets = [0, 96], sizes = [16, 32], strides = [1, 1]} : vector<16x128xf32> to vector<16x32xf32>
    %113 = arith.truncf %112 : vector<16x32xf32> to vector<16x32xbf16>
    %114 = vector.extract_strided_slice %46 {offsets = [0, 96], sizes = [16, 32], strides = [1, 1]} : vector<16x128xf32> to vector<16x32xf32>
    %115 = arith.truncf %114 : vector<16x32xf32> to vector<16x32xbf16>
    %cst_41 = arith.constant dense<0.000000e+00> : vector<16x16xf32>
    %116 = tpu.matmul %111, %113, %cst_41 {dimension_numbers = #tpu.dot_dimension_numbers<[1], [1], [0], [0], [0, 0, 1, 0], [], []>} : vector<16x32xbf16>, vector<16x32xbf16>, vector<16x16xf32> -> vector<16x16xf32>
    %cst_42 = arith.constant 0.176776692 : f32
    %117 = vector.broadcast %cst_42 : f32 to vector<16x16xf32>
    %118 = arith.mulf %116, %117 : vector<16x16xf32>
    %cst_43 = arith.constant dense<0xFF800000> : vector<16xf32>
    %119 = vector.multi_reduction <maximumf>, %118, %cst_43 [1] : vector<16x16xf32> to vector<16xf32>
    %120 = vector.shape_cast %119 : vector<16xf32> to vector<16x1xf32>
    %121 = vector.broadcast %120 : vector<16x1xf32> to vector<16x16xf32>
    %122 = arith.subf %118, %121 : vector<16x16xf32>
    %123 = math.exp %122 : vector<16x16xf32>
    %cst_44 = arith.constant dense<0.000000e+00> : vector<16xf32>
    %124 = vector.multi_reduction <add>, %123, %cst_44 [1] : vector<16x16xf32> to vector<16xf32>
    %125 = vector.shape_cast %124 : vector<16xf32> to vector<16x1xf32>
    %126 = tpu.reciprocal %125 {approx = true} : vector<16x1xf32> -> vector<16x1xf32>
    %127 = vector.broadcast %126 : vector<16x1xf32> to vector<16x16xf32>
    %128 = arith.mulf %123, %127 : vector<16x16xf32>
    %129 = arith.truncf %128 : vector<16x16xf32> to vector<16x16xbf16>
    %cst_45 = arith.constant dense<0.000000e+00> : vector<16x32xf32>
    %130 = tpu.matmul %129, %115, %cst_45 {dimension_numbers = #tpu.dot_dimension_numbers<[1], [0], [0], [1], [0, 0, 1, 1], [], []>} : vector<16x16xbf16>, vector<16x32xbf16>, vector<16x32xf32> -> vector<16x32xf32>
    %131 = tpu.concatenate %67, %88, %109, %130 in 1 : vector<16x32xf32>, vector<16x32xf32>, vector<16x32xf32>, vector<16x32xf32> -> vector<16x128xf32>
    %c0_46 = arith.constant 0 : index
    %c0_47 = arith.constant 0 : index
    %c0_48 = arith.constant 0 : index
    %132 = vector.load %arg10[%c0_46, %c0_47, %c0_48] : memref<2x128x128xbf16, #tpu.memory_space<vmem>>, vector<1x128x128xbf16>
    %133 = vector.shape_cast %132 : vector<1x128x128xbf16> to vector<128x128xbf16>
    %134 = arith.truncf %131 : vector<16x128xf32> to vector<16x128xbf16>
    %cst_49 = arith.constant dense<0.000000e+00> : vector<16x128xf32>
    %135 = tpu.matmul %134, %133, %cst_49 {dimension_numbers = #tpu.dot_dimension_numbers<[1], [0], [0], [1], [0, 0, 1, 1], [], []>} : vector<16x128xbf16>, vector<128x128xbf16>, vector<16x128xf32> -> vector<16x128xf32>
    %136 = arith.addf %9, %135 : vector<16x128xf32>
    %c0_50 = arith.constant 0 : index
    %c0_51 = arith.constant 0 : index
    %c0_52 = arith.constant 0 : index
    %137 = vector.load %arg11[%c0_50, %c0_51, %c0_52] : memref<2x1x128xf32, #tpu.memory_space<vmem>>, vector<1x1x128xf32>
    %138 = vector.shape_cast %137 : vector<1x1x128xf32> to vector<1x128xf32>
    %139 = vector.broadcast %138 : vector<1x128xf32> to vector<16x128xf32>
    %140 = arith.addf %136, %139 : vector<16x128xf32>
    %c0_53 = arith.constant 0 : index
    %c0_54 = arith.constant 0 : index
    %c0_55 = arith.constant 0 : index
    %141 = vector.load %arg12[%c0_53, %c0_54, %c0_55] : memref<2x1x128xf32, #tpu.memory_space<vmem>>, vector<1x1x128xf32>
    %142 = vector.shape_cast %141 : vector<1x1x128xf32> to vector<1x128xf32>
    %c0_56 = arith.constant 0 : index
    %c0_57 = arith.constant 0 : index
    %c0_58 = arith.constant 0 : index
    %143 = vector.load %arg13[%c0_56, %c0_57, %c0_58] : memref<2x1x128xf32, #tpu.memory_space<vmem>>, vector<1x1x128xf32>
    %144 = vector.shape_cast %143 : vector<1x1x128xf32> to vector<1x128xf32>
    %cst_59 = arith.constant dense<0.000000e+00> : vector<16xf32>
    %145 = vector.multi_reduction <add>, %140, %cst_59 [1] : vector<16x128xf32> to vector<16xf32>
    %146 = vector.shape_cast %145 : vector<16xf32> to vector<16x1xf32>
    %cst_60 = arith.constant 1.280000e+02 : f32
    %147 = vector.broadcast %cst_60 : f32 to vector<16x1xf32>
    %148 = arith.divf %146, %147 : vector<16x1xf32>
    %149 = vector.broadcast %148 : vector<16x1xf32> to vector<16x128xf32>
    %150 = arith.subf %140, %149 : vector<16x128xf32>
    %151 = arith.mulf %150, %150 : vector<16x128xf32>
    %cst_61 = arith.constant dense<0.000000e+00> : vector<16xf32>
    %152 = vector.multi_reduction <add>, %151, %cst_61 [1] : vector<16x128xf32> to vector<16xf32>
    %153 = vector.shape_cast %152 : vector<16xf32> to vector<16x1xf32>
    %cst_62 = arith.constant 1.280000e+02 : f32
    %154 = vector.broadcast %cst_62 : f32 to vector<16x1xf32>
    %155 = arith.divf %153, %154 : vector<16x1xf32>
    %156 = vector.broadcast %148 : vector<16x1xf32> to vector<16x128xf32>
    %157 = arith.subf %140, %156 : vector<16x128xf32>
    %cst_63 = arith.constant 9.99999974E-6 : f32
    %158 = vector.broadcast %cst_63 : f32 to vector<16x1xf32>
    %159 = arith.addf %155, %158 : vector<16x1xf32>
    %160 = math.rsqrt %159 : vector<16x1xf32>
    %161 = vector.broadcast %160 : vector<16x1xf32> to vector<16x128xf32>
    %162 = arith.mulf %157, %161 : vector<16x128xf32>
    %163 = vector.broadcast %142 : vector<1x128xf32> to vector<16x128xf32>
    %164 = arith.mulf %162, %163 : vector<16x128xf32>
    %165 = vector.broadcast %144 : vector<1x128xf32> to vector<16x128xf32>
    %166 = arith.addf %164, %165 : vector<16x128xf32>
    %c0_64 = arith.constant 0 : index
    %c0_65 = arith.constant 0 : index
    %c0_66 = arith.constant 0 : index
    %167 = vector.load %arg14[%c0_64, %c0_65, %c0_66] : memref<2x128x512xbf16, #tpu.memory_space<vmem>>, vector<1x128x512xbf16>
    %168 = vector.shape_cast %167 : vector<1x128x512xbf16> to vector<128x512xbf16>
    %169 = arith.truncf %166 : vector<16x128xf32> to vector<16x128xbf16>
    %cst_67 = arith.constant dense<0.000000e+00> : vector<16x512xf32>
    %170 = tpu.matmul %169, %168, %cst_67 {dimension_numbers = #tpu.dot_dimension_numbers<[1], [0], [0], [1], [0, 0, 1, 1], [], []>} : vector<16x128xbf16>, vector<128x512xbf16>, vector<16x512xf32> -> vector<16x512xf32>
    %c0_68 = arith.constant 0 : index
    %c0_69 = arith.constant 0 : index
    %c0_70 = arith.constant 0 : index
    %171 = vector.load %arg15[%c0_68, %c0_69, %c0_70] : memref<2x1x512xf32, #tpu.memory_space<vmem>>, vector<1x1x512xf32>
    %172 = vector.shape_cast %171 : vector<1x1x512xf32> to vector<1x512xf32>
    %173 = vector.broadcast %172 : vector<1x512xf32> to vector<16x512xf32>
    %174 = arith.addf %170, %173 : vector<16x512xf32>
    %cst_71 = arith.constant 5.000000e-01 : f32
    %175 = vector.broadcast %cst_71 : f32 to vector<16x512xf32>
    %176 = arith.mulf %175, %174 : vector<16x512xf32>
    %cst_72 = arith.constant 0.707106769 : f32
    %177 = vector.broadcast %cst_72 : f32 to vector<16x512xf32>
    %178 = arith.mulf %174, %177 : vector<16x512xf32>
    %179 = math.absf %178 : vector<16x512xf32>
    %cst_73 = arith.constant 0.327591091 : f32
    %180 = vector.broadcast %cst_73 : f32 to vector<16x512xf32>
    %181 = arith.mulf %180, %179 : vector<16x512xf32>
    %cst_74 = arith.constant 1.000000e+00 : f32
    %182 = vector.broadcast %cst_74 : f32 to vector<16x512xf32>
    %183 = arith.addf %182, %181 : vector<16x512xf32>
    %cst_75 = arith.constant 1.000000e+00 : f32
    %184 = vector.broadcast %cst_75 : f32 to vector<16x512xf32>
    %185 = arith.divf %184, %183 : vector<16x512xf32>
    %cst_76 = arith.constant 1.06140542 : f32
    %186 = vector.broadcast %cst_76 : f32 to vector<16x512xf32>
    %187 = arith.mulf %186, %185 : vector<16x512xf32>
    %cst_77 = arith.constant 1.45315206 : f32
    %188 = vector.broadcast %cst_77 : f32 to vector<16x512xf32>
    %189 = arith.subf %187, %188 : vector<16x512xf32>
    %190 = arith.mulf %189, %185 : vector<16x512xf32>
    %cst_78 = arith.constant 1.42141378 : f32
    %191 = vector.broadcast %cst_78 : f32 to vector<16x512xf32>
    %192 = arith.addf %190, %191 : vector<16x512xf32>
    %193 = arith.mulf %192, %185 : vector<16x512xf32>
    %cst_79 = arith.constant 0.284496725 : f32
    %194 = vector.broadcast %cst_79 : f32 to vector<16x512xf32>
    %195 = arith.subf %193, %194 : vector<16x512xf32>
    %196 = arith.mulf %195, %185 : vector<16x512xf32>
    %cst_80 = arith.constant 0.254829586 : f32
    %197 = vector.broadcast %cst_80 : f32 to vector<16x512xf32>
    %198 = arith.addf %196, %197 : vector<16x512xf32>
    %199 = arith.mulf %198, %185 : vector<16x512xf32>
    %cst_81 = arith.constant 0.000000e+00 : f32
    %200 = vector.broadcast %cst_81 : f32 to vector<16x512xf32>
    %201 = arith.subf %200, %179 : vector<16x512xf32>
    %202 = arith.mulf %201, %179 : vector<16x512xf32>
    %203 = math.exp %202 : vector<16x512xf32>
    %204 = arith.mulf %199, %203 : vector<16x512xf32>
    %cst_82 = arith.constant 1.000000e+00 : f32
    %205 = vector.broadcast %cst_82 : f32 to vector<16x512xf32>
    %206 = arith.subf %205, %204 : vector<16x512xf32>
    %cst_83 = arith.constant 0.000000e+00 : f32
    %207 = vector.broadcast %cst_83 : f32 to vector<16x512xf32>
    %208 = arith.cmpf oge, %178, %207 : vector<16x512xf32>
    %cst_84 = arith.constant 0.000000e+00 : f32
    %209 = vector.broadcast %cst_84 : f32 to vector<16x512xf32>
    %210 = arith.subf %209, %206 : vector<16x512xf32>
    %211 = arith.select %208, %206, %210 : vector<16x512xi1>, vector<16x512xf32>
    %cst_85 = arith.constant 1.000000e+00 : f32
    %212 = vector.broadcast %cst_85 : f32 to vector<16x512xf32>
    %213 = arith.addf %212, %211 : vector<16x512xf32>
    %214 = arith.mulf %176, %213 : vector<16x512xf32>
    %c0_86 = arith.constant 0 : index
    %c0_87 = arith.constant 0 : index
    %c0_88 = arith.constant 0 : index
    %215 = vector.load %arg16[%c0_86, %c0_87, %c0_88] : memref<2x512x128xbf16, #tpu.memory_space<vmem>>, vector<1x512x128xbf16>
    %216 = vector.shape_cast %215 : vector<1x512x128xbf16> to vector<512x128xbf16>
    %217 = arith.truncf %214 : vector<16x512xf32> to vector<16x512xbf16>
    %cst_89 = arith.constant dense<0.000000e+00> : vector<16x128xf32>
    %218 = tpu.matmul %217, %216, %cst_89 {dimension_numbers = #tpu.dot_dimension_numbers<[1], [0], [0], [1], [0, 0, 1, 1], [], []>} : vector<16x512xbf16>, vector<512x128xbf16>, vector<16x128xf32> -> vector<16x128xf32>
    %219 = arith.addf %140, %218 : vector<16x128xf32>
    %c0_90 = arith.constant 0 : index
    %c0_91 = arith.constant 0 : index
    %c0_92 = arith.constant 0 : index
    %220 = vector.load %arg17[%c0_90, %c0_91, %c0_92] : memref<2x1x128xf32, #tpu.memory_space<vmem>>, vector<1x1x128xf32>
    %221 = vector.shape_cast %220 : vector<1x1x128xf32> to vector<1x128xf32>
    %222 = vector.broadcast %221 : vector<1x128xf32> to vector<16x128xf32>
    %223 = arith.addf %219, %222 : vector<16x128xf32>
    %c1 = arith.constant 1 : index
    %c0_93 = arith.constant 0 : index
    %c0_94 = arith.constant 0 : index
    %224 = vector.load %arg6[%c1, %c0_93, %c0_94] : memref<2x1x128xf32, #tpu.memory_space<vmem>>, vector<1x1x128xf32>
    %225 = vector.shape_cast %224 : vector<1x1x128xf32> to vector<1x128xf32>
    %c1_95 = arith.constant 1 : index
    %c0_96 = arith.constant 0 : index
    %c0_97 = arith.constant 0 : index
    %226 = vector.load %arg7[%c1_95, %c0_96, %c0_97] : memref<2x1x128xf32, #tpu.memory_space<vmem>>, vector<1x1x128xf32>
    %227 = vector.shape_cast %226 : vector<1x1x128xf32> to vector<1x128xf32>
    %cst_98 = arith.constant dense<0.000000e+00> : vector<16xf32>
    %228 = vector.multi_reduction <add>, %223, %cst_98 [1] : vector<16x128xf32> to vector<16xf32>
    %229 = vector.shape_cast %228 : vector<16xf32> to vector<16x1xf32>
    %cst_99 = arith.constant 1.280000e+02 : f32
    %230 = vector.broadcast %cst_99 : f32 to vector<16x1xf32>
    %231 = arith.divf %229, %230 : vector<16x1xf32>
    %232 = vector.broadcast %231 : vector<16x1xf32> to vector<16x128xf32>
    %233 = arith.subf %223, %232 : vector<16x128xf32>
    %234 = arith.mulf %233, %233 : vector<16x128xf32>
    %cst_100 = arith.constant dense<0.000000e+00> : vector<16xf32>
    %235 = vector.multi_reduction <add>, %234, %cst_100 [1] : vector<16x128xf32> to vector<16xf32>
    %236 = vector.shape_cast %235 : vector<16xf32> to vector<16x1xf32>
    %cst_101 = arith.constant 1.280000e+02 : f32
    %237 = vector.broadcast %cst_101 : f32 to vector<16x1xf32>
    %238 = arith.divf %236, %237 : vector<16x1xf32>
    %239 = vector.broadcast %231 : vector<16x1xf32> to vector<16x128xf32>
    %240 = arith.subf %223, %239 : vector<16x128xf32>
    %cst_102 = arith.constant 9.99999974E-6 : f32
    %241 = vector.broadcast %cst_102 : f32 to vector<16x1xf32>
    %242 = arith.addf %238, %241 : vector<16x1xf32>
    %243 = math.rsqrt %242 : vector<16x1xf32>
    %244 = vector.broadcast %243 : vector<16x1xf32> to vector<16x128xf32>
    %245 = arith.mulf %240, %244 : vector<16x128xf32>
    %246 = vector.broadcast %225 : vector<1x128xf32> to vector<16x128xf32>
    %247 = arith.mulf %245, %246 : vector<16x128xf32>
    %248 = vector.broadcast %227 : vector<1x128xf32> to vector<16x128xf32>
    %249 = arith.addf %247, %248 : vector<16x128xf32>
    %c1_103 = arith.constant 1 : index
    %c0_104 = arith.constant 0 : index
    %c0_105 = arith.constant 0 : index
    %250 = vector.load %arg8[%c1_103, %c0_104, %c0_105] : memref<2x128x384xbf16, #tpu.memory_space<vmem>>, vector<1x128x384xbf16>
    %251 = vector.shape_cast %250 : vector<1x128x384xbf16> to vector<128x384xbf16>
    %252 = arith.truncf %249 : vector<16x128xf32> to vector<16x128xbf16>
    %cst_106 = arith.constant dense<0.000000e+00> : vector<16x384xf32>
    %253 = tpu.matmul %252, %251, %cst_106 {dimension_numbers = #tpu.dot_dimension_numbers<[1], [0], [0], [1], [0, 0, 1, 1], [], []>} : vector<16x128xbf16>, vector<128x384xbf16>, vector<16x384xf32> -> vector<16x384xf32>
    %c1_107 = arith.constant 1 : index
    %c0_108 = arith.constant 0 : index
    %c0_109 = arith.constant 0 : index
    %254 = vector.load %arg9[%c1_107, %c0_108, %c0_109] : memref<2x1x384xf32, #tpu.memory_space<vmem>>, vector<1x1x384xf32>
    %255 = vector.shape_cast %254 : vector<1x1x384xf32> to vector<1x384xf32>
    %256 = vector.broadcast %255 : vector<1x384xf32> to vector<16x384xf32>
    %257 = arith.addf %253, %256 : vector<16x384xf32>
    %258 = vector.extract_strided_slice %257 {offsets = [0, 0], sizes = [16, 128], strides = [1, 1]} : vector<16x384xf32> to vector<16x128xf32>
    %259 = vector.extract_strided_slice %257 {offsets = [0, 128], sizes = [16, 128], strides = [1, 1]} : vector<16x384xf32> to vector<16x128xf32>
    %260 = vector.extract_strided_slice %257 {offsets = [0, 256], sizes = [16, 128], strides = [1, 1]} : vector<16x384xf32> to vector<16x128xf32>
    %261 = vector.extract_strided_slice %258 {offsets = [0, 0], sizes = [16, 32], strides = [1, 1]} : vector<16x128xf32> to vector<16x32xf32>
    %262 = arith.truncf %261 : vector<16x32xf32> to vector<16x32xbf16>
    %263 = vector.extract_strided_slice %259 {offsets = [0, 0], sizes = [16, 32], strides = [1, 1]} : vector<16x128xf32> to vector<16x32xf32>
    %264 = arith.truncf %263 : vector<16x32xf32> to vector<16x32xbf16>
    %265 = vector.extract_strided_slice %260 {offsets = [0, 0], sizes = [16, 32], strides = [1, 1]} : vector<16x128xf32> to vector<16x32xf32>
    %266 = arith.truncf %265 : vector<16x32xf32> to vector<16x32xbf16>
    %cst_110 = arith.constant dense<0.000000e+00> : vector<16x16xf32>
    %267 = tpu.matmul %262, %264, %cst_110 {dimension_numbers = #tpu.dot_dimension_numbers<[1], [1], [0], [0], [0, 0, 1, 0], [], []>} : vector<16x32xbf16>, vector<16x32xbf16>, vector<16x16xf32> -> vector<16x16xf32>
    %cst_111 = arith.constant 0.176776692 : f32
    %268 = vector.broadcast %cst_111 : f32 to vector<16x16xf32>
    %269 = arith.mulf %267, %268 : vector<16x16xf32>
    %cst_112 = arith.constant dense<0xFF800000> : vector<16xf32>
    %270 = vector.multi_reduction <maximumf>, %269, %cst_112 [1] : vector<16x16xf32> to vector<16xf32>
    %271 = vector.shape_cast %270 : vector<16xf32> to vector<16x1xf32>
    %272 = vector.broadcast %271 : vector<16x1xf32> to vector<16x16xf32>
    %273 = arith.subf %269, %272 : vector<16x16xf32>
    %274 = math.exp %273 : vector<16x16xf32>
    %cst_113 = arith.constant dense<0.000000e+00> : vector<16xf32>
    %275 = vector.multi_reduction <add>, %274, %cst_113 [1] : vector<16x16xf32> to vector<16xf32>
    %276 = vector.shape_cast %275 : vector<16xf32> to vector<16x1xf32>
    %277 = tpu.reciprocal %276 {approx = true} : vector<16x1xf32> -> vector<16x1xf32>
    %278 = vector.broadcast %277 : vector<16x1xf32> to vector<16x16xf32>
    %279 = arith.mulf %274, %278 : vector<16x16xf32>
    %280 = arith.truncf %279 : vector<16x16xf32> to vector<16x16xbf16>
    %cst_114 = arith.constant dense<0.000000e+00> : vector<16x32xf32>
    %281 = tpu.matmul %280, %266, %cst_114 {dimension_numbers = #tpu.dot_dimension_numbers<[1], [0], [0], [1], [0, 0, 1, 1], [], []>} : vector<16x16xbf16>, vector<16x32xbf16>, vector<16x32xf32> -> vector<16x32xf32>
    %282 = vector.extract_strided_slice %258 {offsets = [0, 32], sizes = [16, 32], strides = [1, 1]} : vector<16x128xf32> to vector<16x32xf32>
    %283 = arith.truncf %282 : vector<16x32xf32> to vector<16x32xbf16>
    %284 = vector.extract_strided_slice %259 {offsets = [0, 32], sizes = [16, 32], strides = [1, 1]} : vector<16x128xf32> to vector<16x32xf32>
    %285 = arith.truncf %284 : vector<16x32xf32> to vector<16x32xbf16>
    %286 = vector.extract_strided_slice %260 {offsets = [0, 32], sizes = [16, 32], strides = [1, 1]} : vector<16x128xf32> to vector<16x32xf32>
    %287 = arith.truncf %286 : vector<16x32xf32> to vector<16x32xbf16>
    %cst_115 = arith.constant dense<0.000000e+00> : vector<16x16xf32>
    %288 = tpu.matmul %283, %285, %cst_115 {dimension_numbers = #tpu.dot_dimension_numbers<[1], [1], [0], [0], [0, 0, 1, 0], [], []>} : vector<16x32xbf16>, vector<16x32xbf16>, vector<16x16xf32> -> vector<16x16xf32>
    %cst_116 = arith.constant 0.176776692 : f32
    %289 = vector.broadcast %cst_116 : f32 to vector<16x16xf32>
    %290 = arith.mulf %288, %289 : vector<16x16xf32>
    %cst_117 = arith.constant dense<0xFF800000> : vector<16xf32>
    %291 = vector.multi_reduction <maximumf>, %290, %cst_117 [1] : vector<16x16xf32> to vector<16xf32>
    %292 = vector.shape_cast %291 : vector<16xf32> to vector<16x1xf32>
    %293 = vector.broadcast %292 : vector<16x1xf32> to vector<16x16xf32>
    %294 = arith.subf %290, %293 : vector<16x16xf32>
    %295 = math.exp %294 : vector<16x16xf32>
    %cst_118 = arith.constant dense<0.000000e+00> : vector<16xf32>
    %296 = vector.multi_reduction <add>, %295, %cst_118 [1] : vector<16x16xf32> to vector<16xf32>
    %297 = vector.shape_cast %296 : vector<16xf32> to vector<16x1xf32>
    %298 = tpu.reciprocal %297 {approx = true} : vector<16x1xf32> -> vector<16x1xf32>
    %299 = vector.broadcast %298 : vector<16x1xf32> to vector<16x16xf32>
    %300 = arith.mulf %295, %299 : vector<16x16xf32>
    %301 = arith.truncf %300 : vector<16x16xf32> to vector<16x16xbf16>
    %cst_119 = arith.constant dense<0.000000e+00> : vector<16x32xf32>
    %302 = tpu.matmul %301, %287, %cst_119 {dimension_numbers = #tpu.dot_dimension_numbers<[1], [0], [0], [1], [0, 0, 1, 1], [], []>} : vector<16x16xbf16>, vector<16x32xbf16>, vector<16x32xf32> -> vector<16x32xf32>
    %303 = vector.extract_strided_slice %258 {offsets = [0, 64], sizes = [16, 32], strides = [1, 1]} : vector<16x128xf32> to vector<16x32xf32>
    %304 = arith.truncf %303 : vector<16x32xf32> to vector<16x32xbf16>
    %305 = vector.extract_strided_slice %259 {offsets = [0, 64], sizes = [16, 32], strides = [1, 1]} : vector<16x128xf32> to vector<16x32xf32>
    %306 = arith.truncf %305 : vector<16x32xf32> to vector<16x32xbf16>
    %307 = vector.extract_strided_slice %260 {offsets = [0, 64], sizes = [16, 32], strides = [1, 1]} : vector<16x128xf32> to vector<16x32xf32>
    %308 = arith.truncf %307 : vector<16x32xf32> to vector<16x32xbf16>
    %cst_120 = arith.constant dense<0.000000e+00> : vector<16x16xf32>
    %309 = tpu.matmul %304, %306, %cst_120 {dimension_numbers = #tpu.dot_dimension_numbers<[1], [1], [0], [0], [0, 0, 1, 0], [], []>} : vector<16x32xbf16>, vector<16x32xbf16>, vector<16x16xf32> -> vector<16x16xf32>
    %cst_121 = arith.constant 0.176776692 : f32
    %310 = vector.broadcast %cst_121 : f32 to vector<16x16xf32>
    %311 = arith.mulf %309, %310 : vector<16x16xf32>
    %cst_122 = arith.constant dense<0xFF800000> : vector<16xf32>
    %312 = vector.multi_reduction <maximumf>, %311, %cst_122 [1] : vector<16x16xf32> to vector<16xf32>
    %313 = vector.shape_cast %312 : vector<16xf32> to vector<16x1xf32>
    %314 = vector.broadcast %313 : vector<16x1xf32> to vector<16x16xf32>
    %315 = arith.subf %311, %314 : vector<16x16xf32>
    %316 = math.exp %315 : vector<16x16xf32>
    %cst_123 = arith.constant dense<0.000000e+00> : vector<16xf32>
    %317 = vector.multi_reduction <add>, %316, %cst_123 [1] : vector<16x16xf32> to vector<16xf32>
    %318 = vector.shape_cast %317 : vector<16xf32> to vector<16x1xf32>
    %319 = tpu.reciprocal %318 {approx = true} : vector<16x1xf32> -> vector<16x1xf32>
    %320 = vector.broadcast %319 : vector<16x1xf32> to vector<16x16xf32>
    %321 = arith.mulf %316, %320 : vector<16x16xf32>
    %322 = arith.truncf %321 : vector<16x16xf32> to vector<16x16xbf16>
    %cst_124 = arith.constant dense<0.000000e+00> : vector<16x32xf32>
    %323 = tpu.matmul %322, %308, %cst_124 {dimension_numbers = #tpu.dot_dimension_numbers<[1], [0], [0], [1], [0, 0, 1, 1], [], []>} : vector<16x16xbf16>, vector<16x32xbf16>, vector<16x32xf32> -> vector<16x32xf32>
    %324 = vector.extract_strided_slice %258 {offsets = [0, 96], sizes = [16, 32], strides = [1, 1]} : vector<16x128xf32> to vector<16x32xf32>
    %325 = arith.truncf %324 : vector<16x32xf32> to vector<16x32xbf16>
    %326 = vector.extract_strided_slice %259 {offsets = [0, 96], sizes = [16, 32], strides = [1, 1]} : vector<16x128xf32> to vector<16x32xf32>
    %327 = arith.truncf %326 : vector<16x32xf32> to vector<16x32xbf16>
    %328 = vector.extract_strided_slice %260 {offsets = [0, 96], sizes = [16, 32], strides = [1, 1]} : vector<16x128xf32> to vector<16x32xf32>
    %329 = arith.truncf %328 : vector<16x32xf32> to vector<16x32xbf16>
    %cst_125 = arith.constant dense<0.000000e+00> : vector<16x16xf32>
    %330 = tpu.matmul %325, %327, %cst_125 {dimension_numbers = #tpu.dot_dimension_numbers<[1], [1], [0], [0], [0, 0, 1, 0], [], []>} : vector<16x32xbf16>, vector<16x32xbf16>, vector<16x16xf32> -> vector<16x16xf32>
    %cst_126 = arith.constant 0.176776692 : f32
    %331 = vector.broadcast %cst_126 : f32 to vector<16x16xf32>
    %332 = arith.mulf %330, %331 : vector<16x16xf32>
    %cst_127 = arith.constant dense<0xFF800000> : vector<16xf32>
    %333 = vector.multi_reduction <maximumf>, %332, %cst_127 [1] : vector<16x16xf32> to vector<16xf32>
    %334 = vector.shape_cast %333 : vector<16xf32> to vector<16x1xf32>
    %335 = vector.broadcast %334 : vector<16x1xf32> to vector<16x16xf32>
    %336 = arith.subf %332, %335 : vector<16x16xf32>
    %337 = math.exp %336 : vector<16x16xf32>
    %cst_128 = arith.constant dense<0.000000e+00> : vector<16xf32>
    %338 = vector.multi_reduction <add>, %337, %cst_128 [1] : vector<16x16xf32> to vector<16xf32>
    %339 = vector.shape_cast %338 : vector<16xf32> to vector<16x1xf32>
    %340 = tpu.reciprocal %339 {approx = true} : vector<16x1xf32> -> vector<16x1xf32>
    %341 = vector.broadcast %340 : vector<16x1xf32> to vector<16x16xf32>
    %342 = arith.mulf %337, %341 : vector<16x16xf32>
    %343 = arith.truncf %342 : vector<16x16xf32> to vector<16x16xbf16>
    %cst_129 = arith.constant dense<0.000000e+00> : vector<16x32xf32>
    %344 = tpu.matmul %343, %329, %cst_129 {dimension_numbers = #tpu.dot_dimension_numbers<[1], [0], [0], [1], [0, 0, 1, 1], [], []>} : vector<16x16xbf16>, vector<16x32xbf16>, vector<16x32xf32> -> vector<16x32xf32>
    %345 = tpu.concatenate %281, %302, %323, %344 in 1 : vector<16x32xf32>, vector<16x32xf32>, vector<16x32xf32>, vector<16x32xf32> -> vector<16x128xf32>
    %c1_130 = arith.constant 1 : index
    %c0_131 = arith.constant 0 : index
    %c0_132 = arith.constant 0 : index
    %346 = vector.load %arg10[%c1_130, %c0_131, %c0_132] : memref<2x128x128xbf16, #tpu.memory_space<vmem>>, vector<1x128x128xbf16>
    %347 = vector.shape_cast %346 : vector<1x128x128xbf16> to vector<128x128xbf16>
    %348 = arith.truncf %345 : vector<16x128xf32> to vector<16x128xbf16>
    %cst_133 = arith.constant dense<0.000000e+00> : vector<16x128xf32>
    %349 = tpu.matmul %348, %347, %cst_133 {dimension_numbers = #tpu.dot_dimension_numbers<[1], [0], [0], [1], [0, 0, 1, 1], [], []>} : vector<16x128xbf16>, vector<128x128xbf16>, vector<16x128xf32> -> vector<16x128xf32>
    %350 = arith.addf %223, %349 : vector<16x128xf32>
    %c1_134 = arith.constant 1 : index
    %c0_135 = arith.constant 0 : index
    %c0_136 = arith.constant 0 : index
    %351 = vector.load %arg11[%c1_134, %c0_135, %c0_136] : memref<2x1x128xf32, #tpu.memory_space<vmem>>, vector<1x1x128xf32>
    %352 = vector.shape_cast %351 : vector<1x1x128xf32> to vector<1x128xf32>
    %353 = vector.broadcast %352 : vector<1x128xf32> to vector<16x128xf32>
    %354 = arith.addf %350, %353 : vector<16x128xf32>
    %c1_137 = arith.constant 1 : index
    %c0_138 = arith.constant 0 : index
    %c0_139 = arith.constant 0 : index
    %355 = vector.load %arg12[%c1_137, %c0_138, %c0_139] : memref<2x1x128xf32, #tpu.memory_space<vmem>>, vector<1x1x128xf32>
    %356 = vector.shape_cast %355 : vector<1x1x128xf32> to vector<1x128xf32>
    %c1_140 = arith.constant 1 : index
    %c0_141 = arith.constant 0 : index
    %c0_142 = arith.constant 0 : index
    %357 = vector.load %arg13[%c1_140, %c0_141, %c0_142] : memref<2x1x128xf32, #tpu.memory_space<vmem>>, vector<1x1x128xf32>
    %358 = vector.shape_cast %357 : vector<1x1x128xf32> to vector<1x128xf32>
    %cst_143 = arith.constant dense<0.000000e+00> : vector<16xf32>
    %359 = vector.multi_reduction <add>, %354, %cst_143 [1] : vector<16x128xf32> to vector<16xf32>
    %360 = vector.shape_cast %359 : vector<16xf32> to vector<16x1xf32>
    %cst_144 = arith.constant 1.280000e+02 : f32
    %361 = vector.broadcast %cst_144 : f32 to vector<16x1xf32>
    %362 = arith.divf %360, %361 : vector<16x1xf32>
    %363 = vector.broadcast %362 : vector<16x1xf32> to vector<16x128xf32>
    %364 = arith.subf %354, %363 : vector<16x128xf32>
    %365 = arith.mulf %364, %364 : vector<16x128xf32>
    %cst_145 = arith.constant dense<0.000000e+00> : vector<16xf32>
    %366 = vector.multi_reduction <add>, %365, %cst_145 [1] : vector<16x128xf32> to vector<16xf32>
    %367 = vector.shape_cast %366 : vector<16xf32> to vector<16x1xf32>
    %cst_146 = arith.constant 1.280000e+02 : f32
    %368 = vector.broadcast %cst_146 : f32 to vector<16x1xf32>
    %369 = arith.divf %367, %368 : vector<16x1xf32>
    %370 = vector.broadcast %362 : vector<16x1xf32> to vector<16x128xf32>
    %371 = arith.subf %354, %370 : vector<16x128xf32>
    %cst_147 = arith.constant 9.99999974E-6 : f32
    %372 = vector.broadcast %cst_147 : f32 to vector<16x1xf32>
    %373 = arith.addf %369, %372 : vector<16x1xf32>
    %374 = math.rsqrt %373 : vector<16x1xf32>
    %375 = vector.broadcast %374 : vector<16x1xf32> to vector<16x128xf32>
    %376 = arith.mulf %371, %375 : vector<16x128xf32>
    %377 = vector.broadcast %356 : vector<1x128xf32> to vector<16x128xf32>
    %378 = arith.mulf %376, %377 : vector<16x128xf32>
    %379 = vector.broadcast %358 : vector<1x128xf32> to vector<16x128xf32>
    %380 = arith.addf %378, %379 : vector<16x128xf32>
    %c1_148 = arith.constant 1 : index
    %c0_149 = arith.constant 0 : index
    %c0_150 = arith.constant 0 : index
    %381 = vector.load %arg14[%c1_148, %c0_149, %c0_150] : memref<2x128x512xbf16, #tpu.memory_space<vmem>>, vector<1x128x512xbf16>
    %382 = vector.shape_cast %381 : vector<1x128x512xbf16> to vector<128x512xbf16>
    %383 = arith.truncf %380 : vector<16x128xf32> to vector<16x128xbf16>
    %cst_151 = arith.constant dense<0.000000e+00> : vector<16x512xf32>
    %384 = tpu.matmul %383, %382, %cst_151 {dimension_numbers = #tpu.dot_dimension_numbers<[1], [0], [0], [1], [0, 0, 1, 1], [], []>} : vector<16x128xbf16>, vector<128x512xbf16>, vector<16x512xf32> -> vector<16x512xf32>
    %c1_152 = arith.constant 1 : index
    %c0_153 = arith.constant 0 : index
    %c0_154 = arith.constant 0 : index
    %385 = vector.load %arg15[%c1_152, %c0_153, %c0_154] : memref<2x1x512xf32, #tpu.memory_space<vmem>>, vector<1x1x512xf32>
    %386 = vector.shape_cast %385 : vector<1x1x512xf32> to vector<1x512xf32>
    %387 = vector.broadcast %386 : vector<1x512xf32> to vector<16x512xf32>
    %388 = arith.addf %384, %387 : vector<16x512xf32>
    %cst_155 = arith.constant 5.000000e-01 : f32
    %389 = vector.broadcast %cst_155 : f32 to vector<16x512xf32>
    %390 = arith.mulf %389, %388 : vector<16x512xf32>
    %cst_156 = arith.constant 0.707106769 : f32
    %391 = vector.broadcast %cst_156 : f32 to vector<16x512xf32>
    %392 = arith.mulf %388, %391 : vector<16x512xf32>
    %393 = math.absf %392 : vector<16x512xf32>
    %cst_157 = arith.constant 0.327591091 : f32
    %394 = vector.broadcast %cst_157 : f32 to vector<16x512xf32>
    %395 = arith.mulf %394, %393 : vector<16x512xf32>
    %cst_158 = arith.constant 1.000000e+00 : f32
    %396 = vector.broadcast %cst_158 : f32 to vector<16x512xf32>
    %397 = arith.addf %396, %395 : vector<16x512xf32>
    %cst_159 = arith.constant 1.000000e+00 : f32
    %398 = vector.broadcast %cst_159 : f32 to vector<16x512xf32>
    %399 = arith.divf %398, %397 : vector<16x512xf32>
    %cst_160 = arith.constant 1.06140542 : f32
    %400 = vector.broadcast %cst_160 : f32 to vector<16x512xf32>
    %401 = arith.mulf %400, %399 : vector<16x512xf32>
    %cst_161 = arith.constant 1.45315206 : f32
    %402 = vector.broadcast %cst_161 : f32 to vector<16x512xf32>
    %403 = arith.subf %401, %402 : vector<16x512xf32>
    %404 = arith.mulf %403, %399 : vector<16x512xf32>
    %cst_162 = arith.constant 1.42141378 : f32
    %405 = vector.broadcast %cst_162 : f32 to vector<16x512xf32>
    %406 = arith.addf %404, %405 : vector<16x512xf32>
    %407 = arith.mulf %406, %399 : vector<16x512xf32>
    %cst_163 = arith.constant 0.284496725 : f32
    %408 = vector.broadcast %cst_163 : f32 to vector<16x512xf32>
    %409 = arith.subf %407, %408 : vector<16x512xf32>
    %410 = arith.mulf %409, %399 : vector<16x512xf32>
    %cst_164 = arith.constant 0.254829586 : f32
    %411 = vector.broadcast %cst_164 : f32 to vector<16x512xf32>
    %412 = arith.addf %410, %411 : vector<16x512xf32>
    %413 = arith.mulf %412, %399 : vector<16x512xf32>
    %cst_165 = arith.constant 0.000000e+00 : f32
    %414 = vector.broadcast %cst_165 : f32 to vector<16x512xf32>
    %415 = arith.subf %414, %393 : vector<16x512xf32>
    %416 = arith.mulf %415, %393 : vector<16x512xf32>
    %417 = math.exp %416 : vector<16x512xf32>
    %418 = arith.mulf %413, %417 : vector<16x512xf32>
    %cst_166 = arith.constant 1.000000e+00 : f32
    %419 = vector.broadcast %cst_166 : f32 to vector<16x512xf32>
    %420 = arith.subf %419, %418 : vector<16x512xf32>
    %cst_167 = arith.constant 0.000000e+00 : f32
    %421 = vector.broadcast %cst_167 : f32 to vector<16x512xf32>
    %422 = arith.cmpf oge, %392, %421 : vector<16x512xf32>
    %cst_168 = arith.constant 0.000000e+00 : f32
    %423 = vector.broadcast %cst_168 : f32 to vector<16x512xf32>
    %424 = arith.subf %423, %420 : vector<16x512xf32>
    %425 = arith.select %422, %420, %424 : vector<16x512xi1>, vector<16x512xf32>
    %cst_169 = arith.constant 1.000000e+00 : f32
    %426 = vector.broadcast %cst_169 : f32 to vector<16x512xf32>
    %427 = arith.addf %426, %425 : vector<16x512xf32>
    %428 = arith.mulf %390, %427 : vector<16x512xf32>
    %c1_170 = arith.constant 1 : index
    %c0_171 = arith.constant 0 : index
    %c0_172 = arith.constant 0 : index
    %429 = vector.load %arg16[%c1_170, %c0_171, %c0_172] : memref<2x512x128xbf16, #tpu.memory_space<vmem>>, vector<1x512x128xbf16>
    %430 = vector.shape_cast %429 : vector<1x512x128xbf16> to vector<512x128xbf16>
    %431 = arith.truncf %428 : vector<16x512xf32> to vector<16x512xbf16>
    %cst_173 = arith.constant dense<0.000000e+00> : vector<16x128xf32>
    %432 = tpu.matmul %431, %430, %cst_173 {dimension_numbers = #tpu.dot_dimension_numbers<[1], [0], [0], [1], [0, 0, 1, 1], [], []>} : vector<16x512xbf16>, vector<512x128xbf16>, vector<16x128xf32> -> vector<16x128xf32>
    %433 = arith.addf %354, %432 : vector<16x128xf32>
    %c1_174 = arith.constant 1 : index
    %c0_175 = arith.constant 0 : index
    %c0_176 = arith.constant 0 : index
    %434 = vector.load %arg17[%c1_174, %c0_175, %c0_176] : memref<2x1x128xf32, #tpu.memory_space<vmem>>, vector<1x1x128xf32>
    %435 = vector.shape_cast %434 : vector<1x1x128xf32> to vector<1x128xf32>
    %436 = vector.broadcast %435 : vector<1x128xf32> to vector<16x128xf32>
    %437 = arith.addf %433, %436 : vector<16x128xf32>
    %c0_177 = arith.constant 0 : index
    %c0_178 = arith.constant 0 : index
    %438 = vector.load %arg18[%c0_177, %c0_178] : memref<1x128xf32, #tpu.memory_space<vmem>>, vector<1x128xf32>
    %c0_179 = arith.constant 0 : index
    %c0_180 = arith.constant 0 : index
    %439 = vector.load %arg19[%c0_179, %c0_180] : memref<1x128xf32, #tpu.memory_space<vmem>>, vector<1x128xf32>
    %cst_181 = arith.constant dense<0.000000e+00> : vector<16xf32>
    %440 = vector.multi_reduction <add>, %437, %cst_181 [1] : vector<16x128xf32> to vector<16xf32>
    %441 = vector.shape_cast %440 : vector<16xf32> to vector<16x1xf32>
    %cst_182 = arith.constant 1.280000e+02 : f32
    %442 = vector.broadcast %cst_182 : f32 to vector<16x1xf32>
    %443 = arith.divf %441, %442 : vector<16x1xf32>
    %444 = vector.broadcast %443 : vector<16x1xf32> to vector<16x128xf32>
    %445 = arith.subf %437, %444 : vector<16x128xf32>
    %446 = arith.mulf %445, %445 : vector<16x128xf32>
    %cst_183 = arith.constant dense<0.000000e+00> : vector<16xf32>
    %447 = vector.multi_reduction <add>, %446, %cst_183 [1] : vector<16x128xf32> to vector<16xf32>
    %448 = vector.shape_cast %447 : vector<16xf32> to vector<16x1xf32>
    %cst_184 = arith.constant 1.280000e+02 : f32
    %449 = vector.broadcast %cst_184 : f32 to vector<16x1xf32>
    %450 = arith.divf %448, %449 : vector<16x1xf32>
    %451 = vector.broadcast %443 : vector<16x1xf32> to vector<16x128xf32>
    %452 = arith.subf %437, %451 : vector<16x128xf32>
    %cst_185 = arith.constant 9.99999974E-6 : f32
    %453 = vector.broadcast %cst_185 : f32 to vector<16x1xf32>
    %454 = arith.addf %450, %453 : vector<16x1xf32>
    %455 = math.rsqrt %454 : vector<16x1xf32>
    %456 = vector.broadcast %455 : vector<16x1xf32> to vector<16x128xf32>
    %457 = arith.mulf %452, %456 : vector<16x128xf32>
    %458 = vector.broadcast %438 : vector<1x128xf32> to vector<16x128xf32>
    %459 = arith.mulf %457, %458 : vector<16x128xf32>
    %460 = vector.broadcast %439 : vector<1x128xf32> to vector<16x128xf32>
    %461 = arith.addf %459, %460 : vector<16x128xf32>
    %c0_186 = arith.constant 0 : index
    %c0_187 = arith.constant 0 : index
    %c0_188 = arith.constant 0 : index
    %462 = vector.load %arg2[%c0_186, %c0_187, %c0_188] : memref<1x1x128xf32, #tpu.memory_space<vmem>>, vector<1x1x128xf32>
    %463 = vector.shape_cast %462 : vector<1x1x128xf32> to vector<1x128xf32>
    %c0_189 = arith.constant 0 : index
    %c0_190 = arith.constant 0 : index
    %464 = vector.load %arg20[%c0_189, %c0_190] : memref<128x128xbf16, #tpu.memory_space<vmem>>, vector<128x128xbf16>
    %465 = arith.truncf %463 : vector<1x128xf32> to vector<1x128xbf16>
    %cst_191 = arith.constant dense<0.000000e+00> : vector<1x128xf32>
    %466 = tpu.matmul %465, %464, %cst_191 {dimension_numbers = #tpu.dot_dimension_numbers<[1], [0], [0], [1], [0, 0, 1, 1], [], []>} : vector<1x128xbf16>, vector<128x128xbf16>, vector<1x128xf32> -> vector<1x128xf32>
    %c0_192 = arith.constant 0 : index
    %c0_193 = arith.constant 0 : index
    %467 = vector.load %arg21[%c0_192, %c0_193] : memref<1x128xf32, #tpu.memory_space<vmem>>, vector<1x128xf32>
    %468 = arith.addf %466, %467 : vector<1x128xf32>
    %469 = arith.negf %468 : vector<1x128xf32>
    %470 = math.exp %469 : vector<1x128xf32>
    %cst_194 = arith.constant 1.000000e+00 : f32
    %471 = vector.broadcast %cst_194 : f32 to vector<1x128xf32>
    %472 = arith.addf %471, %470 : vector<1x128xf32>
    %473 = arith.divf %471, %472 : vector<1x128xf32>
    %474 = arith.mulf %468, %473 : vector<1x128xf32>
    %c0_195 = arith.constant 0 : index
    %c0_196 = arith.constant 0 : index
    %475 = vector.load %arg22[%c0_195, %c0_196] : memref<128x128xbf16, #tpu.memory_space<vmem>>, vector<128x128xbf16>
    %476 = arith.truncf %474 : vector<1x128xf32> to vector<1x128xbf16>
    %cst_197 = arith.constant dense<0.000000e+00> : vector<1x128xf32>
    %477 = tpu.matmul %476, %475, %cst_197 {dimension_numbers = #tpu.dot_dimension_numbers<[1], [0], [0], [1], [0, 0, 1, 1], [], []>} : vector<1x128xbf16>, vector<128x128xbf16>, vector<1x128xf32> -> vector<1x128xf32>
    %c0_198 = arith.constant 0 : index
    %c0_199 = arith.constant 0 : index
    %478 = vector.load %arg23[%c0_198, %c0_199] : memref<1x128xf32, #tpu.memory_space<vmem>>, vector<1x128xf32>
    %479 = arith.addf %477, %478 : vector<1x128xf32>
    %480 = vector.broadcast %479 : vector<1x128xf32> to vector<16x128xf32>
    %481 = arith.addf %461, %480 : vector<16x128xf32>
    %c0_200 = arith.constant 0 : index
    %c0_201 = arith.constant 0 : index
    %482 = vector.load %arg24[%c0_200, %c0_201] : memref<128x512xbf16, #tpu.memory_space<vmem>>, vector<128x512xbf16>
    %483 = arith.truncf %481 : vector<16x128xf32> to vector<16x128xbf16>
    %cst_202 = arith.constant dense<0.000000e+00> : vector<16x512xf32>
    %484 = tpu.matmul %483, %482, %cst_202 {dimension_numbers = #tpu.dot_dimension_numbers<[1], [0], [0], [1], [0, 0, 1, 1], [], []>} : vector<16x128xbf16>, vector<128x512xbf16>, vector<16x512xf32> -> vector<16x512xf32>
    %c0_203 = arith.constant 0 : index
    %c0_204 = arith.constant 0 : index
    %485 = vector.load %arg25[%c0_203, %c0_204] : memref<1x512xf32, #tpu.memory_space<vmem>>, vector<1x512xf32>
    %486 = vector.broadcast %485 : vector<1x512xf32> to vector<16x512xf32>
    %487 = arith.addf %484, %486 : vector<16x512xf32>
    %cst_205 = arith.constant 5.000000e-01 : f32
    %488 = vector.broadcast %cst_205 : f32 to vector<16x512xf32>
    %489 = arith.mulf %488, %487 : vector<16x512xf32>
    %cst_206 = arith.constant 0.707106769 : f32
    %490 = vector.broadcast %cst_206 : f32 to vector<16x512xf32>
    %491 = arith.mulf %487, %490 : vector<16x512xf32>
    %492 = math.absf %491 : vector<16x512xf32>
    %cst_207 = arith.constant 0.327591091 : f32
    %493 = vector.broadcast %cst_207 : f32 to vector<16x512xf32>
    %494 = arith.mulf %493, %492 : vector<16x512xf32>
    %cst_208 = arith.constant 1.000000e+00 : f32
    %495 = vector.broadcast %cst_208 : f32 to vector<16x512xf32>
    %496 = arith.addf %495, %494 : vector<16x512xf32>
    %cst_209 = arith.constant 1.000000e+00 : f32
    %497 = vector.broadcast %cst_209 : f32 to vector<16x512xf32>
    %498 = arith.divf %497, %496 : vector<16x512xf32>
    %cst_210 = arith.constant 1.06140542 : f32
    %499 = vector.broadcast %cst_210 : f32 to vector<16x512xf32>
    %500 = arith.mulf %499, %498 : vector<16x512xf32>
    %cst_211 = arith.constant 1.45315206 : f32
    %501 = vector.broadcast %cst_211 : f32 to vector<16x512xf32>
    %502 = arith.subf %500, %501 : vector<16x512xf32>
    %503 = arith.mulf %502, %498 : vector<16x512xf32>
    %cst_212 = arith.constant 1.42141378 : f32
    %504 = vector.broadcast %cst_212 : f32 to vector<16x512xf32>
    %505 = arith.addf %503, %504 : vector<16x512xf32>
    %506 = arith.mulf %505, %498 : vector<16x512xf32>
    %cst_213 = arith.constant 0.284496725 : f32
    %507 = vector.broadcast %cst_213 : f32 to vector<16x512xf32>
    %508 = arith.subf %506, %507 : vector<16x512xf32>
    %509 = arith.mulf %508, %498 : vector<16x512xf32>
    %cst_214 = arith.constant 0.254829586 : f32
    %510 = vector.broadcast %cst_214 : f32 to vector<16x512xf32>
    %511 = arith.addf %509, %510 : vector<16x512xf32>
    %512 = arith.mulf %511, %498 : vector<16x512xf32>
    %cst_215 = arith.constant 0.000000e+00 : f32
    %513 = vector.broadcast %cst_215 : f32 to vector<16x512xf32>
    %514 = arith.subf %513, %492 : vector<16x512xf32>
    %515 = arith.mulf %514, %492 : vector<16x512xf32>
    %516 = math.exp %515 : vector<16x512xf32>
    %517 = arith.mulf %512, %516 : vector<16x512xf32>
    %cst_216 = arith.constant 1.000000e+00 : f32
    %518 = vector.broadcast %cst_216 : f32 to vector<16x512xf32>
    %519 = arith.subf %518, %517 : vector<16x512xf32>
    %cst_217 = arith.constant 0.000000e+00 : f32
    %520 = vector.broadcast %cst_217 : f32 to vector<16x512xf32>
    %521 = arith.cmpf oge, %491, %520 : vector<16x512xf32>
    %cst_218 = arith.constant 0.000000e+00 : f32
    %522 = vector.broadcast %cst_218 : f32 to vector<16x512xf32>
    %523 = arith.subf %522, %519 : vector<16x512xf32>
    %524 = arith.select %521, %519, %523 : vector<16x512xi1>, vector<16x512xf32>
    %cst_219 = arith.constant 1.000000e+00 : f32
    %525 = vector.broadcast %cst_219 : f32 to vector<16x512xf32>
    %526 = arith.addf %525, %524 : vector<16x512xf32>
    %527 = arith.mulf %489, %526 : vector<16x512xf32>
    %c0_220 = arith.constant 0 : index
    %c0_221 = arith.constant 0 : index
    %528 = vector.load %arg26[%c0_220, %c0_221] : memref<512x128xbf16, #tpu.memory_space<vmem>>, vector<512x128xbf16>
    %529 = arith.truncf %527 : vector<16x512xf32> to vector<16x512xbf16>
    %cst_222 = arith.constant dense<0.000000e+00> : vector<16x128xf32>
    %530 = tpu.matmul %529, %528, %cst_222 {dimension_numbers = #tpu.dot_dimension_numbers<[1], [0], [0], [1], [0, 0, 1, 1], [], []>} : vector<16x512xbf16>, vector<512x128xbf16>, vector<16x128xf32> -> vector<16x128xf32>
    %c0_223 = arith.constant 0 : index
    %c0_224 = arith.constant 0 : index
    %531 = vector.load %arg27[%c0_223, %c0_224] : memref<1x128xf32, #tpu.memory_space<vmem>>, vector<1x128xf32>
    %532 = vector.broadcast %531 : vector<1x128xf32> to vector<16x128xf32>
    %533 = arith.addf %530, %532 : vector<16x128xf32>
    %c0_225 = arith.constant 0 : index
    %c0_226 = arith.constant 0 : index
    %c0_227 = arith.constant 0 : index
    %534 = vector.load %arg28[%c0_225, %c0_226, %c0_227] : memref<1x16x128xf32, #tpu.memory_space<vmem>>, vector<1x16x128xf32>
    %535 = vector.shape_cast %534 : vector<1x16x128xf32> to vector<16x128xf32>
    %536 = vector.shape_cast %533 : vector<16x128xf32> to vector<1x16x128xf32>
    tpu.vector_store %arg28[%c0_225, %c0_226, %c0_227], %536 {strides = array<i32>} : memref<1x16x128xf32, #tpu.memory_space<vmem>>, vector<1x16x128xf32>,
    return
  }
  func.func @transform_0(%arg0: i32) -> (i32, i32, i32) {
    %c0_i32 = arith.constant 0 : i32
    %c0_i32_0 = arith.constant 0 : i32
    %c0_i32_1 = arith.constant 0 : i32
    return %arg0, %c0_i32, %c0_i32_0 : i32, i32, i32
  }
  func.func @transform_1(%arg0: i32) -> (i32, i32, i32) {
    %c0_i32 = arith.constant 0 : i32
    %c0_i32_0 = arith.constant 0 : i32
    %c0_i32_1 = arith.constant 0 : i32
    return %arg0, %c0_i32, %c0_i32_0 : i32, i32, i32
  }
  func.func @transform_2(%arg0: i32) -> (i32, i32) {
    %c0_i32 = arith.constant 0 : i32
    %c0_i32_0 = arith.constant 0 : i32
    %c0_i32_1 = arith.constant 0 : i32
    return %c0_i32, %c0_i32_0 : i32, i32
  }
  func.func @transform_3(%arg0: i32) -> (i32, i32) {
    %c0_i32 = arith.constant 0 : i32
    %c0_i32_0 = arith.constant 0 : i32
    %c0_i32_1 = arith.constant 0 : i32
    return %c0_i32, %c0_i32_0 : i32, i32
  }
  func.func @transform_4(%arg0: i32) -> (i32, i32) {
    %c0_i32 = arith.constant 0 : i32
    %c0_i32_0 = arith.constant 0 : i32
    %c0_i32_1 = arith.constant 0 : i32
    return %c0_i32, %c0_i32_0 : i32, i32
  }
  func.func @transform_5(%arg0: i32) -> (i32, i32, i32) {
    %c0_i32 = arith.constant 0 : i32
    %c0_i32_0 = arith.constant 0 : i32
    %c0_i32_1 = arith.constant 0 : i32
    %c0_i32_2 = arith.constant 0 : i32
    return %c0_i32, %c0_i32_0, %c0_i32_1 : i32, i32, i32
  }
  func.func @transform_6(%arg0: i32) -> (i32, i32, i32) {
    %c0_i32 = arith.constant 0 : i32
    %c0_i32_0 = arith.constant 0 : i32
    %c0_i32_1 = arith.constant 0 : i32
    %c0_i32_2 = arith.constant 0 : i32
    return %c0_i32, %c0_i32_0, %c0_i32_1 : i32, i32, i32
  }
  func.func @transform_7(%arg0: i32) -> (i32, i32, i32) {
    %c0_i32 = arith.constant 0 : i32
    %c0_i32_0 = arith.constant 0 : i32
    %c0_i32_1 = arith.constant 0 : i32
    %c0_i32_2 = arith.constant 0 : i32
    return %c0_i32, %c0_i32_0, %c0_i32_1 : i32, i32, i32
  }
  func.func @transform_8(%arg0: i32) -> (i32, i32, i32) {
    %c0_i32 = arith.constant 0 : i32
    %c0_i32_0 = arith.constant 0 : i32
    %c0_i32_1 = arith.constant 0 : i32
    %c0_i32_2 = arith.constant 0 : i32
    return %c0_i32, %c0_i32_0, %c0_i32_1 : i32, i32, i32
  }
  func.func @transform_9(%arg0: i32) -> (i32, i32, i32) {
    %c0_i32 = arith.constant 0 : i32
    %c0_i32_0 = arith.constant 0 : i32
    %c0_i32_1 = arith.constant 0 : i32
    %c0_i32_2 = arith.constant 0 : i32
    return %c0_i32, %c0_i32_0, %c0_i32_1 : i32, i32, i32
  }
  func.func @transform_10(%arg0: i32) -> (i32, i32, i32) {
    %c0_i32 = arith.constant 0 : i32
    %c0_i32_0 = arith.constant 0 : i32
    %c0_i32_1 = arith.constant 0 : i32
    %c0_i32_2 = arith.constant 0 : i32
    return %c0_i32, %c0_i32_0, %c0_i32_1 : i32, i32, i32
  }
  func.func @transform_11(%arg0: i32) -> (i32, i32, i32) {
    %c0_i32 = arith.constant 0 : i32
    %c0_i32_0 = arith.constant 0 : i32
    %c0_i32_1 = arith.constant 0 : i32
    %c0_i32_2 = arith.constant 0 : i32
    return %c0_i32, %c0_i32_0, %c0_i32_1 : i32, i32, i32
  }
  func.func @transform_12(%arg0: i32) -> (i32, i32, i32) {
    %c0_i32 = arith.constant 0 : i32
    %c0_i32_0 = arith.constant 0 : i32
    %c0_i32_1 = arith.constant 0 : i32
    %c0_i32_2 = arith.constant 0 : i32
    return %c0_i32, %c0_i32_0, %c0_i32_1 : i32, i32, i32
  }
  func.func @transform_13(%arg0: i32) -> (i32, i32, i32) {
    %c0_i32 = arith.constant 0 : i32
    %c0_i32_0 = arith.constant 0 : i32
    %c0_i32_1 = arith.constant 0 : i32
    %c0_i32_2 = arith.constant 0 : i32
    return %c0_i32, %c0_i32_0, %c0_i32_1 : i32, i32, i32
  }
  func.func @transform_14(%arg0: i32) -> (i32, i32, i32) {
    %c0_i32 = arith.constant 0 : i32
    %c0_i32_0 = arith.constant 0 : i32
    %c0_i32_1 = arith.constant 0 : i32
    %c0_i32_2 = arith.constant 0 : i32
    return %c0_i32, %c0_i32_0, %c0_i32_1 : i32, i32, i32
  }
  func.func @transform_15(%arg0: i32) -> (i32, i32, i32) {
    %c0_i32 = arith.constant 0 : i32
    %c0_i32_0 = arith.constant 0 : i32
    %c0_i32_1 = arith.constant 0 : i32
    %c0_i32_2 = arith.constant 0 : i32
    return %c0_i32, %c0_i32_0, %c0_i32_1 : i32, i32, i32
  }
  func.func @transform_16(%arg0: i32) -> (i32, i32, i32) {
    %c0_i32 = arith.constant 0 : i32
    %c0_i32_0 = arith.constant 0 : i32
    %c0_i32_1 = arith.constant 0 : i32
    %c0_i32_2 = arith.constant 0 : i32
    return %c0_i32, %c0_i32_0, %c0_i32_1 : i32, i32, i32
  }
  func.func @transform_17(%arg0: i32) -> (i32, i32) {
    %c0_i32 = arith.constant 0 : i32
    %c0_i32_0 = arith.constant 0 : i32
    %c0_i32_1 = arith.constant 0 : i32
    return %c0_i32, %c0_i32_0 : i32, i32
  }
  func.func @transform_18(%arg0: i32) -> (i32, i32) {
    %c0_i32 = arith.constant 0 : i32
    %c0_i32_0 = arith.constant 0 : i32
    %c0_i32_1 = arith.constant 0 : i32
    return %c0_i32, %c0_i32_0 : i32, i32
  }
  func.func @transform_19(%arg0: i32) -> (i32, i32) {
    %c0_i32 = arith.constant 0 : i32
    %c0_i32_0 = arith.constant 0 : i32
    %c0_i32_1 = arith.constant 0 : i32
    return %c0_i32, %c0_i32_0 : i32, i32
  }
  func.func @transform_20(%arg0: i32) -> (i32, i32) {
    %c0_i32 = arith.constant 0 : i32
    %c0_i32_0 = arith.constant 0 : i32
    %c0_i32_1 = arith.constant 0 : i32
    return %c0_i32, %c0_i32_0 : i32, i32
  }
  func.func @transform_21(%arg0: i32) -> (i32, i32) {
    %c0_i32 = arith.constant 0 : i32
    %c0_i32_0 = arith.constant 0 : i32
    %c0_i32_1 = arith.constant 0 : i32
    return %c0_i32, %c0_i32_0 : i32, i32
  }
  func.func @transform_22(%arg0: i32) -> (i32, i32) {
    %c0_i32 = arith.constant 0 : i32
    %c0_i32_0 = arith.constant 0 : i32
    %c0_i32_1 = arith.constant 0 : i32
    return %c0_i32, %c0_i32_0 : i32, i32
  }
  func.func @transform_23(%arg0: i32) -> (i32, i32) {
    %c0_i32 = arith.constant 0 : i32
    %c0_i32_0 = arith.constant 0 : i32
    %c0_i32_1 = arith.constant 0 : i32
    return %c0_i32, %c0_i32_0 : i32, i32
  }
  func.func @transform_24(%arg0: i32) -> (i32, i32) {
    %c0_i32 = arith.constant 0 : i32
    %c0_i32_0 = arith.constant 0 : i32
    %c0_i32_1 = arith.constant 0 : i32
    return %c0_i32, %c0_i32_0 : i32, i32
  }
  func.func @transform_25(%arg0: i32) -> (i32, i32) {
    %c0_i32 = arith.constant 0 : i32
    %c0_i32_0 = arith.constant 0 : i32
    %c0_i32_1 = arith.constant 0 : i32
    return %c0_i32, %c0_i32_0 : i32, i32
  }
  func.func @transform_26(%arg0: i32) -> (i32, i32) {
    %c0_i32 = arith.constant 0 : i32
    %c0_i32_0 = arith.constant 0 : i32
    %c0_i32_1 = arith.constant 0 : i32
    return %c0_i32, %c0_i32_0 : i32, i32
  }
  func.func @transform_27(%arg0: i32) -> (i32, i32, i32) {
    %c0_i32 = arith.constant 0 : i32
    %c0_i32_0 = arith.constant 0 : i32
    %c0_i32_1 = arith.constant 0 : i32
    return %arg0, %c0_i32, %c0_i32_0 : i32, i32, i32
  }
}

</mosaic_0001>

<bundles_post_ra>
// kernel: new_model_forward.1
= control target key start
LH: loop header
LB: loop body
LE: loop exit
PB: predicated region body
PF: predicated region fallthrough
CT: control target
= control target key end

     0   :  { %s9934_s0 = inlined_call_operand.vmem [shape: f32[2,16,128], index: 0, kind: input, shape index: {}]   ;;  %s9935_s1 = inlined_call_operand.vmem [shape: f32[2,1,128], index: 1, kind: input, shape index: {}]   ;;  %s9936_s2 = inlined_call_operand.vmem [shape: bf16[128,128], index: 2, kind: input, shape index: {}]   ;;  %s9937_s3 = inlined_call_operand.vmem [shape: f32[1,128], index: 3, kind: input, shape index: {}]   ;;  %s9938_s4 = inlined_call_operand.vmem [shape: f32[16,128], index: 4, kind: input, shape index: {}]   ;;  %s9939_s5 = inlined_call_operand.vmem [shape: f32[2,1,128], index: 5, kind: input, shape index: {}]   ;;  %s9940_s6 = inlined_call_operand.vmem [shape: f32[2,1,128], index: 6, kind: input, shape index: {}]   ;;  %s9941_s7 = inlined_call_operand.vmem [shape: bf16[2,128,384], index: 7, kind: input, shape index: {}]   ;;  %s9942_s8 = inlined_call_operand.vmem [shape: f32[2,1,384], index: 8, kind: input, shape index: {}]   ;;  %s9943_s9 = inlined_call_operand.hbm [shape: bf16[2,128,128], index: 9, kind: input, shape index: {}]   ;;  %s9944_s10 = inlined_call_operand.vmem [shape: f32[2,1,128], index: 10, kind: input, shape index: {}]   ;;  %s9945_s11 = inlined_call_operand.vmem [shape: f32[2,1,128], index: 11, kind: input, shape index: {}]   ;;  %s9946_s12 = inlined_call_operand.vmem [shape: f32[2,1,128], index: 12, kind: input, shape index: {}]   ;;  %s9947_s13 = inlined_call_operand.vmem [shape: bf16[2,128,512], index: 13, kind: input, shape index: {}]   ;;  %s9948_s14 = inlined_call_operand.vmem [shape: f32[2,1,512], index: 14, kind: input, shape index: {}]   ;;  %s9949_s15 = inlined_call_operand.vmem [shape: bf16[2,512,128], index: 15, kind: input, shape index: {}]   ;;  %s9950_s16 = inlined_call_operand.hbm [shape: f32[2,1,128], index: 16, kind: input, shape index: {}]   ;;  %s9951_s17 = inlined_call_operand.hbm [shape: f32[1,128], index: 17, kind: input, shape index: {}]   ;;  %s9952_s18 = inlined_call_operand.hbm [shape: f32[1,128], index: 18, kind: input, shape index: {}]   ;;  %s9953_s19 = inlined_call_operand.hbm [shape: bf16[128,128], index: 19, kind: input, shape index: {}]   ;;  %s9954_s20 = inlined_call_operand.hbm [shape: f32[1,128], index: 20, kind: input, shape index: {}]   ;;  %s9955_s21 = inlined_call_operand.hbm [shape: bf16[128,128], index: 21, kind: input, shape index: {}]   ;;  %s9956_s22 = inlined_call_operand.hbm [shape: f32[1,128], index: 22, kind: input, shape index: {}]   ;;  %s9957_s23 = inlined_call_operand.vmem [shape: bf16[128,512], index: 23, kind: input, shape index: {}]   ;;  %s9958_s24 = inlined_call_operand.hbm [shape: f32[1,512], index: 24, kind: input, shape index: {}]   ;;  %s9959_s25 = inlined_call_operand.hbm [shape: bf16[512,128], index: 25, kind: input, shape index: {}]   ;;  %s9960_s26 = inlined_call_operand.hbm [shape: f32[1,128], index: 26, kind: input, shape index: {}]   ;;  %s9961_s27 = inlined_call_operand.vmem [shape: f32[2,16,128], index: 27, kind: output, shape index: {}]  }
   0x1   :  { %9983 = sst [smem:[#allocation26_spill]] %s9934_s0 }
   0x2   :  { %9984 = sst [smem:[#allocation27_spill]] %s9935_s1 }
   0x3   :  { %9985 = sst [smem:[#allocation28_spill]] %s9936_s2 }
   0x4   :  { %9986 = sst [smem:[#allocation29_spill]] %s9937_s3 }
   0x5   :  { %9987 = sst [smem:[#allocation30_spill]] %s9938_s4 }
   0x6   :  { %9988 = sst [smem:[#allocation31_spill]] %s9939_s5 }
   0x7   :  { %9989 = sst [smem:[#allocation32_spill]] %s9940_s6 }
   0x8   :  { %9990 = sst [smem:[#allocation33_spill]] %s9941_s7 }
   0x9   :  { %9991 = sst [smem:[#allocation34_spill]] %s9942_s8 }
   0xa   :  { %9992 = sst [smem:[#allocation35_spill]] %s9943_s9 }
   0xb   :  { %9993 = sst [smem:[#allocation36_spill]] %s9944_s10 }
   0xc   :  { %9994 = sst [smem:[#allocation37_spill]] %s9945_s11 }
   0xd   :  { %9995 = sst [smem:[#allocation38_spill]] %s9950_s16 }
   0xe   :  { %9996 = sst [smem:[#allocation39_spill]] %s9961_s27 }
   0xf   :  { %32 = vsyncpa [#allocation3], 0 }
  0x10   :  { %33 = vsyncpa [#allocation5], 0 }
  0x11   :  { %34 = vsyncpa [#allocation8], 0 }
  0x12   :  { %35 = vsyncpa [#allocation11], 0 }
  0x13   :  { %36 = vsyncpa [#allocation14], 0 }
  0x14   :  { %37 = vsyncpa [#allocation17], 0  ;;  %s8283_s7 = smov 0  }
  0x15 LB: > { %9997 = sst [smem:[#allocation25_spill]] %s8120_s7  ;;  %s8122_s4 = smov [#allocation4]   ;;  %s8120_s7 = sphi %s8283_s7, %s43_s7  }
  0x16   : > { %s715_s8 = sshll.u32 %s8122_s4, 4  ;;  %s8289_s30 = sadd.s32 4294967295, %s8120_s7   ;;  %s716_s8 = int_to_ptr.vmem [resolvable:$true] %s715_s8 }
  0x17   : > { %p6125_p0 = scmp.ge.s32.totalorder %s8120_s7, 1  ;;  %p651_p1 = scmp.lt.s32.totalorder %s8120_s7, 3 }
  0x18   : > { %p9971_p2 = scmp.eq.s32.totalorder %s8289_s30, 0  ;;  %s8123_s5 = smov [#allocation7]  }
  0x19   : > { %p8294_p3 = pnand %p6125_p0, %p651_p1  ;;  %s740_s28 = sshll.u32 %s8123_s5, 4  ;;  %s8300_s28 = int_to_ptr.vmem [resolvable:$true] %s740_s28 }
  0x1a   : > { %s8124_s10 = smov [#allocation10]   ;;  %s8125_s1 = smov [#allocation13]  }
  0x1b   : > { %s9998_s9 = scalar_select %p8294_p3, 1, 0 }
  0x1c   : > { %p7161_p4 = pneg %p8294_p3  ;;  %s764_s29 = sshll.u32 %s8124_s10, 4  ;;  %s8308_s29 = int_to_ptr.vmem [resolvable:$true] %s764_s29 }
  0x1d   : > { %s8310_s6 = sshll.u32 %s8125_s1, 4  ;;  %s7815_s2 = scalar_lea.vmem %s716_s8, 32  ;;  %s789_s6 = int_to_ptr.vmem [resolvable:$true] %s8310_s6 }
  0x1e   : > { %p8304_p5 = pnand %p9971_p2, %p7161_p4  ;;  %p7816_p7 = scmp.ne.s32.totalorder %s716_s8, %s7815_s2 }
  0x1f   : > { %p7823_p10 = scmp.lt.s32.totalorder %s716_s8, %s716_s8  ;;  %p7824_p11 = scmp.lt.s32.totalorder %s7815_s2, %s7815_s2 }
  0x20   : > { %p8314_p6 = pneg %p8304_p5 }
  0x21   : > { %p7825_p12 = por %p7824_p11, %p7823_p10 }
  0x22   : > { %p7818_p8 = pnand %p7816_p7, %p8314_p6 }
  0x24   : > { %p7819_p9 = pneg %p7818_p8 }
  0x26   : > { %p7826_p13 = pnand %p7825_p12, %p7819_p9 }
  0x28   : > { %7829 = shalt.err (!%p7826_p13)
}
  0x29   : > { %s8126_s3 = smov 16   ;;  %s8127_s4 = smov 1  }
  0x2a   : > { %s10001_s16 = sld [smem:[#allocation38_spill]]  ;;  %s7841_s1 = scalar_lea.vmem %s8300_s28, 16 }
  0x2b   : > { %p7842_p0 = scmp.ne.s32.totalorder %s8300_s28, %s7841_s1  ;;  %s7848_s2 = scalar_lea.vmem %s8300_s28, 32 }
  0x2c   : > { %p7849_p7 = scmp.lt.s32.totalorder %s8300_s28, %s8300_s28  ;;  %p7850_p8 = scmp.lt.s32.totalorder %s7848_s2, %s7841_s1 }
  0x2d   : > { %p7844_p1 = pnand %p7842_p0, %p8314_p6 }
  0x2e   : > { %p7851_p9 = por %p7850_p8, %p7849_p7 }
  0x2f   : > { %p7845_p4 = pneg %p7844_p1 }
  0x30   : > { %7167 = dma.hbm_to_vmem [thread:$0]  (!%p8304_p5), %s10001_s16, 32, %s716_s8, [#allocation5], %s8126_s3, %s8126_s3, %s8127_s4  }
  0x31   : > { %p7852_p10 = pnand %p7851_p9, %p7845_p4 }
  0x33   : > { %7855 = shalt.err (!%p7852_p10)
}
  0x34   : > { %7173 = dma.hbm_to_vmem [thread:$0]  (!%p8304_p5), %s9952_s18, 16, %s8300_s28, [#allocation8]  }
  0x35   : > { %s7867_s8 = scalar_lea.vmem %s8308_s29, 16  ;;  %s7874_s3 = scalar_lea.vmem %s8308_s29, 32 }
  0x36   : > { %p7868_p11 = scmp.ne.s32.totalorder %s8308_s29, %s7867_s8  ;;  %p7875_p0 = scmp.lt.s32.totalorder %s8308_s29, %s8308_s29 }
  0x37   : > { %p7876_p1 = scmp.lt.s32.totalorder %s7874_s3, %s7867_s8 }
  0x38   : > { %p7870_p12 = pnand %p7868_p11, %p8314_p6 }
  0x39   : > { %p7877_p4 = por %p7876_p1, %p7875_p0 }
  0x3a   : > { %p7871_p13 = pneg %p7870_p12 }
  0x3c   : > { %p7878_p7 = pnand %p7877_p4, %p7871_p13 }
  0x3e   : > { %7881 = shalt.err (!%p7878_p7)
}
  0x3f   : > { %7179 = dma.hbm_to_vmem [thread:$0]  (!%p8304_p5), %s9954_s20, 16, %s8308_s29, [#allocation11]  }
  0x40   : > { %s7893_s28 = scalar_lea.vmem %s789_s6, 16  ;;  %s7900_s4 = scalar_lea.vmem %s789_s6, 32 }
  0x41   : > { %p7894_p8 = scmp.ne.s32.totalorder %s789_s6, %s7893_s28  ;;  %p7901_p11 = scmp.lt.s32.totalorder %s789_s6, %s789_s6 }
  0x42   : > { %p7902_p12 = scmp.lt.s32.totalorder %s7900_s4, %s7893_s28 }
  0x43   : > { %p7896_p9 = pnand %p7894_p8, %p8314_p6 }
  0x44   : > { %p7903_p13 = por %p7902_p12, %p7901_p11 }
  0x45   : > { %p7897_p10 = pneg %p7896_p9 }
  0x47   : > { %p7904_p0 = pnand %p7903_p13, %p7897_p10 }
  0x49   : > { %7907 = shalt.err (!%p7904_p0)
}
  0x4a   : > { %7185 = dma.hbm_to_vmem [thread:$0]  (!%p8304_p5), %s9956_s22, 16, %s789_s6, [#allocation14]  }
  0x4b   : > { %s8128_s29 = smov [#allocation16]   ;;  %s8129_s2 = smov [#allocation2]  }
  0x4c   : > { %s812_s1 = sshll.u32 %s8128_s29, 4  ;;  %s684_s8 = sshll.u32 %s8129_s2, 4  ;;  %s813_s1 = int_to_ptr.vmem [resolvable:$true] %s812_s1  ;;  %s685_s8 = int_to_ptr.vmem [resolvable:$true] %s684_s8 }
  0x4d   : > { %s7919_s3 = scalar_lea.vmem %s813_s1, 4096  ;;  %p7927_p8 = scmp.lt.s32.totalorder %s813_s1, %s813_s1 }
  0x4e   : > { %p7920_p1 = scmp.ne.s32.totalorder %s813_s1, %s7919_s3  ;;  %p7928_p9 = scmp.lt.s32.totalorder %s7919_s3, %s7919_s3 }
  0x50   : > { %p7922_p4 = pnand %p7920_p1, %p8314_p6  ;;  %p7929_p10 = por %p7928_p9, %p7927_p8 }
  0x52   : > { %p7923_p7 = pneg %p7922_p4 }
  0x54   : > { %p7930_p11 = pnand %p7929_p10, %p7923_p7 }
  0x56   : > { %7933 = shalt.err (!%p7930_p11)
}
  0x57   : > { %s8130_s27 = smov 64   ;;  %s8131_s7 = smov 4  }
  0x58   : > { %7191 = dma.hbm_to_vmem [thread:$0]  (!%p8304_p5), %s9959_s25, 4096, %s813_s1, [#allocation17], %s8130_s27, %s8130_s27, %s8131_s7  }
  0x59   : > { %s7945_s4 = scalar_lea.vmem %s685_s8, 2048  ;;  %p7953_p1 = scmp.lt.s32.totalorder %s685_s8, %s685_s8 }
  0x5a   : > { %p7946_p12 = scmp.ne.s32.totalorder %s685_s8, %s7945_s4  ;;  %p7954_p4 = scmp.lt.s32.totalorder %s7945_s4, %s7945_s4 }
  0x5c   : > { %p7948_p13 = pnand %p7946_p12, %p8314_p6  ;;  %p7955_p7 = por %p7954_p4, %p7953_p1 }
  0x5e   : > { %p7949_p0 = pneg %p7948_p13 }
  0x60   : > { %p7956_p8 = pnand %p7955_p7, %p7949_p0 }
  0x62   : > { %7959 = shalt.err (!%p7956_p8)
}
  0x63   : > { %s10002_s29 = sld [smem:[#allocation35_spill]]  ;;  %s8132_s1 = smov [#allocation6]  }
  0x64   : > { %s729_s2 = sshll.u32 %s8132_s1, 4  ;;  %s8133_s3 = smov [#allocation9]   ;;  %s730_s2 = int_to_ptr.vmem [resolvable:$true] %s729_s2 }
  0x65   : > { %s750_s6 = sshll.u32 %s8133_s3, 4  ;;  %s7971_s28 = scalar_lea.vmem %s730_s2, 16  ;;  %s751_s6 = int_to_ptr.vmem [resolvable:$true] %s750_s6 }
  0x66   : > { %p7972_p9 = scmp.ne.s32.totalorder %s730_s2, %s7971_s28  ;;  %s7978_s4 = scalar_lea.vmem %s730_s2, 32 }
  0x67   : > { %p7979_p12 = scmp.lt.s32.totalorder %s730_s2, %s730_s2  ;;  %p7980_p13 = scmp.lt.s32.totalorder %s7978_s4, %s7971_s28 }
  0x68   : > { %p7974_p10 = pnand %p7972_p9, %p8314_p6 }
  0x69   : > { %7164 = dma.hbm_to_vmem [thread:$0]  (!%p8304_p5), %s10002_s29, 2048, %s685_s8, [#allocation3], %s8130_s27, %s8130_s27, %s8131_s7  }
  0x6a   : > { %p7975_p11 = pneg %p7974_p10  ;;  %p7981_p0 = por %p7980_p13, %p7979_p12 }
  0x6c   : > { %p7982_p1 = pnand %p7981_p0, %p7975_p11 }
  0x6e   : > { %7985 = shalt.err (!%p7982_p1)
}
  0x6f   : > { %7170 = dma.hbm_to_vmem [thread:$0]  (!%p8304_p5), %s9951_s17, 16, %s730_s2, [#allocation5]  }
  0x70   : > { %s7997_s10 = scalar_lea.vmem %s751_s6, 1024  ;;  %p8005_p9 = scmp.lt.s32.totalorder %s751_s6, %s751_s6 }
  0x71   : > { %p7998_p4 = scmp.ne.s32.totalorder %s751_s6, %s7997_s10  ;;  %p8006_p10 = scmp.lt.s32.totalorder %s7997_s10, %s7997_s10 }
  0x73   : > { %p8000_p7 = pnand %p7998_p4, %p8314_p6  ;;  %p8007_p2 = por %p8006_p10, %p8005_p9 }
  0x75   : > { %p8001_p8 = pneg %p8000_p7 }
  0x77   : > { %p8008_p3 = pnand %p8007_p2, %p8001_p8 }
  0x79   : > { %8011 = shalt.err (!%p8008_p3)
}
  0x7a   : > { %7176 = dma.hbm_to_vmem [thread:$0]  (!%p8304_p5), %s9953_s19, 1024, %s751_s6, [#allocation8], %s8130_s27, %s8130_s27, %s8131_s7  }
  0x7b   : > { %s8134_s2 = smov [#allocation12]   ;;  %s8135_s28 = smov [#allocation15]  }
  0x7c   : > { %s774_s3 = sshll.u32 %s8134_s2, 4  ;;  %s802_s4 = sshll.u32 %s8135_s28, 4  ;;  %s775_s3 = int_to_ptr.vmem [resolvable:$true] %s774_s3  ;;  %s803_s4 = int_to_ptr.vmem [resolvable:$true] %s802_s4 }
  0x7d   : > { %s8023_s5 = scalar_lea.vmem %s775_s3, 1024  ;;  %p8031_p12 = scmp.lt.s32.totalorder %s775_s3, %s775_s3 }
  0x7e   : > { %p8024_p11 = scmp.ne.s32.totalorder %s775_s3, %s8023_s5  ;;  %p8032_p13 = scmp.lt.s32.totalorder %s8023_s5, %s8023_s5 }
  0x80   : > { %p8026_p2 = pnand %p8024_p11, %p8314_p6  ;;  %p8033_p0 = por %p8032_p13, %p8031_p12 }
  0x82   : > { %p8027_p3 = pneg %p8026_p2 }
  0x84   : > { %p8034_p1 = pnand %p8033_p0, %p8027_p3 }
  0x86   : > { %8037 = shalt.err (!%p8034_p1)
}
  0x87   : > { %7182 = dma.hbm_to_vmem [thread:$0]  (!%p8304_p5), %s9955_s21, 1024, %s775_s3, [#allocation11], %s8130_s27, %s8130_s27, %s8131_s7  }
  0x88   : > { %s8049_s10 = scalar_lea.vmem %s803_s4, 64  ;;  %p8057_p9 = scmp.lt.s32.totalorder %s803_s4, %s803_s4 }
  0x89   : > { %p8050_p4 = scmp.ne.s32.totalorder %s803_s4, %s8049_s10  ;;  %p8058_p10 = scmp.lt.s32.totalorder %s8049_s10, %s8049_s10 }
  0x8b   : > { %p8052_p7 = pnand %p8050_p4, %p8314_p6  ;;  %p8059_p11 = por %p8058_p10, %p8057_p9 }
  0x8d   : > { %p8053_p8 = pneg %p8052_p7 }
  0x8f   : > { %p8060_p2 = pnand %p8059_p11, %p8053_p8 }
  0x91   : > { %8063 = shalt.err (!%p8060_p2)
}
  0x92   : > { %7188 = dma.hbm_to_vmem [thread:$0]  (!%p8304_p5), %s9958_s24, 64, %s803_s4, [#allocation14]  }
  0x93   : > { %s8136_s2 = smov [#allocation18]  }
  0x94   : > { %s826_s27 = sshll.u32 %s8136_s2, 4  ;;  %s827_s27 = int_to_ptr.vmem [resolvable:$true] %s826_s27 }
  0x95   : > { %s8075_s7 = scalar_lea.vmem %s827_s27, 16  ;;  %s8082_s3 = scalar_lea.vmem %s827_s27, 32 }
  0x96   : > { %p8076_p3 = scmp.ne.s32.totalorder %s827_s27, %s8075_s7  ;;  %p8083_p0 = scmp.lt.s32.totalorder %s827_s27, %s827_s27 }
  0x97   : > { %p8084_p1 = scmp.lt.s32.totalorder %s8082_s3, %s8075_s7 }
  0x98   : > { %p8078_p12 = pnand %p8076_p3, %p8314_p6 }
  0x99   : > { %p8085_p4 = por %p8084_p1, %p8083_p0 }
  0x9a   : > { %p8079_p13 = pneg %p8078_p12 }
  0x9c   : > { %p8086_p7 = pnand %p8085_p4, %p8079_p13 }
  0x9e   : > { %8089 = shalt.err (!%p8086_p7)
}
  0x9f   : > { %7194 = dma.hbm_to_vmem [thread:$0]  (!%p8304_p5), %s9960_s26, 16, %s827_s27, [#allocation17]  }
  0xa0   : > { %p10003_p8 = scmp.ne.s32.totalorder %s9998_s9, 0 }
  0xa1   : > { %p10004_p9 = scmp.eq.s32.totalorder (!%p10003_p8), %s8289_s30, 0 }
  0xa2   : > { %853 = sbr.rel (%p10003_p8) target bundleno = 7971 (0x1f23), region = 128 }
  0xa7   : > { %8095 = dma.done.wait (%p10004_p9), [#allocation3], 2048   ;;  %p10005_p6 = pmov %p10004_p9 }
  0xa9   : > { %8097 = vsyncadd (%p10005_p6), [#allocation3], 4294965248  ;;  %p10006_p10 = pmov %p10005_p6 }
  0xaa   : > { %p10007_p11 = pmov %p10005_p6 }
  0xab   : > { %8099 = dma.done.wait (%p10006_p10), [#allocation5], 48  }
  0xac   : > { %8101 = vsyncadd (%p10007_p11), [#allocation5], 4294967248  ;;  %p10008_p2 = pmov %p10005_p6 }
  0xae   : > { %8103 = dma.done.wait (%p10008_p2), [#allocation8], 1040   ;;  %p10009_p5 = pmov %p10008_p2 }
  0xaf   : > { %p10010_p3 = pmov %p10008_p2 }
  0xb0   : > { %8105 = vsyncadd (%p10009_p5), [#allocation8], 4294966256 }
  0xb1   : > { %8107 = dma.done.wait (%p10010_p3), [#allocation11], 1040   ;;  %p10011_p12 = pmov %p10008_p2 }
  0xb2   : > { %p10012_p13 = pmov %p10008_p2 }
  0xb3   : > { %8109 = vsyncadd (%p10011_p12), [#allocation11], 4294966256 }
  0xb4   : > { %8111 = dma.done.wait (%p10012_p13), [#allocation14], 80   ;;  %p10013_p0 = pmov %p10008_p2 }
  0xb6   : > { %8113 = vsyncadd (%p10013_p0), [#allocation14], 4294967216  ;;  %p10014_p1 = pmov %p10013_p0 }
  0xb7   : > { %p10015_p4 = pmov %p10013_p0 }
  0xb8   : > { %8115 = dma.done.wait (%p10014_p1), [#allocation17], 4112  }
  0xb9   : > { %8117 = vsyncadd (%p10015_p4), [#allocation17], 4294963184  ;;  %v8137_v0 = vmov 0.0   ;;  %vm8138_vm0 = vmmov 0   ;;  %s10016_s11 = sld [smem:[#allocation28_spill]]  ;;  %p968_p7 = scmp.lt.s32.totalorder %s8289_s30, 1 }
  0xba   : > { %6881 = vmatprep.subr.bf16.mxu0 %v8137_v0  ;;  %6897 = vmatprep.mubr.msk.bf16.mxu0 %vm8138_vm0, %v8137_v0  ;;  %s10017_s6 = sld [smem:[#allocation26_spill]]  ;;  %v8139_v47 = vmov 0   ;;  %vm1407_vm1 = vcmask 261120   ;;  %vm1457_vm2 = vcmask 130048   ;;  %s9978_s10 = smov 96   ;;  %vm1923_vm3 = vcmask 523264  }
  0xbb   : > { %s10034_s30 = smov (!%p968_p7, %s8289_s30), 1  ;;  %s10018_s27 = sld [smem:[#allocation29_spill]]  ;;  %1352 = vmatprep.mubr.bf16.mxu1 %v8139_v47  ;;  %vm1926_vm4 = vcmask 785408  }
  0xbc   : > { %s9973_s28 = sshll.u32 %s10034_s30, 4  ;;  %s10019_s5 = sld [smem:[#allocation30_spill]] }
  0xbd   : > { %s10022_s9 = sld [smem:[#allocation32_spill]]  ;;  %s9976_s29 = smov 64  }
  0xbe   : > { %s9974_s1 = smov 32   ;;  %s10024_s3 = sld [smem:[#allocation36_spill]] }
  0xbf   : > { %v7276_v1 = vld [vmem:[%s10016_s11 + $0x38] sm:$0xff]   ;;  %v7277_v2 = vld [vmem:[%s10016_s11 + $0x30] sm:$0xff]   ;;  %v7278_v3 = vld [vmem:[%s10016_s11 + $0x28] sm:$0xff]   ;;  %s10025_s0 = sld [smem:[#allocation37_spill]]  ;;  %s10026_s7 = smov 96  }
  0xc0   : > { %6882 = vmatpush3.bf16.msra.mxu0 %v7276_v1  ;;  %v7279_v4 = vld [vmem:[%s10016_s11 + $0x20] sm:$0xff]   ;;  %v7280_v5 = vld [vmem:[%s10016_s11 + $0x18] sm:$0xff]   ;;  %v7281_v6 = vld [vmem:[%s10016_s11 + $0x10] sm:$0xff]   ;;  %s972_s8 = scalar_lea.vmem %s10017_s6, %s9973_s28  ;;  %s10023_s6 = sld [smem:[#allocation34_spill]] }
  0xc1   : > { %6883 = vmatprep.subr.bf16.mxu0 %v8137_v0  ;;  %v7282_v7 = vld [vmem:[%s10016_s11 + $0x8] sm:$0xff]   ;;  %v7283_v8 = vld [vmem:[%s10016_s11] sm:$0xff]   ;;  %s10027_s11 = smov 64  }
  0xc2   : > { %v982_v9 = vld [vmem:[%s972_s8] sm:$0xff]  ;;  %v983_v10 = vld [vmem:[%s972_s8 + $0x8] sm:$0xff]  ;;  %s10020_s8 = sld [smem:[#allocation33_spill]] }
  0xc3   : > { %v1000_v11 = vpack.c.bf16 %v983_v10, %v982_v9  ;;  %v6154_v12 = vld [vmem:[%s10018_s27] ss:$0 sm:$0xff]  ;;  %v1098_v19 = vld [vmem:[%s10019_s5 + $0x8] sm:$0xff]  ;;  %s10021_s27 = sld [smem:[#allocation31_spill]]  ;;  %v1177_v10 = vlaneseq }
  0xc4   : > { %6884 = vmatpush3.bf16.msra.mxu0 %v7277_v2  ;;  %v1097_v14 = vld [vmem:[%s10019_s5] sm:$0xff]  ;;  %s10028_s5 = smov 32  }
  0xc5   : > { %6885 = vmatprep.subr.bf16.mxu0 %v8137_v0 }
  0xc8   : > { %6886 = vmatpush3.bf16.msra.mxu0 %v7278_v3  ;;  %v7284_v23 = vld [vmem:[%s10020_s8 + $0xac] ss:$12 sps:$4 sm:$0xff]   ;;  %v7286_v24 = vld [vmem:[%s10020_s8 + $0xa8] ss:$12 sps:$4 sm:$0xff]   ;;  %v7287_v25 = vld [vmem:[%s10020_s8 + $0xb0] ss:$12 sps:$4 sm:$0xff]  }
  0xc9   : > { %6887 = vmatprep.subr.bf16.mxu0 %v8137_v0  ;;  %1320 = vmatprep.subr.bf16.mxu1 %v7284_v23  ;;  %v7288_v34 = vld [vmem:[%s10020_s8 + $0x94] ss:$12 sps:$4 sm:$0xff]   ;;  %v7290_v35 = vld [vmem:[%s10020_s8 + $0x90] ss:$12 sps:$4 sm:$0xff]   ;;  %v7291_v36 = vld [vmem:[%s10020_s8 + $0x98] ss:$12 sps:$4 sm:$0xff]  }
  0xca   : > { %1321 = vmatpush1.bf16.msra.mxu1 %v7286_v24  ;;  %v7292_v37 = vld [vmem:[%s10020_s8 + $0x7c] ss:$12 sps:$4 sm:$0xff]   ;;  %v7294_v38 = vld [vmem:[%s10020_s8 + $0x78] ss:$12 sps:$4 sm:$0xff]   ;;  %v7295_v39 = vld [vmem:[%s10020_s8 + $0x80] ss:$12 sps:$4 sm:$0xff]  }
  0xcb   : > { %1322 = vmatprep.subr.bf16.mxu1 %v7288_v34  ;;  %v7296_v40 = vld [vmem:[%s10020_s8 + $0x64] ss:$12 sps:$4 sm:$0xff]   ;;  %v7298_v41 = vld [vmem:[%s10020_s8 + $0x60] ss:$12 sps:$4 sm:$0xff]   ;;  %v7299_v42 = vld [vmem:[%s10020_s8 + $0x68] ss:$12 sps:$4 sm:$0xff]  }
  0xcc   : > { %6888 = vmatpush3.bf16.msra.mxu0 %v7279_v4  ;;  %v7300_v43 = vld [vmem:[%s10020_s8 + $0x4c] ss:$12 sps:$4 sm:$0xff]   ;;  %v7302_v44 = vld [vmem:[%s10020_s8 + $0x48] ss:$12 sps:$4 sm:$0xff]   ;;  %v7303_v45 = vld [vmem:[%s10020_s8 + $0x50] ss:$12 sps:$4 sm:$0xff]  }
  0xcd   : > { %6889 = vmatprep.subr.bf16.mxu0 %v8137_v0  ;;  %v7304_v46 = vld [vmem:[%s10020_s8 + $0x34] ss:$12 sps:$4 sm:$0xff]   ;;  %v7306_v48 = vld [vmem:[%s10020_s8 + $0x30] ss:$12 sps:$4 sm:$0xff]   ;;  %v7307_v49 = vld [vmem:[%s10020_s8 + $0x38] ss:$12 sps:$4 sm:$0xff]  }
  0xce   : > { %1323 = vmatpush1.bf16.msra.mxu1 %v7290_v35  ;;  %v7308_v50 = vld [vmem:[%s10020_s8 + $0x1c] ss:$12 sps:$4 sm:$0xff]   ;;  %v7310_v51 = vld [vmem:[%s10020_s8 + $0x18] ss:$12 sps:$4 sm:$0xff]   ;;  %v7311_v52 = vld [vmem:[%s10020_s8 + $0x20] ss:$12 sps:$4 sm:$0xff]  }
  0xcf   : > { %1324 = vmatprep.subr.bf16.mxu1 %v7292_v37  ;;  %v7312_v53 = vld [vmem:[%s10020_s8 + $0x4] ss:$12 sps:$4 sm:$0xff]   ;;  %v7314_v54 = vld [vmem:[%s10020_s8] ss:$12 sps:$4 sm:$0xff]   ;;  %v7315_v55 = vld [vmem:[%s10020_s8 + $0x8] ss:$12 sps:$4 sm:$0xff]  }
  0xd0   : > { %6890 = vmatpush3.bf16.msra.mxu0 %v7280_v5  ;;  %v6163_v1 = vld [vmem:[%s10021_s27] ss:$0 sm:$0xff] }
  0xd1   : > { %6891 = vmatprep.subr.bf16.mxu0 %v8137_v0  ;;  %v6164_v5 = vld [vmem:[%s10022_s9] ss:$0 sm:$0xff] }
  0xd2   : > { %1325 = vmatpush1.bf16.msra.mxu1 %v7294_v38 }
  0xd3   : > { %1326 = vmatprep.subr.bf16.mxu1 %v7296_v40 }
  0xd4   : > { %6892 = vmatpush3.bf16.msra.mxu0 %v7281_v6 }
  0xd5   : > { %6893 = vmatprep.subr.bf16.mxu0 %v8137_v0 }
  0xd6   : > { %1327 = vmatpush1.bf16.msra.mxu1 %v7298_v41 }
  0xd7   : > { %1328 = vmatprep.subr.bf16.mxu1 %v7300_v43 }
  0xd8   : > { %6894 = vmatpush3.bf16.msra.mxu0 %v7282_v7 }
  0xd9   : > { %6895 = vmatprep.subr.bf16.mxu0 %v8137_v0 }
  0xda   : > { %1329 = vmatpush1.bf16.msra.mxu1 %v7302_v44 }
  0xdb   : > { %1330 = vmatprep.subr.bf16.mxu1 %v7304_v46 }
  0xdc   : > { %6896 = vmatpush3.bf16.msra.mxu0 %v7283_v8 }
  0xdd   : > { %6901 = vmatprep.subr.bf16.mxu0 %v8137_v0 }
  0xde   : > { %1331 = vmatpush1.bf16.msra.mxu1 %v7306_v48 }
  0xdf   : > { %6898 = vmatmul.mubr.bf16.vlgmr.msra.gmra.mxu0 %v1000_v11  ;;  %1332 = vmatprep.subr.bf16.mxu1 %v7308_v50  ;;  %v8612_v11 = vshrl.u32 %v1177_v10, 7 }
  0xe0   : > { %6917 = vmatprep.mubr.msk.bf16.mxu0 %vm8138_vm0, %v8137_v0  ;;  %6902 = vmatpush3.bf16.msra.mxu0 %v7287_v25 }
  0xe1   : > { %6903 = vmatprep.subr.bf16.mxu0 %v8137_v0  ;;  %v8622_v25 = vsub.s32 0, %v8612_v11 }
  0xe2   : > { %1333 = vmatpush1.bf16.msra.mxu1 %v7310_v51 }
  0xe3   : > { %1334 = vmatprep.subr.bf16.mxu1 %v7312_v53 }
  0xe4   : > { %6904 = vmatpush3.bf16.msra.mxu0 %v7291_v36 }
  0xe5   : > { %6905 = vmatprep.subr.bf16.mxu0 %v8137_v0 }
  0xe6   : > { %1335 = vmatpush1.bf16.msra.mxu1 %v7314_v54 }
  0xe7   : > { %6921 = vmatprep.subr.bf16.mxu1 %v8137_v0 }
  0xe8   : > { %6906 = vmatpush3.bf16.msra.mxu0 %v7295_v39 }
  0xe9   : > { %6907 = vmatprep.subr.bf16.mxu0 %v8137_v0 }
  0xec   : > { %6908 = vmatpush3.bf16.msra.mxu0 %v7299_v42 }
  0xed   : > { %6909 = vmatprep.subr.bf16.mxu0 %v8137_v0 }
  0xf0   : > { %6910 = vmatpush3.bf16.msra.mxu0 %v7303_v45 }
  0xf1   : > { %6911 = vmatprep.subr.bf16.mxu0 %v8137_v0 }
  0xf4   : > { %6912 = vmatpush3.bf16.msra.mxu0 %v7307_v49 }
  0xf5   : > { %6913 = vmatprep.subr.bf16.mxu0 %v8137_v0 }
  0xf8   : > { %6914 = vmatpush3.bf16.msra.mxu0 %v7311_v52 }
  0xf9   : > { %6915 = vmatprep.subr.bf16.mxu0 %v8137_v0 }
  0xfc   : > { %6916 = vmatpush3.bf16.msra.mxu0 %v7315_v55 }
  0xfd   : > { %6969 = vmatprep.subr.bf16.mxu0 %v8137_v0 }
 0x19f   : > { %v1090_v13 = vpop.f32.mrf.mxu0 }
 0x1a0   : > { %v1091_v15 = vadd.f32 %v6154_v12, %v1090_v13 }
 0x1a1   : > { %v6899_v16 = vpop.f32.mrf.mxu0 }
 0x1a2   : > { %v8499_v17 = vadd.f32 %v1097_v14, %v1091_v15  ;;  %v1175_v15 = vld [vmem:[%s10023_s6] sm:$0x7] }
 0x1a3   : > { %v1093_v18 = vpop.f32.mrf.mxu0 }
 0x1a4   : > { %v1094_v20 = vadd.f32 %v6154_v12, %v1093_v18  ;;  %1103 = vadd.xlane.f32.xlu0 %v8499_v17  ;;  %v8615_v12 = vsub.s32 1, %v8612_v11 }
 0x1a5   : > { %v6900_v21 = vpop.f32.mrf.mxu0 }
 0x1a6   : > { %v8505_v22 = vadd.f32 %v1098_v19, %v1094_v20  ;;  %v1184_v19 = vrot.slane %v1175_v15, %v8615_v12 }
 0x1a8   : > { %1105 = vadd.xlane.f32.xlu0 %v8505_v22 }
 0x22d   : > { %v1104_v26 = vpop.xlane.xlu0 %1103 }
 0x22e   : > { %v1108_v27 = vmul.f32 0.0078125, %v1104_v26 }
 0x230   : > { %v8519_v28 = vsub.f32 %v8499_v17, %v1108_v27 }
 0x231   : > { %v1106_v29 = vpop.xlane.xlu0 %1105 }
 0x232   : > { %v1109_v30 = vmul.f32 0.0078125, %v1106_v29  ;;  %v1112_v31 = vmul.f32 %v8519_v28, %v8519_v28 }
 0x234   : > { %v8524_v32 = vsub.f32 %v8505_v22, %v1109_v30  ;;  %1114 = vadd.xlane.f32.xlu1 %v1112_v31  ;;  %v1180_v30 = vrot.slane %v1175_v15, %v8622_v25 }
 0x236   : > { %v1113_v33 = vmul.f32 %v8524_v32, %v8524_v32 }
 0x238   : > { %1116 = vadd.xlane.f32.xlu1 %v1113_v33 }
 0x2bd   : > { %v1115_v56 = vpop.xlane.xlu1 %1114 }
 0x2be   : > { %v1118_v57 = vmul.f32 0.0078125, %v1115_v56 }
 0x2c0   : > { %v1120_v58 = vadd.f32 1e-05, %v1118_v57 }
 0x2c1   : > { %v1117_v59 = vpop.xlane.xlu1 %1116 }
 0x2c2   : > { %7620 = vrsqrt.f32 %v1120_v58  ;;  %v1119_v60 = vmul.f32 0.0078125, %v1117_v59 }
 0x2c4   : > { %v1121_v61 = vadd.f32 1e-05, %v1119_v60 }
 0x2c6   : > { %7622 = vrsqrt.f32 %v1121_v61 }
 0x2cf   : > { %v7621_v62 = vpop.eup %7620 }
 0x2d0   : > { %v1124_v63 = vmul.f32 %v7621_v62, %v8519_v28  ;;  %v8625_v28 = vsub.s32 2, %v8612_v11 }
 0x2d2   : > { %v1132_v4 = vmul.f32 %v6163_v1, %v1124_v63 }
 0x2d3   : > { %v7623_v2 = vpop.eup %7622 }
 0x2d4   : > { %v1125_v3 = vmul.f32 %v7623_v2, %v8524_v32  ;;  %v1140_v7 = vadd.f32 %v6164_v5, %v1132_v4  ;;  %v1188_v32 = vrot.slane %v1175_v15, %v8625_v28 }
 0x2d6   : > { %v1133_v6 = vmul.f32 %v6163_v1, %v1125_v3 }
 0x2d8   : > { %v1141_v8 = vadd.f32 %v6164_v5, %v1133_v6 }
 0x2da   : > { %v1174_v9 = vpack.c.bf16 %v1141_v8, %v1140_v7 }
 0x2dc   : > { %1353 = vmatmul.mubr.bf16.vlgmr.msra.gmra.mxu1 %v1174_v9  ;;  %6918 = vmatmul.mubr.bf16.vlgmr.msra.gmra.mxu0 %v1174_v9 }
 0x2dd   : > { %6923 = vmatprep.mubr.msk.bf16.mxu1 %vm8138_vm0, %v8137_v0  ;;  %6985 = vmatprep.mubr.msk.bf16.mxu0 %vm8138_vm0, %v8137_v0 }
 0x39c   : > { %v1354_v13 = vpop.f32.mrf.mxu1  ;;  %v1397_v14 = vpop.f32.mrf.mxu0 }
 0x39d   : > { %v1355_v35 = vadd.f32 %v1354_v13, %v1180_v30  ;;  %v1398_v36 = vadd.f32 %v1397_v14, %v1188_v32 }
 0x39e   : > { %v1356_v16 = vpop.f32.mrf.mxu1  ;;  %v6919_v18 = vpop.f32.mrf.mxu0 }
 0x39f   : > { %v1357_v26 = vadd.f32 %v1356_v16, %v1184_v19 }
 0x3a0   : > { %v1358_v20 = vpop.f32.mrf.mxu1  ;;  %v1400_v21 = vpop.f32.mrf.mxu0 }
 0x3a1   : > { %v1359_v33 = vadd.f32 %v1358_v20, %v1180_v30  ;;  %v1401_v34 = vadd.f32 %v1400_v21, %v1188_v32 }
 0x3a2   : > { %v1360_v23 = vpop.f32.mrf.mxu1  ;;  %v6920_v24 = vpop.f32.mrf.mxu0 }
 0x3a3   : > { %v1361_v27 = vadd.f32 %v1360_v23, %v1184_v19  ;;  %v8634_v37 = vpack.c.bf16 %v1359_v33, %v1355_v35  ;;  %v8636_v38 = vpack.c.bf16 %v1401_v34, %v1398_v36 }
 0x3a5   : > { %v8627_v29 = vpack.c.bf16 %v1361_v27, %v1357_v26 }
 0x3a7   : > { %v1412_v31 = vsel %vm1407_vm1, %v8627_v29, 0 }
 0x3a8   : > { %6922 = vmatpush3.bf16.xpose.msra.mxu1 %v1412_v31 }
 0x3a9   : > { %6927 = vmatprep.subr.bf16.mxu1 %v8137_v0 }
 0x3af   : > { %6924 = vmatmul.mubr.msk.bf16.vlgmr.msra.gmra.mxu1 %vm1407_vm1, %v8634_v37 }
 0x3b0   : > { %6928 = vmatpush3.bf16.msra.mxu1 %v8636_v38  ;;  %6929 = vmatprep.mubr.msk.bf16.mxu1 %vm8138_vm0, %v8137_v0 }
 0x3b1   : > { %6933 = vmatprep.subr.bf16.mxu1 %v8137_v0 }
 0x46f   : > { %v1448_v39 = vpop.f32.mrf.mxu1 }
 0x470   : > { %v1455_v40 = vmul.f32 0.17677669, %v1448_v39 }
 0x471   : > { %v6925_v41 = vpop.f32.mrf.mxu1 }
 0x472   : > { %v1458_v42 = vsel %vm1457_vm2, %v1455_v40, -inf }
 0x473   : > { %1459 = vmax.xlane.f32.xlu0 %v1458_v42  ;;  %v1451_v43 = vpop.f32.mrf.mxu1 }
 0x474   : > { %v1456_v44 = vmul.f32 0.17677669, %v1451_v43 }
 0x475   : > { %v6926_v45 = vpop.f32.mrf.mxu1 }
 0x476   : > { %v1461_v46 = vsel %vm1457_vm2, %v1456_v44, -inf }
 0x477   : > { %1462 = vmax.xlane.f32.xlu1 %v1461_v46 }
 0x4fc   : > { %v1460_v48 = vpop.xlane.xlu0 %1459 }
 0x4fd   : > { %v1464_v49 = vsub.f32 %v1455_v40, %v1460_v48 }
 0x4ff   : > { %v1466_v50 = vmul.f32 1.442695, %v1464_v49 }
 0x500   : > { %v1463_v51 = vpop.xlane.xlu1 %1462 }
 0x501   : > { %7624 = vpow2.f32 %v1466_v50  ;;  %v1465_v52 = vsub.f32 %v1456_v44, %v1463_v51 }
 0x503   : > { %v1468_v53 = vmul.f32 1.442695, %v1465_v52 }
 0x505   : > { %7626 = vpow2.f32 %v1468_v53 }
 0x50e   : > { %v7625_v54 = vpop.eup %7624 }
 0x50f   : > { %v1470_v55 = vsel %vm1457_vm2, %v7625_v54, 0.0 }
 0x510   : > { %1471 = vadd.xlane.f32.xlu0 %v1470_v55 }
 0x512   : > { %v7627_v56 = vpop.eup %7626 }
 0x513   : > { %v1473_v57 = vsel %vm1457_vm2, %v7627_v56, 0.0 }
 0x514   : > { %1474 = vadd.xlane.f32.xlu1 %v1473_v57 }
 0x525   : > { %1526 = vrot.lane.b32.xlu1 %v8634_v37, %s9978_s10 }
 0x526   : > { %1529 = vrot.lane.b32.xlu0 %v8627_v29, %s9978_s10 }
 0x599   : > { %v1472_v58 = vpop.xlane.xlu0 %1471 }
 0x59a   : > { %7628 = vrcp.f32 %v1472_v58 }
 0x59d   : > { %v1475_v59 = vpop.xlane.xlu1 %1474  ;;  %v1530_v1 = vpop.permute.xlu0 %1529 }
 0x59e   : > { %7630 = vrcp.f32 %v1475_v59  ;;  %v1535_v3 = vsel %vm1407_vm1, %v1530_v1, 0 }
 0x5a1   : > { %v1527_v4 = vpop.permute.xlu1 %1526 }
 0x5a7   : > { %v7629_v60 = vpop.eup %7628 }
 0x5a8   : > { %v1478_v62 = vmul.f32 %v7629_v60, %v7625_v54 }
 0x5ab   : > { %v7631_v61 = vpop.eup %7630 }
 0x5ac   : > { %v1479_v63 = vmul.f32 %v7631_v61, %v7627_v56 }
 0x5ae   : > { %v1480_v2 = vpack.c.bf16 %v1479_v63, %v1478_v62 }
 0x5b0   : > { %6930 = vmatmul.mubr.msk.bf16.vlgmr.msra.gmra.mxu1 %vm1457_vm2, %v1480_v2 }
 0x5b1   : > { %6934 = vmatpush3.bf16.xpose.msra.mxu1 %v1535_v3  ;;  %6935 = vmatprep.mubr.msk.bf16.mxu1 %vm8138_vm0, %v8137_v0 }
 0x5b2   : > { %6939 = vmatprep.subr.bf16.mxu1 %v8137_v0 }
 0x5b8   : > { %6936 = vmatmul.mubr.msk.bf16.vlgmr.msra.gmra.mxu1 %vm1407_vm1, %v1527_v4 }
 0x5b9   : > { %6941 = vmatprep.mubr.msk.bf16.mxu1 %vm8138_vm0, %v8137_v0 }
 0x670   : > { %v8660_v5 = vpop.f32.mrf.mxu1 }
 0x672   : > { %v6931_v6 = vpop.f32.mrf.mxu1 }
 0x674   : > { %v8662_v7 = vpop.f32.mrf.mxu1 }
 0x676   : > { %v6932_v8 = vpop.f32.mrf.mxu1 }
 0x678   : > { %v1571_v9 = vpop.f32.mrf.mxu1 }
 0x679   : > { %v1578_v10 = vmul.f32 0.17677669, %v1571_v9 }
 0x67a   : > { %v6937_v13 = vpop.f32.mrf.mxu1 }
 0x67b   : > { %v1580_v14 = vsel %vm1457_vm2, %v1578_v10, -inf }
 0x67c   : > { %1581 = vmax.xlane.f32.xlu1 %v1580_v14  ;;  %v1574_v15 = vpop.f32.mrf.mxu1 }
 0x67d   : > { %v1579_v16 = vmul.f32 0.17677669, %v1574_v15 }
 0x67e   : > { %v6938_v18 = vpop.f32.mrf.mxu1 }
 0x67f   : > { %v1583_v19 = vsel %vm1457_vm2, %v1579_v16, -inf }
 0x680   : > { %1584 = vmax.xlane.f32.xlu0 %v1583_v19 }
 0x705   : > { %v1582_v20 = vpop.xlane.xlu1 %1581 }
 0x706   : > { %v1586_v21 = vsub.f32 %v1578_v10, %v1582_v20 }
 0x708   : > { %v1588_v23 = vmul.f32 1.442695, %v1586_v21 }
 0x709   : > { %v1585_v24 = vpop.xlane.xlu0 %1584 }
 0x70a   : > { %7632 = vpow2.f32 %v1588_v23  ;;  %v1587_v26 = vsub.f32 %v1579_v16, %v1585_v24 }
 0x70c   : > { %v1590_v27 = vmul.f32 1.442695, %v1587_v26 }
 0x70e   : > { %7634 = vpow2.f32 %v1590_v27 }
 0x717   : > { %v7633_v30 = vpop.eup %7632 }
 0x718   : > { %v1592_v31 = vsel %vm1457_vm2, %v7633_v30, 0.0 }
 0x719   : > { %1593 = vadd.xlane.f32.xlu0 %v1592_v31 }
 0x71b   : > { %v7635_v32 = vpop.eup %7634 }
 0x71c   : > { %v1595_v33 = vsel %vm1457_vm2, %v7635_v32, 0.0 }
 0x71d   : > { %1596 = vadd.xlane.f32.xlu1 %v1595_v33 }
 0x72e   : > { %1653 = vrot.lane.b32.xlu1 %v8627_v29, %s9976_s29 }
 0x72f   : > { %1604 = vrot.lane.b32.xlu0 %v8636_v38, %s9978_s10 }
 0x732   : > { %1651 = vrot.lane.b32.xlu1 %v8634_v37, %s9976_s29 }
 0x7a2   : > { %v1594_v34 = vpop.xlane.xlu0 %1593 }
 0x7a3   : > { %7636 = vrcp.f32 %v1594_v34 }
 0x7a6   : > { %v1597_v35 = vpop.xlane.xlu1 %1596  ;;  %v1605_v36 = vpop.permute.xlu0 %1604 }
 0x7a7   : > { %7638 = vrcp.f32 %v1597_v35  ;;  %6940 = vmatpush3.bf16.msra.mxu1 %v1605_v36 }
 0x7a8   : > { %6945 = vmatprep.subr.bf16.mxu1 %v8137_v0 }
 0x7aa   : > { %v1654_v43 = vpop.permute.xlu1 %1653 }
 0x7ab   : > { %v1659_v45 = vsel %vm1407_vm1, %v1654_v43, 0 }
 0x7ae   : > { %v1652_v46 = vpop.permute.xlu1 %1651 }
 0x7b0   : > { %v7637_v39 = vpop.eup %7636 }
 0x7b1   : > { %v1600_v41 = vmul.f32 %v7637_v39, %v7633_v30 }
 0x7b4   : > { %v7639_v40 = vpop.eup %7638 }
 0x7b5   : > { %v1601_v42 = vmul.f32 %v7639_v40, %v7635_v32 }
 0x7b7   : > { %v1602_v44 = vpack.c.bf16 %v1601_v42, %v1600_v41 }
 0x7b9   : > { %6942 = vmatmul.mubr.msk.bf16.vlgmr.msra.gmra.mxu1 %vm1457_vm2, %v1602_v44 }
 0x7ba   : > { %6946 = vmatpush3.bf16.xpose.msra.mxu1 %v1659_v45  ;;  %6947 = vmatprep.mubr.msk.bf16.mxu1 %vm8138_vm0, %v8137_v0 }
 0x7bb   : > { %6951 = vmatprep.subr.bf16.mxu1 %v8137_v0 }
 0x7c1   : > { %6948 = vmatmul.mubr.msk.bf16.vlgmr.msra.gmra.mxu1 %vm1407_vm1, %v1652_v46 }
 0x7c2   : > { %6953 = vmatprep.mubr.msk.bf16.mxu1 %vm8138_vm0, %v8137_v0 }
 0x879   : > { %v8683_v48 = vpop.f32.mrf.mxu1 }
 0x87b   : > { %v6943_v49 = vpop.f32.mrf.mxu1 }
 0x87d   : > { %v8685_v50 = vpop.f32.mrf.mxu1 }
 0x87e   : > { %v7246_v51 = vpack.i.bf16 %v8685_v50, %v8683_v48  ;;  %v7316_v48 = vld [vmem:[#allocation2 + $0x38] sm:$0xff]   ;;  %v7318_v50 = vld [vmem:[#allocation2 + $0x28] sm:$0xff]  }
 0x87f   : > { %v6944_v52 = vpop.f32.mrf.mxu1  ;;  %6970 = vmatpush3.bf16.msra.mxu0 %v7316_v48  ;;  %v7342_v48 = vld [vmem:[%s9947_s13 + $0x80] ss:$16 sps:$4 sm:$0xff]  }
 0x880   : > { %6971 = vmatprep.subr.bf16.mxu0 %v8137_v0 }
 0x881   : > { %v1695_v53 = vpop.f32.mrf.mxu1 }
 0x882   : > { %v1702_v54 = vmul.f32 0.17677669, %v1695_v53 }
 0x883   : > { %v6949_v55 = vpop.f32.mrf.mxu1 }
 0x884   : > { %v1704_v56 = vsel %vm1457_vm2, %v1702_v54, -inf }
 0x885   : > { %1705 = vmax.xlane.f32.xlu1 %v1704_v56  ;;  %v1698_v57 = vpop.f32.mrf.mxu1 }
 0x886   : > { %v1703_v58 = vmul.f32 0.17677669, %v1698_v57 }
 0x887   : > { %v6950_v59 = vpop.f32.mrf.mxu1 }
 0x888   : > { %v1707_v60 = vsel %vm1457_vm2, %v1703_v58, -inf }
 0x889   : > { %1708 = vmax.xlane.f32.xlu0 %v1707_v60 }
 0x896   : > { %1727 = vrot.lane.b32.xlu1 %v8636_v38, %s9976_s29 }
 0x89a   : > { %1774 = vrot.lane.b32.xlu1 %v8634_v37, %s9974_s1 }
 0x90e   : > { %v1706_v61 = vpop.xlane.xlu1 %1705 }
 0x90f   : > { %v1710_v62 = vsub.f32 %v1702_v54, %v1706_v61 }
 0x911   : > { %v1712_v63 = vmul.f32 1.442695, %v1710_v62 }
 0x912   : > { %v1728_v1 = vpop.permute.xlu1 %1727  ;;  %v1709_v2 = vpop.xlane.xlu0 %1708 }
 0x913   : > { %7640 = vpow2.f32 %v1712_v63  ;;  %v1711_v3 = vsub.f32 %v1703_v58, %v1709_v2  ;;  %6952 = vmatpush3.bf16.msra.mxu1 %v1728_v1  ;;  %v7320_v63 = vld [vmem:[#allocation2 + $0x18] sm:$0xff]   ;;  %v7321_v1 = vld [vmem:[#allocation2 + $0x10] sm:$0xff]   ;;  %v7322_v2 = vld [vmem:[#allocation2 + $0x8] sm:$0xff]  }
 0x914   : > { %6957 = vmatprep.subr.bf16.mxu1 %v8137_v0 }
 0x915   : > { %v1714_v4 = vmul.f32 1.442695, %v1711_v3  ;;  %v7323_v3 = vld [vmem:[#allocation2] sm:$0xff]  }
 0x917   : > { %7642 = vpow2.f32 %v1714_v4 }
 0x920   : > { %v7641_v6 = vpop.eup %7640 }
 0x921   : > { %v1716_v8 = vsel %vm1457_vm2, %v7641_v6, 0.0 }
 0x922   : > { %1717 = vadd.xlane.f32.xlu0 %v1716_v8 }
 0x924   : > { %v7643_v9 = vpop.eup %7642 }
 0x925   : > { %v1719_v10 = vsel %vm1457_vm2, %v7643_v9, 0.0 }
 0x926   : > { %1720 = vadd.xlane.f32.xlu0 %v1719_v10 }
 0x93c   : > { %1776 = vrot.lane.b32.xlu0 %v8627_v29, %s9974_s1  ;;  %v1775_v29 = vpop.permute.xlu1 %1774 }
 0x9ab   : > { %v1718_v37 = vpop.xlane.xlu0 %1717 }
 0x9ac   : > { %7644 = vrcp.f32 %v1718_v37 }
 0x9af   : > { %v1721_v13 = vpop.xlane.xlu0 %1720 }
 0x9b0   : > { %7646 = vrcp.f32 %v1721_v13 }
 0x9b3   : > { %v1777_v19 = vpop.permute.xlu0 %1776 }
 0x9b4   : > { %v1782_v21 = vsel %vm1407_vm1, %v1777_v19, 0 }
 0x9b9   : > { %v7645_v14 = vpop.eup %7644 }
 0x9ba   : > { %v1724_v16 = vmul.f32 %v7645_v14, %v7641_v6 }
 0x9bd   : > { %v7647_v15 = vpop.eup %7646 }
 0x9be   : > { %v1725_v18 = vmul.f32 %v7647_v15, %v7643_v9 }
 0x9c0   : > { %v1726_v20 = vpack.c.bf16 %v1725_v18, %v1724_v16 }
 0x9c2   : > { %6954 = vmatmul.mubr.msk.bf16.vlgmr.msra.gmra.mxu1 %vm1457_vm2, %v1726_v20 }
 0x9c3   : > { %6958 = vmatpush3.bf16.xpose.msra.mxu1 %v1782_v21  ;;  %6959 = vmatprep.mubr.msk.bf16.mxu1 %vm8138_vm0, %v8137_v0 }
 0x9c4   : > { %6963 = vmatprep.subr.bf16.mxu1 %v8137_v0 }
 0x9ca   : > { %6960 = vmatmul.mubr.msk.bf16.vlgmr.msra.gmra.mxu1 %vm1407_vm1, %v1775_v29 }
 0x9cb   : > { %6965 = vmatprep.mubr.msk.bf16.mxu1 %vm8138_vm0, %v8137_v0 }
 0xa82   : > { %v1767_v23 = vpop.f32.mrf.mxu1 }
 0xa84   : > { %v6955_v24 = vpop.f32.mrf.mxu1 }
 0xa86   : > { %v1770_v26 = vpop.f32.mrf.mxu1 }
 0xa87   : > { %v7251_v27 = vpack.i.bf16 %v1770_v26, %v1767_v23 }
 0xa88   : > { %v6956_v30 = vpop.f32.mrf.mxu1 }
 0xa8a   : > { %v1818_v31 = vpop.f32.mrf.mxu1 }
 0xa8b   : > { %v1825_v32 = vmul.f32 0.17677669, %v1818_v31 }
 0xa8c   : > { %v6961_v33 = vpop.f32.mrf.mxu1 }
 0xa8d   : > { %v1827_v34 = vsel %vm1457_vm2, %v1825_v32, -inf }
 0xa8e   : > { %1828 = vmax.xlane.f32.xlu1 %v1827_v34  ;;  %v1821_v35 = vpop.f32.mrf.mxu1 }
 0xa8f   : > { %v1826_v36 = vmul.f32 0.17677669, %v1821_v35 }
 0xa90   : > { %v6962_v39 = vpop.f32.mrf.mxu1 }
 0xa91   : > { %v1830_v40 = vsel %vm1457_vm2, %v1826_v36, -inf }
 0xa92   : > { %1831 = vmax.xlane.f32.xlu0 %v1830_v40 }
 0xb17   : > { %v1829_v41 = vpop.xlane.xlu1 %1828 }
 0xb18   : > { %v1833_v42 = vsub.f32 %v1825_v32, %v1829_v41  ;;  %v7324_v41 = vld [vmem:[%s9947_s13 + $0xe0] ss:$16 sps:$4 sm:$0xff]  }
 0xb1a   : > { %v1835_v43 = vmul.f32 1.442695, %v1833_v42  ;;  %v7327_v42 = vld [vmem:[%s9947_s13 + $0xe8] ss:$16 sps:$4 sm:$0xff]  }
 0xb1b   : > { %v1832_v44 = vpop.xlane.xlu0 %1831 }
 0xb1c   : > { %7648 = vpow2.f32 %v1835_v43  ;;  %v1834_v45 = vsub.f32 %v1826_v36, %v1832_v44 }
 0xb1e   : > { %v1837_v46 = vmul.f32 1.442695, %v1834_v45 }
 0xb20   : > { %7650 = vpow2.f32 %v1837_v46 }
 0xb29   : > { %v7649_v49 = vpop.eup %7648 }
 0xb2a   : > { %v1839_v52 = vsel %vm1457_vm2, %v7649_v49, 0.0 }
 0xb2b   : > { %1840 = vadd.xlane.f32.xlu0 %v1839_v52 }
 0xb2d   : > { %v7651_v53 = vpop.eup %7650 }
 0xb2e   : > { %v1842_v54 = vsel %vm1457_vm2, %v7651_v53, 0.0 }
 0xb2f   : > { %1843 = vadd.xlane.f32.xlu1 %v1842_v54 }
 0xb40   : > { %7247 = vrot.lane.b32.xlu1 %v7246_v51, %s9974_s1  ;;  %v7319_v51 = vld [vmem:[#allocation2 + $0x20] sm:$0xff]  }
 0xb41   : > { %1850 = vrot.lane.b32.xlu0 %v8636_v38, %s9974_s1  ;;  %v7317_v38 = vld [vmem:[#allocation2 + $0x30] sm:$0xff]  }
 0xb42   : > { %6972 = vmatpush3.bf16.msra.mxu0 %v7317_v38  ;;  %v7344_v38 = vld [vmem:[%s9947_s13 + $0x84] ss:$16 sps:$4 sm:$0xff]  }
 0xb43   : > { %6973 = vmatprep.subr.bf16.mxu0 %v8137_v0 }
 0xb44   : > { %7252 = vrot.lane.b32.xlu1 %v7251_v27, %s9976_s29 }
 0xb46   : > { %6974 = vmatpush3.bf16.msra.mxu0 %v7318_v50  ;;  %v7345_v50 = vld [vmem:[%s9947_s13 + $0x88] ss:$16 sps:$4 sm:$0xff]  }
 0xb47   : > { %6975 = vmatprep.subr.bf16.mxu0 %v8137_v0 }
 0xb4a   : > { %6976 = vmatpush3.bf16.msra.mxu0 %v7319_v51  ;;  %v7347_v51 = vld [vmem:[%s9947_s13 + $0x8c] ss:$16 sps:$4 sm:$0xff]  }
 0xb4b   : > { %6977 = vmatprep.subr.bf16.mxu0 %v8137_v0 }
 0xb4e   : > { %6978 = vmatpush3.bf16.msra.mxu0 %v7320_v63  ;;  %v7350_v63 = vld [vmem:[%s9947_s13 + $0x64] ss:$16 sps:$4 sm:$0xff]  }
 0xb4f   : > { %6979 = vmatprep.subr.bf16.mxu0 %v8137_v0 }
 0xb52   : > { %6980 = vmatpush3.bf16.msra.mxu0 %v7321_v1  ;;  %v7353_v1 = vld [vmem:[%s9947_s13 + $0x6c] ss:$16 sps:$4 sm:$0xff]  }
 0xb53   : > { %6981 = vmatprep.subr.bf16.mxu0 %v8137_v0 }
 0xb56   : > { %6982 = vmatpush3.bf16.msra.mxu0 %v7322_v2  ;;  %v7348_v2 = vld [vmem:[%s9947_s13 + $0x60] ss:$16 sps:$4 sm:$0xff]  }
 0xb57   : > { %6983 = vmatprep.subr.bf16.mxu0 %v8137_v0 }
 0xb5a   : > { %6984 = vmatpush3.bf16.msra.mxu0 %v7323_v3  ;;  %v7351_v3 = vld [vmem:[%s9947_s13 + $0x68] ss:$16 sps:$4 sm:$0xff]  }
 0xbb4   : > { %v1841_v55 = vpop.xlane.xlu0 %1840 }
 0xbb5   : > { %7652 = vrcp.f32 %v1841_v55  ;;  %v7332_v55 = vld [vmem:[%s9947_s13 + $0xc4] ss:$16 sps:$4 sm:$0xff]  }
 0xbb8   : > { %v1844_v56 = vpop.xlane.xlu1 %1843  ;;  %v1851_v57 = vpop.permute.xlu0 %1850 }
 0xbb9   : > { %7654 = vrcp.f32 %v1844_v56  ;;  %6964 = vmatpush3.bf16.msra.mxu1 %v1851_v57  ;;  %v7335_v56 = vld [vmem:[%s9947_s13 + $0xcc] ss:$16 sps:$4 sm:$0xff]   ;;  %v7330_v57 = vld [vmem:[%s9947_s13 + $0xc0] ss:$16 sps:$4 sm:$0xff]  }
 0xbbc   : > { %v7248_v37 = vpop.permute.xlu1 %7247 }
 0xbbd   : > { %v7250_v14 = vunpack.i.h.bf16 %v7248_v37  ;;  %v7249_v15 = vunpack.i.l.bf16 %v7248_v37  ;;  %v7365_v37 = vld [vmem:[%s9947_s13 + $0x2c] ss:$16 sps:$4 sm:$0xff]  }
 0xbbf   : > { %v1922_v20 = vsel %vm1407_vm1, %v8662_v7, %v7250_v14  ;;  %v1921_v21 = vsel %vm1407_vm1, %v8660_v5, %v7249_v15  ;;  %v6205_v7 = vld [vmem:[%s10024_s3] ss:$0 sm:$0xff]  ;;  %v7363_v14 = vld [vmem:[%s9947_s13 + $0x28] ss:$16 sps:$4 sm:$0xff]   ;;  %v7368_v15 = vld [vmem:[%s9947_s13 + $0x4] ss:$16 sps:$4 sm:$0xff]  }
 0xbc0   : > { %v7253_v13 = vpop.permute.xlu1 %7252 }
 0xbc1   : > { %v7255_v16 = vunpack.i.h.bf16 %v7253_v13  ;;  %v7254_v18 = vunpack.i.l.bf16 %v7253_v13  ;;  %v7360_v13 = vld [vmem:[%s9947_s13 + $0x20] ss:$16 sps:$4 sm:$0xff]  }
 0xbc2   : > { %v7653_v58 = vpop.eup %7652 }
 0xbc3   : > { %v1847_v60 = vmul.f32 %v7653_v58, %v7649_v49  ;;  %v1924_v24 = vsel %vm1923_vm3, %v1921_v21, %v7254_v18  ;;  %v1925_v26 = vsel %vm1923_vm3, %v1922_v20, %v7255_v16  ;;  %v7333_v58 = vld [vmem:[%s9947_s13 + $0xc8] ss:$16 sps:$4 sm:$0xff]   ;;  %v7371_v16 = vld [vmem:[%s9947_s13 + $0xc] ss:$16 sps:$4 sm:$0xff]   ;;  %v7366_v18 = vld [vmem:[%s9947_s13] ss:$16 sps:$4 sm:$0xff]  }
 0xbc6   : > { %v7655_v59 = vpop.eup %7654 }
 0xbc7   : > { %v1848_v61 = vmul.f32 %v7655_v59, %v7651_v53  ;;  %v7338_v59 = vld [vmem:[%s9947_s13 + $0xa4] ss:$16 sps:$4 sm:$0xff]  }
 0xbc9   : > { %v1849_v62 = vpack.c.bf16 %v1848_v61, %v1847_v60  ;;  %v7341_v60 = vld [vmem:[%s9947_s13 + $0xac] ss:$16 sps:$4 sm:$0xff]   ;;  %v7336_v61 = vld [vmem:[%s9947_s13 + $0xa0] ss:$16 sps:$4 sm:$0xff]  }
 0xbcb   : > { %6966 = vmatmul.mubr.msk.bf16.vlgmr.msra.gmra.mxu1 %vm1457_vm2, %v1849_v62  ;;  %v7339_v62 = vld [vmem:[%s9947_s13 + $0xa8] ss:$16 sps:$4 sm:$0xff]  }
 0xbcc   : > { %2333 = vmatprep.mubr.bf16.mxu1 %v8139_v47 }
 0xc8b   : > { %v1890_v4 = vpop.f32.mrf.mxu1 }
 0xc8d   : > { %v6967_v6 = vpop.f32.mrf.mxu1 }
 0xc8e   : > { %v7359_v6 = vld [vmem:[%s9947_s13 + $0x4c] ss:$16 sps:$4 sm:$0xff]  }
 0xc8f   : > { %v1893_v8 = vpop.f32.mrf.mxu1 }
 0xc90   : > { %v7256_v9 = vpack.i.bf16 %v1893_v8, %v1890_v4  ;;  %v7356_v4 = vld [vmem:[%s9947_s13 + $0x44] ss:$16 sps:$4 sm:$0xff]   ;;  %v7354_v8 = vld [vmem:[%s9947_s13 + $0x40] ss:$16 sps:$4 sm:$0xff]  }
 0xc91   : > { %v6968_v10 = vpop.f32.mrf.mxu1 }
 0xc92   : > { %7257 = vrot.lane.b32.xlu1 %v7256_v9, %s9978_s10  ;;  %v7357_v9 = vld [vmem:[%s9947_s13 + $0x48] ss:$16 sps:$4 sm:$0xff]   ;;  %v7362_v10 = vld [vmem:[%s9947_s13 + $0x24] ss:$16 sps:$4 sm:$0xff]   ;;  %s10031_s10 = sld [smem:[#allocation39_spill]] }
 0xd04   : > { %v7258_v19 = vpop.permute.xlu1 %7257 }
 0xd05   : > { %v7260_v29 = vunpack.i.h.bf16 %v7258_v19  ;;  %v7259_v23 = vunpack.i.l.bf16 %v7258_v19  ;;  %v7369_v19 = vld [vmem:[%s9947_s13 + $0x8] ss:$16 sps:$4 sm:$0xff]  }
 0xd07   : > { %v1928_v27 = vsel %vm1926_vm4, %v1925_v26, %v7260_v29  ;;  %v1927_v30 = vsel %vm1926_vm4, %v1924_v24, %v7259_v23 }
 0xd08   : > { %v1945_v31 = vpack.c.bf16 %v1928_v27, %v1927_v30 }
 0xd0a   : > { %6986 = vmatmul.mubr.bf16.vlgmr.msra.gmra.mxu0 %v1945_v31  ;;  %v6206_v31 = vld [vmem:[%s10025_s0] ss:$0 sm:$0xff] }
 0xd0b   : > { %2376 = vmatprep.mubr.bf16.mxu0 %v8139_v47 }
 0xdca   : > { %v2028_v32 = vpop.f32.mrf.mxu0 }
 0xdcb   : > { %v2035_v5 = vadd.f32 %v2028_v32, %v8499_v17  ;;  %v7326_v17 = vld [vmem:[%s9947_s13 + $0xe4] ss:$16 sps:$4 sm:$0xff]  }
 0xdcc   : > { %v6987_v33 = vpop.f32.mrf.mxu0  ;;  %2301 = vmatprep.subr.bf16.mxu1 %v7326_v17  ;;  %v7372_v17 = vld [vmem:[%s9949_s15 + $0x78] sm:$0xff]  }
 0xdcd   : > { %v8742_v34 = vadd.f32 %v6205_v7, %v2035_v5  ;;  %2302 = vmatpush1.bf16.msra.mxu1 %v7324_v41  ;;  %v6207_v33 = vld [vmem:[%s9946_s12] ss:$0 sm:$0xff] }
 0xdce   : > { %v2031_v35 = vpop.f32.mrf.mxu0  ;;  %2303 = vmatprep.subr.bf16.mxu1 %v7332_v55  ;;  %v7383_v55 = vld [vmem:[%s9949_s15 + $0xa8] sm:$0xff]  }
 0xdcf   : > { %v2036_v36 = vadd.f32 %v2031_v35, %v8505_v22  ;;  %2048 = vadd.xlane.f32.xlu0 %v8742_v34  ;;  %v7329_v22 = vld [vmem:[%s9947_s13 + $0xec] ss:$16 sps:$4 sm:$0xff]  }
 0xdd0   : > { %v6988_v39 = vpop.f32.mrf.mxu0  ;;  %2344 = vmatprep.subr.bf16.mxu0 %v7329_v22  ;;  %v7374_v22 = vld [vmem:[%s9949_s15 + $0x38] sm:$0xff]  }
 0xdd1   : > { %v8746_v40 = vadd.f32 %v6205_v7, %v2036_v36  ;;  %2345 = vmatpush1.bf16.msra.mxu0 %v7327_v42  ;;  %2304 = vmatpush1.bf16.msra.mxu1 %v7330_v57  ;;  %v7373_v42 = vld [vmem:[%s9949_s15 + $0xf8] sm:$0xff]   ;;  %v7385_v57 = vld [vmem:[%s9949_s15 + $0xe0] sm:$0xff]  }
 0xdd2   : > { %2346 = vmatprep.subr.bf16.mxu0 %v7335_v56  ;;  %2305 = vmatprep.subr.bf16.mxu1 %v7338_v59  ;;  %v7384_v56 = vld [vmem:[%s9949_s15 + $0x60] sm:$0xff]  }
 0xdd3   : > { %2050 = vadd.xlane.f32.xlu1 %v8746_v40  ;;  %v7387_v59 = vld [vmem:[%s9949_s15 + $0xa0] sm:$0xff]  }
 0xdd5   : > { %2347 = vmatpush1.bf16.msra.mxu0 %v7333_v58  ;;  %2306 = vmatpush1.bf16.msra.mxu1 %v7336_v61  ;;  %v7386_v58 = vld [vmem:[%s9949_s15 + $0x20] sm:$0xff]   ;;  %v7389_v61 = vld [vmem:[%s9949_s15 + $0xd8] sm:$0xff]  }
 0xdd6   : > { %2348 = vmatprep.subr.bf16.mxu0 %v7341_v60  ;;  %2307 = vmatprep.subr.bf16.mxu1 %v7344_v38  ;;  %v7388_v60 = vld [vmem:[%s9949_s15 + $0x58] sm:$0xff]   ;;  %v7392_v38 = vld [vmem:[%s9949_s15 + $0x50] sm:$0xff]  }
 0xdd9   : > { %2349 = vmatpush1.bf16.msra.mxu0 %v7339_v62  ;;  %2308 = vmatpush1.bf16.msra.mxu1 %v7342_v48  ;;  %v7390_v62 = vld [vmem:[%s9949_s15 + $0x18] sm:$0xff]  }
 0xdda   : > { %2350 = vmatprep.subr.bf16.mxu0 %v7347_v51  ;;  %2309 = vmatprep.subr.bf16.mxu1 %v7350_v63  ;;  %v7391_v48 = vld [vmem:[%s9949_s15 + $0x98] sm:$0xff]   ;;  %v7394_v51 = vld [vmem:[%s9949_s15 + $0x10] sm:$0xff]  }
 0xddb   : > { %v7395_v63 = vld [vmem:[%s9949_s15 + $0x90] sm:$0xff]  }
 0xddd   : > { %2351 = vmatpush1.bf16.msra.mxu0 %v7345_v50  ;;  %2310 = vmatpush1.bf16.msra.mxu1 %v7348_v2  ;;  %v7393_v50 = vld [vmem:[%s9949_s15 + $0xd0] sm:$0xff]   ;;  %v7397_v2 = vld [vmem:[%s9949_s15 + $0xc8] sm:$0xff]  }
 0xdde   : > { %2352 = vmatprep.subr.bf16.mxu0 %v7353_v1  ;;  %2311 = vmatprep.subr.bf16.mxu1 %v7356_v4  ;;  %v7396_v1 = vld [vmem:[%s9949_s15 + $0x48] sm:$0xff]  }
 0xddf   : > { %v7399_v4 = vld [vmem:[%s9949_s15 + $0x88] sm:$0xff]  }
 0xde1   : > { %2353 = vmatpush1.bf16.msra.mxu0 %v7351_v3  ;;  %2312 = vmatpush1.bf16.msra.mxu1 %v7354_v8  ;;  %v7398_v3 = vld [vmem:[%s9949_s15 + $0x8] sm:$0xff]   ;;  %v7401_v8 = vld [vmem:[%s9949_s15 + $0xc0] sm:$0xff]  }
 0xde2   : > { %2354 = vmatprep.subr.bf16.mxu0 %v7359_v6  ;;  %2313 = vmatprep.subr.bf16.mxu1 %v7362_v10  ;;  %v7400_v6 = vld [vmem:[%s9949_s15 + $0x40] sm:$0xff]  }
 0xde3   : > { %v7403_v10 = vld [vmem:[%s9949_s15 + $0x80] sm:$0xff]  }
 0xde5   : > { %2355 = vmatpush1.bf16.msra.mxu0 %v7357_v9  ;;  %2314 = vmatpush1.bf16.msra.mxu1 %v7360_v13  ;;  %v7402_v9 = vld [vmem:[%s9949_s15] sm:$0xff]   ;;  %v8964_v13 = vsub.s32 3, %v8612_v11 }
 0xde6   : > { %2356 = vmatprep.subr.bf16.mxu0 %v7365_v37  ;;  %2315 = vmatprep.subr.bf16.mxu1 %v7368_v15  ;;  %v2119_v37 = vld [vmem:[%s9948_s14] sm:$0xf] }
 0xde7   : > { %v2132_v15 = vrot.slane %v2119_v37, %v8625_v28 }
 0xde9   : > { %2357 = vmatpush1.bf16.msra.mxu0 %v7363_v14  ;;  %2316 = vmatpush1.bf16.msra.mxu1 %v7366_v18  ;;  %v2124_v14 = vrot.slane %v2119_v37, %v8622_v25 }
 0xdea   : > { %2358 = vmatprep.subr.bf16.mxu0 %v7371_v16  ;;  %6697 = vmatprep.subr.bf16.mxu1 %v7372_v17 }
 0xded   : > { %2359 = vmatpush1.bf16.msra.mxu0 %v7369_v19  ;;  %v2128_v19 = vrot.slane %v2119_v37, %v8615_v12 }
 0xdee   : > { %6719 = vmatprep.subr.bf16.mxu0 %v7373_v42 }
 0xe58   : > { %v2049_v43 = vpop.xlane.xlu0 %2048 }
 0xe59   : > { %v2052_v44 = vmul.f32 0.0078125, %v2049_v43  ;;  %v7375_v43 = vld [vmem:[%s9949_s15 + $0xb8] sm:$0xff]  }
 0xe5b   : > { %v8762_v45 = vsub.f32 %v8742_v34, %v2052_v44  ;;  %v7376_v44 = vld [vmem:[%s9949_s15 + $0x70] sm:$0xff]  }
 0xe5c   : > { %v2051_v46 = vpop.xlane.xlu1 %2050 }
 0xe5d   : > { %v2053_v49 = vmul.f32 0.0078125, %v2051_v46  ;;  %v2056_v52 = vmul.f32 %v8762_v45, %v8762_v45  ;;  %v7378_v46 = vld [vmem:[%s9949_s15 + $0x30] sm:$0xff]  }
 0xe5f   : > { %v8767_v53 = vsub.f32 %v8746_v40, %v2053_v49  ;;  %2058 = vadd.xlane.f32.xlu0 %v2056_v52  ;;  %v7379_v49 = vld [vmem:[%s9949_s15 + $0xb0] sm:$0xff]   ;;  %v7380_v52 = vld [vmem:[%s9949_s15 + $0x68] sm:$0xff]  }
 0xe61   : > { %v2057_v54 = vmul.f32 %v8767_v53, %v8767_v53 }
 0xe63   : > { %2060 = vadd.xlane.f32.xlu0 %v2057_v54  ;;  %v7382_v54 = vld [vmem:[%s9949_s15 + $0x28] sm:$0xff]  }
 0xee8   : > { %v2059_v20 = vpop.xlane.xlu0 %2058 }
 0xee9   : > { %v2062_v21 = vmul.f32 0.0078125, %v2059_v20  ;;  %v2136_v20 = vrot.slane %v2119_v37, %v8964_v13 }
 0xeeb   : > { %v2064_v29 = vadd.f32 1e-05, %v2062_v21 }
 0xeec   : > { %v2061_v23 = vpop.xlane.xlu0 %2060 }
 0xeed   : > { %7656 = vrsqrt.f32 %v2064_v29  ;;  %v2063_v24 = vmul.f32 0.0078125, %v2061_v23 }
 0xeef   : > { %v2065_v26 = vadd.f32 1e-05, %v2063_v24 }
 0xef1   : > { %7658 = vrsqrt.f32 %v2065_v26 }
 0xefa   : > { %v7657_v27 = vpop.eup %7656 }
 0xefb   : > { %v2068_v30 = vmul.f32 %v7657_v27, %v8762_v45  ;;  %v7377_v45 = vld [vmem:[%s9949_s15 + $0xf0] sm:$0xff]  }
 0xefd   : > { %v2076_v5 = vmul.f32 %v6206_v31, %v2068_v30 }
 0xefe   : > { %v7659_v32 = vpop.eup %7658 }
 0xeff   : > { %v2069_v7 = vmul.f32 %v7659_v32, %v8767_v53  ;;  %v2084_v36 = vadd.f32 %v6207_v33, %v2076_v5  ;;  %v7381_v53 = vld [vmem:[%s9949_s15 + $0xe8] sm:$0xff]  }
 0xf01   : > { %v2077_v35 = vmul.f32 %v6206_v31, %v2069_v7 }
 0xf03   : > { %v2085_v39 = vadd.f32 %v6207_v33, %v2077_v35 }
 0xf05   : > { %v2118_v41 = vpack.c.bf16 %v2085_v39, %v2084_v36 }
 0xf07   : > { %2334 = vmatmul.mubr.bf16.vlgmr.msra.gmra.mxu1 %v2118_v41  ;;  %2377 = vmatmul.mubr.bf16.vlgmr.msra.gmra.mxu0 %v2118_v41 }
 0xf08   : > { %6698 = vmatpush3.bf16.msra.mxu1 %v7374_v22  ;;  %6720 = vmatpush3.bf16.msra.mxu0 %v7375_v43 }
 0xf09   : > { %6699 = vmatprep.subr.bf16.mxu1 %v7376_v44  ;;  %6721 = vmatprep.subr.bf16.mxu0 %v7377_v45 }
 0xf0c   : > { %6700 = vmatpush3.bf16.msra.mxu1 %v7378_v46  ;;  %6722 = vmatpush3.bf16.msra.mxu0 %v7379_v49 }
 0xf0d   : > { %6701 = vmatprep.subr.bf16.mxu1 %v7380_v52  ;;  %6723 = vmatprep.subr.bf16.mxu0 %v7381_v53 }
 0xf10   : > { %6702 = vmatpush3.bf16.msra.mxu1 %v7382_v54  ;;  %6724 = vmatpush3.bf16.msra.mxu0 %v7383_v55 }
 0xf11   : > { %6703 = vmatprep.subr.bf16.mxu1 %v7384_v56  ;;  %6725 = vmatprep.subr.bf16.mxu0 %v7385_v57 }
 0xf14   : > { %6704 = vmatpush3.bf16.msra.mxu1 %v7386_v58  ;;  %6726 = vmatpush3.bf16.msra.mxu0 %v7387_v59 }
 0xf15   : > { %6705 = vmatprep.subr.bf16.mxu1 %v7388_v60  ;;  %6727 = vmatprep.subr.bf16.mxu0 %v7389_v61 }
 0xf18   : > { %6706 = vmatpush3.bf16.msra.mxu1 %v7390_v62  ;;  %6728 = vmatpush3.bf16.msra.mxu0 %v7391_v48 }
 0xf19   : > { %6707 = vmatprep.subr.bf16.mxu1 %v7392_v38  ;;  %6729 = vmatprep.subr.bf16.mxu0 %v7393_v50 }
 0xf1c   : > { %6708 = vmatpush3.bf16.msra.mxu1 %v7394_v51  ;;  %6730 = vmatpush3.bf16.msra.mxu0 %v7395_v63 }
 0xf1d   : > { %6709 = vmatprep.subr.bf16.mxu1 %v7396_v1  ;;  %6731 = vmatprep.subr.bf16.mxu0 %v7397_v2 }
 0xf20   : > { %6710 = vmatpush3.bf16.msra.mxu1 %v7398_v3  ;;  %6732 = vmatpush3.bf16.msra.mxu0 %v7399_v4 }
 0xf21   : > { %6711 = vmatprep.subr.bf16.mxu1 %v7400_v6  ;;  %6733 = vmatprep.subr.bf16.mxu0 %v7401_v8 }
 0xf24   : > { %6712 = vmatpush3.bf16.msra.mxu1 %v7402_v9  ;;  %6734 = vmatpush3.bf16.msra.mxu0 %v7403_v10 }
 0xf25   : > { %6989 = vmatprep.subr.bf16.mxu0 %v8137_v0 }
 0xfc7   : > { %v2335_v16 = vpop.f32.mrf.mxu1  ;;  %v2378_v18 = vpop.f32.mrf.mxu0 }
 0xfc8   : > { %v8970_v21 = vadd.f32 %v2335_v16, %v2124_v14  ;;  %v8972_v29 = vadd.f32 %v2378_v18, %v2132_v15 }
 0xfc9   : > { %v2337_v23 = vpop.f32.mrf.mxu1  ;;  %v2380_v24 = vpop.f32.mrf.mxu0 }
 0xfca   : > { %v8975_v26 = vmul.f32 0.70710677, %v8970_v21  ;;  %v8978_v11 = vmul.f32 0.70710677, %v8972_v29  ;;  %v8980_v27 = vadd.f32 %v2337_v23, %v2128_v19  ;;  %v8982_v30 = vadd.f32 %v2380_v24, %v2136_v20 }
 0xfcb   : > { %v2339_v36 = vpop.f32.mrf.mxu1  ;;  %v2382_v45 = vpop.f32.mrf.mxu0 }
 0xfcc   : > { %v2403_v31 = vand.u32 2147483647, %v8975_v26  ;;  %v2405_v32 = vand.u32 2147483647, %v8978_v11  ;;  %v8987_v7 = vmul.f32 0.70710677, %v8980_v27  ;;  %v8994_v44 = vadd.f32 %v2339_v36, %v2124_v14 }
 0xfcd   : > { %v8990_v5 = vmul.f32 0.70710677, %v8982_v30  ;;  %v2341_v46 = vpop.f32.mrf.mxu1  ;;  %v8999_v54 = vadd.f32 %v2382_v45, %v2132_v15  ;;  %v2384_v57 = vpop.f32.mrf.mxu0  ;;  %vm2563_vm6 = vcmp.ge.f32.partialorder %v8975_v26, 0.0  ;;  %vm2565_vm8 = vcmp.ge.f32.partialorder %v8978_v11, 0.0 }
 0xfce   : > { %v2411_v33 = vmul.f32 0.3275911, %v2403_v31  ;;  %v2413_v35 = vmul.f32 0.3275911, %v2405_v32  ;;  %v2404_v39 = vand.u32 2147483647, %v8987_v7  ;;  %v9001_v55 = vadd.f32 %v2341_v46, %v2128_v19 }
 0xfcf   : > { %v2406_v41 = vand.u32 2147483647, %v8990_v5  ;;  %v8997_v53 = vmul.f32 0.70710677, %v8994_v44  ;;  %v9005_v58 = vmul.f32 0.70710677, %v8999_v54  ;;  %v9011_v62 = vadd.f32 %v2384_v57, %v2136_v20 }
 0xfd0   : > { %v2419_v17 = vadd.f32 1.0, %v2411_v33  ;;  %v2421_v42 = vadd.f32 1.0, %v2413_v35  ;;  %v2412_v22 = vmul.f32 0.3275911, %v2404_v39  ;;  %v9008_v60 = vmul.f32 0.70710677, %v9001_v55 }
 0xfd1   : > { %v2414_v43 = vmul.f32 0.3275911, %v2406_v41  ;;  %v2407_v56 = vand.u32 2147483647, %v8997_v53  ;;  %v2409_v61 = vand.u32 2147483647, %v9005_v58 }
 0xfd2   : > { %7660 = vrcp.f32 %v2419_v17  ;;  %v2420_v49 = vadd.f32 1.0, %v2412_v22  ;;  %v2515_v48 = vsub.f32 0.0, %v2403_v31  ;;  %v2408_v50 = vand.u32 2147483647, %v9008_v60 }
 0xfd3   : > { %7662 = vrcp.f32 %v2421_v42  ;;  %v2422_v52 = vadd.f32 1.0, %v2414_v43  ;;  %v2415_v59 = vmul.f32 0.3275911, %v2407_v56  ;;  %v2417_v51 = vmul.f32 0.3275911, %v2409_v61 }
 0xfd4   : > { %7664 = vrcp.f32 %v2420_v49  ;;  %v9015_v63 = vmul.f32 0.70710677, %v9011_v62  ;;  %v2517_v1 = vsub.f32 0.0, %v2405_v32  ;;  %v2416_v2 = vmul.f32 0.3275911, %v2408_v50 }
 0xfd5   : > { %7666 = vrcp.f32 %v2422_v52  ;;  %v2423_v38 = vadd.f32 1.0, %v2415_v59  ;;  %v2516_v3 = vsub.f32 0.0, %v2404_v39  ;;  %v2425_v4 = vadd.f32 1.0, %v2417_v51 }
 0xfd6   : > { %v9018_v6 = vand.u32 2147483647, %v9015_v63  ;;  %v2523_v8 = vmul.f32 %v2515_v48, %v2403_v31  ;;  %v2424_v9 = vadd.f32 1.0, %v2416_v2  ;;  %v2518_v37 = vsub.f32 0.0, %v2406_v41 }
 0xfd7   : > { %7668 = vrcp.f32 %v2423_v38  ;;  %v2525_v18 = vmul.f32 %v2517_v1, %v2405_v32  ;;  %v2524_v20 = vmul.f32 %v2516_v3, %v2404_v39  ;;  %v2519_v23 = vsub.f32 0.0, %v2407_v56 }
 0xfd8   : > { %7670 = vrcp.f32 %v2425_v4  ;;  %v2418_v14 = vmul.f32 0.3275911, %v9018_v6  ;;  %v2531_v31 = vmul.f32 1.442695, %v2523_v8  ;;  %v2526_v17 = vmul.f32 %v2518_v37, %v2406_v41 }
 0xfd9   : > { %7672 = vrcp.f32 %v2424_v9  ;;  %v2521_v42 = vsub.f32 0.0, %v2409_v61  ;;  %v2535_v43 = vmul.f32 1.442695, %v2525_v18  ;;  %v2533_v39 = vmul.f32 1.442695, %v2524_v20 }
 0xfda   : > { %v2426_v24 = vadd.f32 1.0, %v2418_v14  ;;  %v2527_v49 = vmul.f32 %v2519_v23, %v2407_v56  ;;  %v2520_v52 = vsub.f32 0.0, %v2408_v50  ;;  %v2537_v38 = vmul.f32 1.442695, %v2526_v17 }
 0xfdb   : > { %v2529_v51 = vmul.f32 %v2521_v42, %v2409_v61  ;;  %vm2567_vm5 = vcmp.ge.f32.partialorder %v8997_v53, 0.0  ;;  %vm2564_vm7 = vcmp.ge.f32.partialorder %v8987_v7, 0.0  ;;  %vm2566_vm9 = vcmp.ge.f32.partialorder %v8990_v5, 0.0 }
 0xfdc   : > { %7674 = vrcp.f32 %v2426_v24  ;;  %v2539_v56 = vmul.f32 1.442695, %v2527_v49  ;;  %v2528_v9 = vmul.f32 %v2520_v52, %v2408_v50  ;;  %vm2569_vm10 = vcmp.ge.f32.partialorder %v9005_v58, 0.0 }
 0xfdd   : > { %7676 = vpow2.f32 %v2531_v31  ;;  %v2543_v61 = vmul.f32 1.442695, %v2529_v51  ;;  %vm2568_vm11 = vcmp.ge.f32.partialorder %v9008_v60, 0.0  ;;  %v2387_v5 = vmul.f32 0.5, %v8970_v21 }
 0xfde   : > { %7678 = vpow2.f32 %v2535_v43  ;;  %vm2570_vm12 = vcmp.ge.f32.partialorder %v9015_v63, 0.0  ;;  %v2394_v11 = vmul.f32 0.5, %v9011_v62 }
 0xfdf   : > { %v9020_v10 = vpop.eup %7660  ;;  %7680 = vpow2.f32 %v2533_v39 }
 0xfe0   : > { %v9023_v15 = vpop.eup %7662  ;;  %v2443_v16 = vmul.f32 1.0614054, %v9020_v10  ;;  %7682 = vpow2.f32 %v2537_v38 }
 0xfe1   : > { %v2445_v19 = vmul.f32 1.0614054, %v9023_v15  ;;  %v9027_v35 = vpop.eup %7664  ;;  %7684 = vpow2.f32 %v2539_v56 }
 0xfe2   : > { %v6240_v33 = vadd.f32 -1.4531521, %v2443_v16  ;;  %v2444_v45 = vmul.f32 1.0614054, %v9027_v35  ;;  %v9031_v32 = vpop.eup %7666  ;;  %7686 = vpow2.f32 %v2543_v61 }
 0xfe3   : > { %v6242_v36 = vadd.f32 -1.4531521, %v2445_v19  ;;  %v2446_v48 = vmul.f32 1.0614054, %v9031_v32  ;;  %v2522_v19 = vsub.f32 0.0, %v9018_v6 }
 0xfe4   : > { %v2459_v22 = vmul.f32 %v9020_v10, %v6240_v33  ;;  %v6241_v59 = vadd.f32 -1.4531521, %v2444_v45  ;;  %v9037_v4 = vpop.eup %7668  ;;  %v2541_v45 = vmul.f32 1.442695, %v2528_v9 }
 0xfe5   : > { %v2461_v46 = vmul.f32 %v9023_v15, %v6242_v36  ;;  %v6243_v3 = vadd.f32 -1.4531521, %v2446_v48  ;;  %v2447_v18 = vmul.f32 1.0614054, %v9037_v4  ;;  %v9043_v20 = vpop.eup %7670  ;;  %v2530_v49 = vmul.f32 %v2522_v19, %v9018_v6 }
 0xfe6   : > { %v2467_v57 = vadd.f32 1.4214138, %v2459_v22  ;;  %v2460_v2 = vmul.f32 %v9027_v35, %v6241_v59  ;;  %v9047_v36 = vpop.eup %7672  ;;  %v2449_v17 = vmul.f32 1.0614054, %v9043_v20  ;;  %7688 = vpow2.f32 %v2541_v45 }
 0xfe7   : > { %v2469_v41 = vadd.f32 1.4214138, %v2461_v46  ;;  %v2462_v16 = vmul.f32 %v9031_v32, %v6243_v3  ;;  %v6244_v31 = vadd.f32 -1.4531521, %v2447_v18  ;;  %v2448_v39 = vmul.f32 1.0614054, %v9047_v36 }
 0xfe8   : > { %v2475_v1 = vmul.f32 %v9020_v10, %v2467_v57  ;;  %v2468_v14 = vadd.f32 1.4214138, %v2460_v2  ;;  %v6246_v46 = vadd.f32 -1.4531521, %v2449_v17 }
 0xfe9   : > { %v2477_v8 = vmul.f32 %v9023_v15, %v2469_v41  ;;  %v2470_v33 = vadd.f32 1.4214138, %v2462_v16  ;;  %v2463_v43 = vmul.f32 %v9037_v4, %v6244_v31  ;;  %v9054_v52 = vpop.eup %7674 }
 0xfea   : > { %v6248_v37 = vadd.f32 -0.28449672, %v2475_v1  ;;  %v2476_v24 = vmul.f32 %v9027_v35, %v2468_v14  ;;  %v2465_v51 = vmul.f32 %v9043_v20, %v6246_v46  ;;  %v6245_v1 = vadd.f32 -1.4531521, %v2448_v39  ;;  %v7677_v16 = vpop.eup %7676 }
 0xfeb   : > { %v6250_v50 = vadd.f32 -0.28449672, %v2477_v8  ;;  %v2478_v22 = vmul.f32 %v9031_v32, %v2470_v33  ;;  %v2471_v41 = vadd.f32 1.4214138, %v2463_v43  ;;  %v2450_v2 = vmul.f32 1.0614054, %v9054_v52 }
 0xfec   : > { %v2491_v23 = vmul.f32 %v9020_v10, %v6248_v37  ;;  %v6249_v42 = vadd.f32 -0.28449672, %v2476_v24  ;;  %v2473_v6 = vadd.f32 1.4214138, %v2465_v51  ;;  %v2464_v9 = vmul.f32 %v9047_v36, %v6245_v1  ;;  %v7679_v24 = vpop.eup %7678 }
 0xfed   : > { %v6251_v48 = vadd.f32 -0.28449672, %v2478_v22  ;;  %v2493_v38 = vmul.f32 %v9023_v15, %v6250_v50  ;;  %v2479_v56 = vmul.f32 %v9037_v4, %v2471_v41  ;;  %v6247_v37 = vadd.f32 -1.4531521, %v2450_v2 }
 0xfee   : > { %v2499_v57 = vadd.f32 0.2548296, %v2491_v23  ;;  %v2492_v59 = vmul.f32 %v9027_v35, %v6249_v42  ;;  %v2545_v14 = vmul.f32 1.442695, %v2530_v49  ;;  %v2481_v31 = vmul.f32 %v9043_v20, %v2473_v6  ;;  %v7681_v42 = vpop.eup %7680 }
 0xfef   : > { %v2494_v8 = vmul.f32 %v9031_v32, %v6251_v48  ;;  %v6252_v23 = vadd.f32 -0.28449672, %v2479_v56  ;;  %v2501_v33 = vadd.f32 0.2548296, %v2493_v38  ;;  %v2472_v50 = vadd.f32 1.4214138, %v2464_v9 }
 0xff0   : > { %v2500_v3 = vadd.f32 0.2548296, %v2492_v59  ;;  %v2507_v18 = vmul.f32 %v9020_v10, %v2499_v57  ;;  %v2466_v17 = vmul.f32 %v9054_v52, %v6247_v37  ;;  %v6254_v45 = vadd.f32 -0.28449672, %v2481_v31  ;;  %v7683_v10 = vpop.eup %7682 }
 0xff1   : > { %v2502_v19 = vadd.f32 0.2548296, %v2494_v8  ;;  %v2495_v22 = vmul.f32 %v9037_v4, %v6252_v23  ;;  %v2480_v46 = vmul.f32 %v9047_v36, %v2472_v50  ;;  %7690 = vpow2.f32 %v2545_v14  ;;  %v7685_v38 = vpop.eup %7684 }
 0xff2   : > { %v2508_v61 = vmul.f32 %v9027_v35, %v2500_v3  ;;  %v2474_v39 = vadd.f32 1.4214138, %v2466_v17  ;;  %v2547_v49 = vmul.f32 %v7677_v16, %v2507_v18  ;;  %v2509_v59 = vmul.f32 %v9023_v15, %v2501_v33  ;;  %v7687_v56 = vpop.eup %7686 }
 0xff3   : > { %v2510_v35 = vmul.f32 %v9031_v32, %v2502_v19  ;;  %v2503_v57 = vadd.f32 0.2548296, %v2495_v22  ;;  %v2497_v48 = vmul.f32 %v9043_v20, %v6254_v45  ;;  %v6253_v41 = vadd.f32 -0.28449672, %v2480_v46 }
 0xff4   : > { %v2548_v43 = vmul.f32 %v7681_v42, %v2508_v61  ;;  %v2482_v8 = vmul.f32 %v9054_v52, %v2474_v39  ;;  %v2555_v6 = vsub.f32 1.0, %v2547_v49  ;;  %v2549_v37 = vmul.f32 %v7679_v24, %v2509_v59  ;;  %v7689_v61 = vpop.eup %7688 }
 0xff5   : > { %v2511_v51 = vmul.f32 %v9037_v4, %v2503_v57  ;;  %v2505_v2 = vadd.f32 0.2548296, %v2497_v48  ;;  %v2496_v3 = vmul.f32 %v9047_v36, %v6253_v41  ;;  %v2550_v9 = vmul.f32 %v7683_v10, %v2510_v35 }
 0xff6   : > { %v2556_v1 = vsub.f32 1.0, %v2548_v43  ;;  %v6255_v16 = vadd.f32 -0.28449672, %v2482_v8  ;;  %v2571_v33 = vsub.f32 0.0, %v2555_v6  ;;  %v2557_v42 = vsub.f32 1.0, %v2549_v37 }
 0xff7   : > { %v2551_v32 = vmul.f32 %v7685_v38, %v2511_v51  ;;  %v2513_v14 = vmul.f32 %v9043_v20, %v2505_v2  ;;  %v2504_v15 = vadd.f32 0.2548296, %v2496_v3  ;;  %v2558_v31 = vsub.f32 1.0, %v2550_v9 }
 0xff8   : > { %v2572_v19 = vsub.f32 0.0, %v2556_v1  ;;  %v2498_v17 = vmul.f32 %v9054_v52, %v6255_v16  ;;  %v2579_v39 = vsel %vm2563_vm6, %v2555_v6, %v2571_v33  ;;  %v2388_v10 = vmul.f32 0.5, %v8980_v27 }
 0xff9   : > { %v2559_v18 = vsub.f32 1.0, %v2551_v32  ;;  %v2553_v23 = vmul.f32 %v7687_v56, %v2513_v14  ;;  %v2512_v4 = vmul.f32 %v9047_v36, %v2504_v15  ;;  %v2574_v49 = vsub.f32 0.0, %v2558_v31 }
 0xffa   : > { %v2506_v43 = vadd.f32 0.2548296, %v2498_v17  ;;  %v2580_v45 = vsel %vm2564_vm7, %v2556_v1, %v2572_v19  ;;  %v2573_v57 = vsub.f32 0.0, %v2557_v42  ;;  %v2587_v41 = vadd.f32 1.0, %v2579_v39 }
 0xffb   : > { %v2575_v50 = vsub.f32 0.0, %v2559_v18  ;;  %v2561_v22 = vsub.f32 1.0, %v2553_v23  ;;  %v2552_v24 = vmul.f32 %v7689_v61, %v2512_v4  ;;  %v2588_v7 = vadd.f32 1.0, %v2580_v45 }
 0xffc   : > { %v2514_v35 = vmul.f32 %v9054_v52, %v2506_v43  ;;  %v2391_v38 = vmul.f32 0.5, %v8994_v44  ;;  %v2582_v1 = vsel %vm2566_vm9, %v2558_v31, %v2574_v49  ;;  %v2392_v52 = vmul.f32 0.5, %v9001_v55 }
 0xffd   : > { %v2583_v20 = vsel %vm2567_vm5, %v2559_v18, %v2575_v50  ;;  %v2577_v36 = vsub.f32 0.0, %v2561_v22  ;;  %v2560_v46 = vsub.f32 1.0, %v2552_v24  ;;  %v2581_v8 = vsel %vm2565_vm8, %v2557_v42, %v2573_v57  ;;  %v7404_v57 = vld [vmem:[%s10020_s8 + $0x168] ss:$12 sps:$4 sm:$0xff]  }
 0xffe   : > { %v7691_v53 = vpop.eup %7690  ;;  %v2591_v26 = vadd.f32 1.0, %v2583_v20  ;;  %v2596_v58 = vmul.f32 %v2588_v7, %v2388_v10  ;;  %v2595_v32 = vmul.f32 %v2587_v41, %v2387_v5  ;;  %v2590_v37 = vadd.f32 1.0, %v2582_v1  ;;  %v7410_v1 = vld [vmem:[%s10020_s8 + $0x154] ss:$12 sps:$4 sm:$0xff]   ;;  %v7412_v5 = vld [vmem:[%s10020_s8 + $0x138] ss:$12 sps:$4 sm:$0xff]  }
 0xfff   : > { %v2576_v59 = vsub.f32 0.0, %v2560_v46  ;;  %v2554_v48 = vmul.f32 %v7691_v53, %v2514_v35  ;;  %v2585_v51 = vsel %vm2569_vm10, %v2561_v22, %v2577_v36  ;;  %v2589_v44 = vadd.f32 1.0, %v2581_v8  ;;  %v6288_v36 = vld [vmem:[#allocation4] ss:$0 sm:$0xff] }
0x1000   : > { %v2599_v56 = vmul.f32 %v2591_v26, %v2391_v38  ;;  %v2593_v6 = vadd.f32 1.0, %v2585_v51  ;;  %v2393_v14 = vmul.f32 0.5, %v8999_v54  ;;  %v2390_v16 = vmul.f32 0.5, %v8982_v30  ;;  %v7407_v26 = vld [vmem:[%s10020_s8 + $0x170] ss:$12 sps:$4 sm:$0xff]  }
0x1001   : > { %v2584_v27 = vsel %vm2568_vm11, %v2560_v46, %v2576_v59  ;;  %v2562_v3 = vsub.f32 1.0, %v2554_v48  ;;  %v2389_v61 = vmul.f32 0.5, %v8972_v29  ;;  %v7415_v8 = vld [vmem:[%s10020_s8 + $0x140] ss:$12 sps:$4 sm:$0xff]  }
0x1002   : > { %v2592_v2 = vadd.f32 1.0, %v2584_v27  ;;  %v2667_v21 = vpack.c.bf16 %v2599_v56, %v2595_v32  ;;  %v2601_v19 = vmul.f32 %v2593_v6, %v2393_v14  ;;  %v2598_v23 = vmul.f32 %v2590_v37, %v2390_v16  ;;  %v7416_v56 = vld [vmem:[%s10020_s8 + $0x120] ss:$12 sps:$4 sm:$0xff]   ;;  %v7419_v6 = vld [vmem:[%s10020_s8 + $0x128] ss:$12 sps:$4 sm:$0xff]  }
0x1003   : > { %v2578_v9 = vsub.f32 0.0, %v2562_v3  ;;  %v2597_v33 = vmul.f32 %v2589_v44, %v2389_v61  ;;  %v7423_v32 = vld [vmem:[%s10020_s8 + $0x110] ss:$12 sps:$4 sm:$0xff]   ;;  %v7426_v37 = vld [vmem:[%s10020_s8 + $0xf4] ss:$12 sps:$4 sm:$0xff]  }
0x1004   : > { %v2600_v60 = vmul.f32 %v2592_v2, %v2392_v52  ;;  %v7408_v52 = vld [vmem:[%s10020_s8 + $0x150] ss:$12 sps:$4 sm:$0xff]   ;;  %v7411_v2 = vld [vmem:[%s10020_s8 + $0x158] ss:$12 sps:$4 sm:$0xff]   ;;  %v7431_v16 = vld [vmem:[%s10020_s8 + $0xe0] ss:$12 sps:$4 sm:$0xff]  }
0x1005   : > { %v2586_v55 = vsel %vm2570_vm12, %v2562_v3, %v2578_v9  ;;  %v2669_v54 = vpack.c.bf16 %v2601_v19, %v2597_v33  ;;  %v7414_v3 = vld [vmem:[%s10020_s8 + $0x13c] ss:$12 sps:$4 sm:$0xff]   ;;  %v7427_v14 = vld [vmem:[%s10020_s8 + $0xf8] ss:$12 sps:$4 sm:$0xff]  }
0x1006   : > { %v2668_v15 = vpack.c.bf16 %v2600_v60, %v2596_v58  ;;  %v2594_v18 = vadd.f32 1.0, %v2586_v55  ;;  %v7418_v58 = vld [vmem:[%s10020_s8 + $0x124] ss:$12 sps:$4 sm:$0xff]   ;;  %v7422_v60 = vld [vmem:[%s10020_s8 + $0x10c] ss:$12 sps:$4 sm:$0xff]  }
0x1007   : > { %v7420_v9 = vld [vmem:[%s10020_s8 + $0x108] ss:$12 sps:$4 sm:$0xff]   ;;  %v7424_v44 = vld [vmem:[%s10020_s8 + $0xf0] ss:$12 sps:$4 sm:$0xff]  }
0x1008   : > { %2895 = vmatprep.mubr.bf16.mxu1 %v2668_v15  ;;  %v2602_v4 = vmul.f32 %v2594_v18, %v2394_v11  ;;  %v7430_v55 = vld [vmem:[%s10020_s8 + $0xdc] ss:$12 sps:$4 sm:$0xff]   ;;  %v7428_v15 = vld [vmem:[%s10020_s8 + $0xd8] ss:$12 sps:$4 sm:$0xff]   ;;  %v7432_v11 = vld [vmem:[%s10020_s8 + $0xc0] ss:$12 sps:$4 sm:$0xff]  }
0x1009   : > { %2896 = vmatmul.mubr.bf16.vlgmr.msra.gmra.mxu1 %v2667_v21  ;;  %v7434_v21 = vld [vmem:[%s10020_s8 + $0xc4] ss:$12 sps:$4 sm:$0xff]   ;;  %v7435_v18 = vld [vmem:[%s10020_s8 + $0xc8] ss:$12 sps:$4 sm:$0xff]  }
0x100a   : > { %3210 = vmatprep.mubr.bf16.mxu1 %v8139_v47  ;;  %v2670_v63 = vpack.c.bf16 %v2602_v4, %v2598_v23 }
0x100c   : > { %2936 = vmatprep.mubr.bf16.mxu0 %v2670_v63 }
0x100d   : > { %2937 = vmatmul.mubr.bf16.vlgmr.msra.gmra.mxu0 %v2669_v54 }
0x100e   : > { %7005 = vmatprep.mubr.msk.bf16.mxu0 %vm8138_vm0, %v8137_v0  ;;  %6990 = vmatpush3.bf16.msra.mxu0 %v7407_v26 }
0x100f   : > { %6991 = vmatprep.subr.bf16.mxu0 %v8137_v0 }
0x1012   : > { %6992 = vmatpush3.bf16.msra.mxu0 %v7411_v2 }
0x1013   : > { %6993 = vmatprep.subr.bf16.mxu0 %v8137_v0 }
0x1016   : > { %6994 = vmatpush3.bf16.msra.mxu0 %v7415_v8 }
0x1017   : > { %6995 = vmatprep.subr.bf16.mxu0 %v8137_v0 }
0x101a   : > { %6996 = vmatpush3.bf16.msra.mxu0 %v7419_v6 }
0x101b   : > { %6997 = vmatprep.subr.bf16.mxu0 %v8137_v0 }
0x101e   : > { %6998 = vmatpush3.bf16.msra.mxu0 %v7423_v32 }
0x101f   : > { %6999 = vmatprep.subr.bf16.mxu0 %v8137_v0 }
0x1022   : > { %7000 = vmatpush3.bf16.msra.mxu0 %v7427_v14 }
0x1023   : > { %7001 = vmatprep.subr.bf16.mxu0 %v8137_v0 }
0x1026   : > { %7002 = vmatpush3.bf16.msra.mxu0 %v7431_v16 }
0x1027   : > { %7003 = vmatprep.subr.bf16.mxu0 %v8137_v0 }
0x102a   : > { %7004 = vmatpush3.bf16.msra.mxu0 %v7435_v18 }
0x102b   : > { %7033 = vmatprep.subr.bf16.mxu0 %v8137_v0 }
0x10c9   : > { %v6713_v30 = vpop.f32.mrf.mxu1 }
0x10cb   : > { %v6714_v62 = vpop.f32.mrf.mxu1 }
0x10cc   : > { %v6715_v29 = vadd.f32 %v6714_v62, %v6713_v30  ;;  %v6291_v62 = vld [vmem:[%s10021_s27 + $0x1] ss:$0 sm:$0xff] }
0x10cd   : > { %v6716_v31 = vpop.f32.mrf.mxu1  ;;  %v6735_v50 = vpop.f32.mrf.mxu0 }
0x10cf   : > { %v6736_v17 = vpop.f32.mrf.mxu0  ;;  %v6717_v42 = vpop.f32.mrf.mxu1 }
0x10d0   : > { %v6737_v22 = vadd.f32 %v6736_v17, %v6735_v50  ;;  %v6718_v43 = vadd.f32 %v6717_v42, %v6716_v31  ;;  %v6292_v17 = vld [vmem:[%s10022_s9 + $0x1] ss:$0 sm:$0xff] }
0x10d1   : > { %v6738_v24 = vpop.f32.mrf.mxu0 }
0x10d2   : > { %v2939_v20 = vadd.f32 %v6737_v22, %v6715_v29 }
0x10d3   : > { %v6739_v45 = vpop.f32.mrf.mxu0 }
0x10d4   : > { %v2945_v46 = vadd.f32 %v2939_v20, %v8742_v34  ;;  %v6740_v39 = vadd.f32 %v6739_v45, %v6738_v24  ;;  %v7406_v34 = vld [vmem:[%s10020_s8 + $0x16c] ss:$12 sps:$4 sm:$0xff]  }
0x10d5   : > { %3178 = vmatprep.subr.bf16.mxu1 %v7406_v34 }
0x10d6   : > { %v2942_v10 = vadd.f32 %v6740_v39, %v6718_v43  ;;  %v9101_v49 = vadd.f32 %v6288_v36, %v2945_v46  ;;  %3179 = vmatpush1.bf16.msra.mxu1 %v7404_v57 }
0x10d7   : > { %3180 = vmatprep.subr.bf16.mxu1 %v7410_v1 }
0x10d8   : > { %v2946_v35 = vadd.f32 %v2942_v10, %v8746_v40  ;;  %2960 = vadd.xlane.f32.xlu0 %v9101_v49 }
0x10da   : > { %v9105_v53 = vadd.f32 %v6288_v36, %v2946_v35  ;;  %3181 = vmatpush1.bf16.msra.mxu1 %v7408_v52  ;;  %v6325_v36 = vld [vmem:[%s10023_s6 + $0x3] sm:$0x7] }
0x10db   : > { %3182 = vmatprep.subr.bf16.mxu1 %v7414_v3  ;;  %v3042_v10 = vrot.slane %v6325_v36, %v8615_v12 }
0x10dc   : > { %2962 = vadd.xlane.f32.xlu1 %v9105_v53 }
0x10de   : > { %3183 = vmatpush1.bf16.msra.mxu1 %v7412_v5 }
0x10df   : > { %3184 = vmatprep.subr.bf16.mxu1 %v7418_v58 }
0x10e2   : > { %3185 = vmatpush1.bf16.msra.mxu1 %v7416_v56 }
0x10e3   : > { %3186 = vmatprep.subr.bf16.mxu1 %v7422_v60 }
0x10e6   : > { %3187 = vmatpush1.bf16.msra.mxu1 %v7420_v9 }
0x10e7   : > { %3188 = vmatprep.subr.bf16.mxu1 %v7426_v37 }
0x10ea   : > { %3189 = vmatpush1.bf16.msra.mxu1 %v7424_v44 }
0x10eb   : > { %3190 = vmatprep.subr.bf16.mxu1 %v7430_v55 }
0x10ee   : > { %3191 = vmatpush1.bf16.msra.mxu1 %v7428_v15 }
0x10ef   : > { %3192 = vmatprep.subr.bf16.mxu1 %v7434_v21 }
0x10f2   : > { %3193 = vmatpush1.bf16.msra.mxu1 %v7432_v11 }
0x10f3   : > { %7009 = vmatprep.subr.bf16.mxu1 %v8137_v0 }
0x1161   : > { %v2961_v40 = vpop.xlane.xlu0 %2960 }
0x1162   : > { %v2964_v59 = vmul.f32 0.0078125, %v2961_v40 }
0x1164   : > { %v9119_v7 = vsub.f32 %v9101_v49, %v2964_v59 }
0x1165   : > { %v2963_v48 = vpop.xlane.xlu1 %2962 }
0x1166   : > { %v2965_v41 = vmul.f32 0.0078125, %v2963_v48  ;;  %v2968_v38 = vmul.f32 %v9119_v7, %v9119_v7  ;;  %v3038_v48 = vrot.slane %v6325_v36, %v8622_v25 }
0x1168   : > { %v9124_v51 = vsub.f32 %v9105_v53, %v2965_v41  ;;  %2970 = vadd.xlane.f32.xlu0 %v2968_v38  ;;  %v3046_v38 = vrot.slane %v6325_v36, %v8625_v28 }
0x116a   : > { %v2969_v27 = vmul.f32 %v9124_v51, %v9124_v51 }
0x116c   : > { %2972 = vadd.xlane.f32.xlu1 %v2969_v27 }
0x11f1   : > { %v2971_v61 = vpop.xlane.xlu0 %2970 }
0x11f2   : > { %v2974_v19 = vmul.f32 0.0078125, %v2971_v61 }
0x11f4   : > { %v2976_v23 = vadd.f32 1e-05, %v2974_v19 }
0x11f5   : > { %v2973_v4 = vpop.xlane.xlu1 %2972 }
0x11f6   : > { %7692 = vrsqrt.f32 %v2976_v23  ;;  %v2975_v33 = vmul.f32 0.0078125, %v2973_v4 }
0x11f8   : > { %v2977_v63 = vadd.f32 1e-05, %v2975_v33 }
0x11fa   : > { %7694 = vrsqrt.f32 %v2977_v63 }
0x1203   : > { %v7693_v54 = vpop.eup %7692 }
0x1204   : > { %v2980_v30 = vmul.f32 %v7693_v54, %v9119_v7 }
0x1206   : > { %v2988_v29 = vmul.f32 %v6291_v62, %v2980_v30 }
0x1207   : > { %v7695_v31 = vpop.eup %7694 }
0x1208   : > { %v2981_v50 = vmul.f32 %v7695_v31, %v9124_v51  ;;  %v2996_v22 = vadd.f32 %v6292_v17, %v2988_v29 }
0x120a   : > { %v2989_v42 = vmul.f32 %v6291_v62, %v2981_v50 }
0x120c   : > { %v2997_v24 = vadd.f32 %v6292_v17, %v2989_v42 }
0x120e   : > { %v3031_v20 = vpack.c.bf16 %v2997_v24, %v2996_v22 }
0x1210   : > { %3211 = vmatmul.mubr.bf16.vlgmr.msra.gmra.mxu1 %v3031_v20  ;;  %7006 = vmatmul.mubr.bf16.vlgmr.msra.gmra.mxu0 %v3031_v20 }
0x1211   : > { %7011 = vmatprep.mubr.msk.bf16.mxu1 %vm8138_vm0, %v8137_v0  ;;  %7035 = vmatprep.mubr.msk.bf16.mxu0 %vm8138_vm0, %v8137_v0 }
0x12d0   : > { %v3212_v43 = vpop.f32.mrf.mxu1  ;;  %v3255_v45 = vpop.f32.mrf.mxu0 }
0x12d1   : > { %v3213_v1 = vadd.f32 %v3212_v43, %v3038_v48  ;;  %v3256_v52 = vadd.f32 %v3255_v45, %v3046_v38 }
0x12d2   : > { %v3214_v46 = vpop.f32.mrf.mxu1  ;;  %v7007_v39 = vpop.f32.mrf.mxu0 }
0x12d3   : > { %v3215_v40 = vadd.f32 %v3214_v46, %v3042_v10 }
0x12d4   : > { %v3216_v35 = vpop.f32.mrf.mxu1  ;;  %v3258_v57 = vpop.f32.mrf.mxu0 }
0x12d5   : > { %v3217_v51 = vadd.f32 %v3216_v35, %v3038_v48  ;;  %v3259_v27 = vadd.f32 %v3258_v57, %v3046_v38 }
0x12d6   : > { %v3218_v34 = vpop.f32.mrf.mxu1  ;;  %v7008_v26 = vpop.f32.mrf.mxu0 }
0x12d7   : > { %v3219_v59 = vadd.f32 %v3218_v34, %v3042_v10  ;;  %v3262_v2 = vpack.c.bf16 %v3217_v51, %v3213_v1  ;;  %v9219_v3 = vpack.c.bf16 %v3259_v27, %v3256_v52 }
0x12d9   : > { %v3263_v7 = vpack.c.bf16 %v3219_v59, %v3215_v40 }
0x12db   : > { %v3269_v41 = vsel %vm1407_vm1, %v3263_v7, 0 }
0x12dc   : > { %7010 = vmatpush3.bf16.xpose.msra.mxu1 %v3269_v41 }
0x12dd   : > { %7015 = vmatprep.subr.bf16.mxu1 %v8137_v0 }
0x12e3   : > { %7012 = vmatmul.mubr.msk.bf16.vlgmr.msra.gmra.mxu1 %vm1407_vm1, %v3262_v2 }
0x12e4   : > { %7016 = vmatpush3.bf16.msra.mxu1 %v9219_v3  ;;  %7017 = vmatprep.mubr.msk.bf16.mxu1 %vm8138_vm0, %v8137_v0 }
0x12e5   : > { %7021 = vmatprep.subr.bf16.mxu1 %v8137_v0 }
0x13a3   : > { %v3305_v5 = vpop.f32.mrf.mxu1 }
0x13a4   : > { %v3312_v8 = vmul.f32 0.17677669, %v3305_v5 }
0x13a5   : > { %v7013_v56 = vpop.f32.mrf.mxu1 }
0x13a6   : > { %v3314_v58 = vsel %vm1457_vm2, %v3312_v8, -inf }
0x13a7   : > { %3315 = vmax.xlane.f32.xlu0 %v3314_v58  ;;  %v3308_v6 = vpop.f32.mrf.mxu1 }
0x13a8   : > { %v3313_v60 = vmul.f32 0.17677669, %v3308_v6 }
0x13a9   : > { %v7014_v9 = vpop.f32.mrf.mxu1 }
0x13aa   : > { %v3317_v32 = vsel %vm1457_vm2, %v3313_v60, -inf }
0x13ab   : > { %3318 = vmax.xlane.f32.xlu1 %v3317_v32 }
0x1430   : > { %v3316_v37 = vpop.xlane.xlu0 %3315 }
0x1431   : > { %v3320_v44 = vsub.f32 %v3312_v8, %v3316_v37 }
0x1433   : > { %v3322_v14 = vmul.f32 1.442695, %v3320_v44 }
0x1434   : > { %v3319_v55 = vpop.xlane.xlu1 %3318 }
0x1435   : > { %7696 = vpow2.f32 %v3322_v14  ;;  %v3321_v15 = vsub.f32 %v3313_v60, %v3319_v55 }
0x1437   : > { %v3324_v16 = vmul.f32 1.442695, %v3321_v15 }
0x1439   : > { %7698 = vpow2.f32 %v3324_v16 }
0x1442   : > { %v7697_v21 = vpop.eup %7696 }
0x1443   : > { %v3326_v11 = vsel %vm1457_vm2, %v7697_v21, 0.0 }
0x1444   : > { %3327 = vadd.xlane.f32.xlu0 %v3326_v11 }
0x1446   : > { %v7699_v18 = vpop.eup %7698 }
0x1447   : > { %v3329_v61 = vsel %vm1457_vm2, %v7699_v18, 0.0 }
0x1448   : > { %3330 = vadd.xlane.f32.xlu1 %v3329_v61 }
0x1459   : > { %3382 = vrot.lane.b32.xlu1 %v3262_v2, %s10026_s7 }
0x145a   : > { %3385 = vrot.lane.b32.xlu0 %v3263_v7, %s10026_s7 }
0x145d   : > { %3509 = vrot.lane.b32.xlu1 %v3263_v7, %s10027_s11 }
0x145e   : > { %3632 = vrot.lane.b32.xlu0 %v3263_v7, %s10028_s5 }
0x1461   : > { %3507 = vrot.lane.b32.xlu1 %v3262_v2, %s10027_s11 }
0x1465   : > { %3630 = vrot.lane.b32.xlu1 %v3262_v2, %s10028_s5 }
0x14cd   : > { %v3328_v19 = vpop.xlane.xlu0 %3327 }
0x14ce   : > { %7700 = vrcp.f32 %v3328_v19 }
0x14d1   : > { %v3331_v23 = vpop.xlane.xlu1 %3330  ;;  %v3386_v33 = vpop.permute.xlu0 %3385 }
0x14d2   : > { %7702 = vrcp.f32 %v3331_v23  ;;  %v3391_v24 = vsel %vm1407_vm1, %v3386_v33, 0 }
0x14d5   : > { %v3383_v4 = vpop.permute.xlu1 %3382  ;;  %v3633_v31 = vpop.permute.xlu0 %3632 }
0x14d6   : > { %v3638_v42 = vsel %vm1407_vm1, %v3633_v31, 0 }
0x14d9   : > { %v3510_v63 = vpop.permute.xlu1 %3509 }
0x14da   : > { %v3515_v54 = vsel %vm1407_vm1, %v3510_v63, 0 }
0x14db   : > { %7034 = vmatpush3.bf16.xpose.msra.mxu0 %v3515_v54  ;;  %v7701_v30 = vpop.eup %7700 }
0x14dc   : > { %7045 = vmatprep.subr.bf16.mxu0 %v8137_v0  ;;  %v3334_v50 = vmul.f32 %v7701_v30, %v7697_v21 }
0x14dd   : > { %v3508_v17 = vpop.permute.xlu1 %3507 }
0x14df   : > { %v7703_v62 = vpop.eup %7702 }
0x14e0   : > { %v3335_v29 = vmul.f32 %v7703_v62, %v7699_v18 }
0x14e1   : > { %v3631_v20 = vpop.permute.xlu1 %3630 }
0x14e2   : > { %7036 = vmatmul.mubr.msk.bf16.vlgmr.msra.gmra.mxu0 %vm1407_vm1, %v3508_v17  ;;  %v3336_v22 = vpack.c.bf16 %v3335_v29, %v3334_v50 }
0x14e3   : > { %7046 = vmatpush3.bf16.xpose.msra.mxu0 %v3638_v42  ;;  %7047 = vmatprep.mubr.msk.bf16.mxu0 %vm8138_vm0, %v8137_v0 }
0x14e4   : > { %7018 = vmatmul.mubr.msk.bf16.vlgmr.msra.gmra.mxu1 %vm1457_vm2, %v3336_v22  ;;  %7057 = vmatprep.subr.bf16.mxu0 %v8137_v0 }
0x14e5   : > { %7022 = vmatpush3.bf16.xpose.msra.mxu1 %v3391_v24  ;;  %7023 = vmatprep.mubr.msk.bf16.mxu1 %vm8138_vm0, %v8137_v0 }
0x14e6   : > { %7027 = vmatprep.subr.bf16.mxu1 %v8137_v0 }
0x14ea   : > { %7048 = vmatmul.mubr.msk.bf16.vlgmr.msra.gmra.mxu0 %vm1407_vm1, %v3631_v20 }
0x14eb   : > { %7073 = vmatprep.mubr.msk.bf16.mxu0 %vm8138_vm0, %v8137_v0 }
0x14ec   : > { %7024 = vmatmul.mubr.msk.bf16.vlgmr.msra.gmra.mxu1 %vm1407_vm1, %v3383_v4 }
0x14ed   : > { %7029 = vmatprep.mubr.msk.bf16.mxu1 %vm8138_vm0, %v8137_v0 }
0x15a2   : > { %v3551_v43 = vpop.f32.mrf.mxu0 }
0x15a3   : > { %v3558_v41 = vmul.f32 0.17677669, %v3551_v43 }
0x15a4   : > { %v9254_v45 = vpop.f32.mrf.mxu1  ;;  %v7037_v36 = vpop.f32.mrf.mxu0 }
0x15a5   : > { %v3560_v8 = vsel %vm1457_vm2, %v3558_v41, -inf }
0x15a6   : > { %v7019_v46 = vpop.f32.mrf.mxu1  ;;  %v3554_v39 = vpop.f32.mrf.mxu0 }
0x15a7   : > { %v3559_v2 = vmul.f32 0.17677669, %v3554_v39 }
0x15a8   : > { %v9256_v10 = vpop.f32.mrf.mxu1  ;;  %v7038_v35 = vpop.f32.mrf.mxu0 }
0x15a9   : > { %v3563_v6 = vsel %vm1457_vm2, %v3559_v2, -inf }
0x15aa   : > { %v7020_v57 = vpop.f32.mrf.mxu1  ;;  %v3674_v34 = vpop.f32.mrf.mxu0 }
0x15ab   : > { %v3681_v58 = vmul.f32 0.17677669, %v3674_v34 }
0x15ac   : > { %v3427_v26 = vpop.f32.mrf.mxu1  ;;  %v7049_v40 = vpop.f32.mrf.mxu0 }
0x15ad   : > { %v3434_v59 = vmul.f32 0.17677669, %v3427_v26  ;;  %v3683_v9 = vsel %vm1457_vm2, %v3681_v58, -inf }
0x15ae   : > { %v7025_v7 = vpop.f32.mrf.mxu1  ;;  %v3677_v48 = vpop.f32.mrf.mxu0 }
0x15af   : > { %v3436_v38 = vsel %vm1457_vm2, %v3434_v59, -inf  ;;  %v3682_v5 = vmul.f32 0.17677669, %v3677_v48 }
0x15b0   : > { %v7050_v51 = vpop.f32.mrf.mxu0  ;;  %3437 = vmax.xlane.f32.xlu0 %v3436_v38  ;;  %v3430_v27 = vpop.f32.mrf.mxu1 }
0x15b1   : > { %v3435_v1 = vmul.f32 0.17677669, %v3430_v27  ;;  %v3686_v60 = vsel %vm1457_vm2, %v3682_v5, -inf }
0x15b2   : > { %v7026_v52 = vpop.f32.mrf.mxu1 }
0x15b3   : > { %v3439_v56 = vsel %vm1457_vm2, %v3435_v1, -inf }
0x15b4   : > { %3561 = vmax.xlane.f32.xlu0 %v3560_v8  ;;  %3440 = vmax.xlane.f32.xlu1 %v3439_v56 }
0x15b8   : > { %3564 = vmax.xlane.f32.xlu0 %v3563_v6  ;;  %3687 = vmax.xlane.f32.xlu1 %v3686_v60 }
0x15bc   : > { %3684 = vmax.xlane.f32.xlu0 %v3683_v9 }
0x1639   : > { %v3438_v32 = vpop.xlane.xlu0 %3437 }
0x163a   : > { %v3442_v18 = vsub.f32 %v3434_v59, %v3438_v32  ;;  %v7436_v32 = vld [vmem:[#allocation2 + $0x78] sm:$0xff]  }
0x163b   : > { %7058 = vmatpush3.bf16.msra.mxu0 %v7436_v32 }
0x163c   : > { %v3444_v63 = vmul.f32 1.442695, %v3442_v18  ;;  %7059 = vmatprep.subr.bf16.mxu0 %v8137_v0 }
0x163d   : > { %v3562_v37 = vpop.xlane.xlu0 %3561  ;;  %v3441_v44 = vpop.xlane.xlu1 %3440 }
0x163e   : > { %v3566_v14 = vsub.f32 %v3558_v41, %v3562_v37  ;;  %v3443_v61 = vsub.f32 %v3435_v1, %v3441_v44  ;;  %v7437_v37 = vld [vmem:[#allocation2 + $0x70] sm:$0xff]   ;;  %v7438_v44 = vld [vmem:[#allocation2 + $0x68] sm:$0xff]  }
0x163f   : > { %7060 = vmatpush3.bf16.msra.mxu0 %v7437_v37 }
0x1640   : > { %v3568_v55 = vmul.f32 1.442695, %v3566_v14  ;;  %v3446_v54 = vmul.f32 1.442695, %v3443_v61  ;;  %7061 = vmatprep.subr.bf16.mxu0 %v8137_v0  ;;  %v7439_v14 = vld [vmem:[#allocation2 + $0x60] sm:$0xff]   ;;  %v7442_v61 = vld [vmem:[#allocation2 + $0x48] sm:$0xff]  }
0x1641   : > { %v3565_v15 = vpop.xlane.xlu0 %3564  ;;  %v3688_v16 = vpop.xlane.xlu1 %3687 }
0x1642   : > { %7704 = vpow2.f32 %v3568_v55  ;;  %v3567_v21 = vsub.f32 %v3559_v2, %v3565_v15  ;;  %v3690_v11 = vsub.f32 %v3682_v5, %v3688_v16  ;;  %v7440_v55 = vld [vmem:[#allocation2 + $0x58] sm:$0xff]  }
0x1643   : > { %7062 = vmatpush3.bf16.msra.mxu0 %v7438_v44  ;;  %v7452_v44 = vld [vmem:[%s9947_s13 + $0x1c4] ss:$16 sps:$4 sm:$0xff]  }
0x1644   : > { %v3570_v19 = vmul.f32 1.442695, %v3567_v21  ;;  %v3693_v23 = vmul.f32 1.442695, %v3690_v11  ;;  %7063 = vmatprep.subr.bf16.mxu0 %v8137_v0  ;;  %v7441_v21 = vld [vmem:[#allocation2 + $0x50] sm:$0xff]  }
0x1645   : > { %v3685_v4 = vpop.xlane.xlu0 %3684 }
0x1646   : > { %7706 = vpow2.f32 %v3570_v19  ;;  %v3689_v33 = vsub.f32 %v3681_v58, %v3685_v4 }
0x1647   : > { %7708 = vpow2.f32 %v3693_v23  ;;  %7064 = vmatpush3.bf16.msra.mxu0 %v7439_v14  ;;  %v7455_v14 = vld [vmem:[%s9947_s13 + $0x1cc] ss:$16 sps:$4 sm:$0xff]  }
0x1648   : > { %v3691_v30 = vmul.f32 1.442695, %v3689_v33  ;;  %7065 = vmatprep.subr.bf16.mxu0 %v8137_v0  ;;  %v7443_v33 = vld [vmem:[#allocation2 + $0x40] sm:$0xff]  }
0x164a   : > { %7710 = vpow2.f32 %v3691_v30 }
0x164b   : > { %7712 = vpow2.f32 %v3444_v63  ;;  %7066 = vmatpush3.bf16.msra.mxu0 %v7440_v55  ;;  %v7450_v55 = vld [vmem:[%s9947_s13 + $0x1c0] ss:$16 sps:$4 sm:$0xff]  }
0x164c   : > { %7714 = vpow2.f32 %v3446_v54  ;;  %7067 = vmatprep.subr.bf16.mxu0 %v8137_v0 }
0x164f   : > { %v7705_v62 = vpop.eup %7704  ;;  %7068 = vmatpush3.bf16.msra.mxu0 %v7441_v21  ;;  %v7461_v21 = vld [vmem:[%s9947_s13 + $0x1ac] ss:$16 sps:$4 sm:$0xff]  }
0x1650   : > { %v3572_v31 = vsel %vm1457_vm2, %v7705_v62, 0.0  ;;  %7069 = vmatprep.subr.bf16.mxu0 %v8137_v0 }
0x1651   : > { %3573 = vadd.xlane.f32.xlu0 %v3572_v31 }
0x1653   : > { %v7707_v50 = vpop.eup %7706  ;;  %7070 = vmatpush3.bf16.msra.mxu0 %v7442_v61  ;;  %v7462_v61 = vld [vmem:[%s9947_s13 + $0x180] ss:$16 sps:$4 sm:$0xff]  }
0x1654   : > { %v3575_v29 = vsel %vm1457_vm2, %v7707_v50, 0.0  ;;  %v7709_v17 = vpop.eup %7708  ;;  %7071 = vmatprep.subr.bf16.mxu0 %v8137_v0 }
0x1655   : > { %3576 = vadd.xlane.f32.xlu1 %v3575_v29  ;;  %v3698_v20 = vsel %vm1457_vm2, %v7709_v17, 0.0 }
0x1657   : > { %v7711_v42 = vpop.eup %7710  ;;  %7072 = vmatpush3.bf16.msra.mxu0 %v7443_v33  ;;  %v7470_v33 = vld [vmem:[%s9947_s13 + $0x164] ss:$16 sps:$4 sm:$0xff]  }
0x1658   : > { %v7713_v22 = vpop.eup %7712  ;;  %v3695_v24 = vsel %vm1457_vm2, %v7711_v42, 0.0 }
0x1659   : > { %v7715_v43 = vpop.eup %7714  ;;  %3696 = vadd.xlane.f32.xlu0 %v3695_v24  ;;  %3699 = vadd.xlane.f32.xlu1 %v3698_v20  ;;  %v3448_v36 = vsel %vm1457_vm2, %v7713_v22, 0.0 }
0x165a   : > { %v3451_v46 = vsel %vm1457_vm2, %v7715_v43, 0.0 }
0x165d   : > { %3449 = vadd.xlane.f32.xlu0 %v3448_v36  ;;  %3452 = vadd.xlane.f32.xlu1 %v3451_v46 }
0x166e   : > { %3583 = vrot.lane.b32.xlu1 %v9219_v3, %s10027_s11 }
0x1672   : > { %3706 = vrot.lane.b32.xlu1 %v9219_v3, %s10028_s5 }
0x1673   : > { %3460 = vrot.lane.b32.xlu0 %v9219_v3, %s10026_s7 }
0x16da   : > { %v3574_v39 = vpop.xlane.xlu0 %3573 }
0x16de   : > { %v3577_v35 = vpop.xlane.xlu1 %3576 }
0x16e2   : > { %v3697_v57 = vpop.xlane.xlu0 %3696  ;;  %v3700_v34 = vpop.xlane.xlu1 %3699 }
0x16e6   : > { %v3450_v26 = vpop.xlane.xlu0 %3449  ;;  %v3453_v40 = vpop.xlane.xlu1 %3452 }
0x16e7   : > { %7716 = vrcp.f32 %v3450_v26 }
0x16e8   : > { %7718 = vrcp.f32 %v3453_v40 }
0x16e9   : > { %7720 = vrcp.f32 %v3577_v35 }
0x16ea   : > { %v3461_v59 = vpop.permute.xlu0 %3460  ;;  %7722 = vrcp.f32 %v3574_v39  ;;  %v3584_v27 = vpop.permute.xlu1 %3583 }
0x16eb   : > { %7028 = vmatpush3.bf16.msra.mxu1 %v3461_v59  ;;  %7724 = vrcp.f32 %v3697_v57 }
0x16ec   : > { %7039 = vmatprep.subr.bf16.mxu1 %v8137_v0  ;;  %7726 = vrcp.f32 %v3700_v34 }
0x16ee   : > { %v3707_v58 = vpop.permute.xlu1 %3706 }
0x16f4   : > { %v7717_v7 = vpop.eup %7716 }
0x16f5   : > { %v7719_v48 = vpop.eup %7718  ;;  %v3456_v41 = vmul.f32 %v7717_v7, %v7713_v22 }
0x16f6   : > { %v3457_v3 = vmul.f32 %v7719_v48, %v7715_v43  ;;  %v7721_v51 = vpop.eup %7720 }
0x16f7   : > { %v7723_v1 = vpop.eup %7722  ;;  %v3581_v52 = vmul.f32 %v7721_v51, %v7707_v50 }
0x16f8   : > { %v3458_v38 = vpack.c.bf16 %v3457_v3, %v3456_v41  ;;  %v3580_v2 = vmul.f32 %v7723_v1, %v7705_v62  ;;  %v7725_v5 = vpop.eup %7724 }
0x16f9   : > { %v7727_v56 = vpop.eup %7726  ;;  %v3703_v6 = vmul.f32 %v7725_v5, %v7711_v42  ;;  %v7447_v5 = vld [vmem:[%s9947_s13 + $0x1e8] ss:$16 sps:$4 sm:$0xff]  }
0x16fa   : > { %7030 = vmatmul.mubr.msk.bf16.vlgmr.msra.gmra.mxu1 %vm1457_vm2, %v3458_v38  ;;  %v3582_v8 = vpack.c.bf16 %v3581_v52, %v3580_v2  ;;  %v3704_v60 = vmul.f32 %v7727_v56, %v7709_v17  ;;  %v7444_v2 = vld [vmem:[%s9947_s13 + $0x1e0] ss:$16 sps:$4 sm:$0xff]  }
0x16fb   : > { %7040 = vmatpush3.bf16.msra.mxu1 %v3584_v27  ;;  %7041 = vmatprep.mubr.msk.bf16.mxu1 %vm8138_vm0, %v8137_v0 }
0x16fc   : > { %7051 = vmatprep.subr.bf16.mxu1 %v8137_v0  ;;  %v3705_v9 = vpack.c.bf16 %v3704_v60, %v3703_v6 }
0x1702   : > { %7042 = vmatmul.mubr.msk.bf16.vlgmr.msra.gmra.mxu1 %vm1457_vm2, %v3582_v8 }
0x1703   : > { %7052 = vmatpush3.bf16.msra.mxu1 %v3707_v58  ;;  %7053 = vmatprep.mubr.msk.bf16.mxu1 %vm8138_vm0, %v8137_v0 }
0x170a   : > { %7054 = vmatmul.mubr.msk.bf16.vlgmr.msra.gmra.mxu1 %vm1457_vm2, %v3705_v9 }
0x170b   : > { %4193 = vmatprep.mubr.bf16.mxu1 %v8139_v47 }
0x17ba   : > { %v3500_v15 = vpop.f32.mrf.mxu1 }
0x17bc   : > { %v7031_v16 = vpop.f32.mrf.mxu1 }
0x17bd   : > { %v7458_v16 = vld [vmem:[%s9947_s13 + $0x1a4] ss:$16 sps:$4 sm:$0xff]  }
0x17be   : > { %v3503_v11 = vpop.f32.mrf.mxu1 }
0x17bf   : > { %v7261_v18 = vpack.i.bf16 %v3503_v11, %v3500_v15  ;;  %v7453_v15 = vld [vmem:[%s9947_s13 + $0x1c8] ss:$16 sps:$4 sm:$0xff]   ;;  %v7456_v11 = vld [vmem:[%s9947_s13 + $0x1a0] ss:$16 sps:$4 sm:$0xff]  }
0x17c0   : > { %v7032_v19 = vpop.f32.mrf.mxu1 }
0x17c1   : > { %7262 = vrot.lane.b32.xlu1 %v7261_v18, %s10028_s5  ;;  %v7459_v18 = vld [vmem:[%s9947_s13 + $0x1a8] ss:$16 sps:$4 sm:$0xff]   ;;  %v7464_v19 = vld [vmem:[%s9947_s13 + $0x184] ss:$16 sps:$4 sm:$0xff]  }
0x17c2   : > { %v3623_v23 = vpop.f32.mrf.mxu1 }
0x17c4   : > { %v7043_v4 = vpop.f32.mrf.mxu1 }
0x17c5   : > { %v7467_v4 = vld [vmem:[%s9947_s13 + $0x18c] ss:$16 sps:$4 sm:$0xff]  }
0x17c6   : > { %v3626_v63 = vpop.f32.mrf.mxu1 }
0x17c7   : > { %v7266_v54 = vpack.i.bf16 %v3626_v63, %v3623_v23  ;;  %v7465_v23 = vld [vmem:[%s9947_s13 + $0x188] ss:$16 sps:$4 sm:$0xff]   ;;  %v7473_v63 = vld [vmem:[%s9947_s13 + $0x16c] ss:$16 sps:$4 sm:$0xff]  }
0x17c8   : > { %v7044_v30 = vpop.f32.mrf.mxu1 }
0x17c9   : > { %7267 = vrot.lane.b32.xlu0 %v7266_v54, %s10027_s11  ;;  %v7468_v54 = vld [vmem:[%s9947_s13 + $0x160] ss:$16 sps:$4 sm:$0xff]   ;;  %v7471_v30 = vld [vmem:[%s9947_s13 + $0x168] ss:$16 sps:$4 sm:$0xff]   ;;  %s10029_s11 = sld [smem:[#allocation27_spill]] }
0x17ca   : > { %v3746_v62 = vpop.f32.mrf.mxu1 }
0x17cc   : > { %v7055_v31 = vpop.f32.mrf.mxu1 }
0x17cd   : > { %v7479_v31 = vld [vmem:[%s9947_s13 + $0x14c] ss:$16 sps:$4 sm:$0xff]  }
0x17ce   : > { %v3749_v50 = vpop.f32.mrf.mxu1 }
0x17cf   : > { %v7271_v29 = vpack.i.bf16 %v3749_v50, %v3746_v62  ;;  %v7476_v62 = vld [vmem:[%s9947_s13 + $0x144] ss:$16 sps:$4 sm:$0xff]   ;;  %v7474_v50 = vld [vmem:[%s9947_s13 + $0x140] ss:$16 sps:$4 sm:$0xff]   ;;  %s975_s5 = scalar_lea.vmem %s10029_s11, %s10034_s30  ;;  %s10030_s11 = sshll.u32 %s10034_s30, 4 }
0x17d0   : > { %v7056_v17 = vpop.f32.mrf.mxu1  ;;  %s980_s29 = scalar_lea.vmem %s10031_s10, %s10030_s11 }
0x17d1   : > { %7272 = vrot.lane.b32.xlu1 %v7271_v29, %s10026_s7  ;;  %v7477_v29 = vld [vmem:[%s9947_s13 + $0x148] ss:$16 sps:$4 sm:$0xff]   ;;  %v7482_v17 = vld [vmem:[%s9947_s13 + $0x124] ss:$16 sps:$4 sm:$0xff]  }
0x1833   : > { %v7263_v42 = vpop.permute.xlu1 %7262 }
0x1834   : > { %v7265_v24 = vunpack.i.h.bf16 %v7263_v42  ;;  %v7264_v20 = vunpack.i.l.bf16 %v7263_v42  ;;  %v7485_v42 = vld [vmem:[%s9947_s13 + $0x12c] ss:$16 sps:$4 sm:$0xff]  }
0x1836   : > { %v3778_v39 = vsel %vm1407_vm1, %v9256_v10, %v7265_v24  ;;  %v3777_v35 = vsel %vm1407_vm1, %v9254_v45, %v7264_v20  ;;  %v6367_v10 = vld [vmem:[%s10024_s3 + $0x1] ss:$0 sm:$0xff]  ;;  %v7483_v24 = vld [vmem:[%s9947_s13 + $0x128] ss:$16 sps:$4 sm:$0xff]   ;;  %v7488_v20 = vld [vmem:[%s9947_s13 + $0x104] ss:$16 sps:$4 sm:$0xff]  }
0x183b   : > { %v7268_v22 = vpop.permute.xlu0 %7267 }
0x183c   : > { %v7270_v43 = vunpack.i.h.bf16 %v7268_v22  ;;  %v7269_v36 = vunpack.i.l.bf16 %v7268_v22  ;;  %v7480_v22 = vld [vmem:[%s9947_s13 + $0x120] ss:$16 sps:$4 sm:$0xff]  }
0x183e   : > { %v3780_v26 = vsel %vm1923_vm3, %v3778_v39, %v7270_v43  ;;  %v3779_v40 = vsel %vm1923_vm3, %v3777_v35, %v7269_v36  ;;  %v7491_v43 = vld [vmem:[%s9947_s13 + $0x10c] ss:$16 sps:$4 sm:$0xff]   ;;  %v7486_v36 = vld [vmem:[%s9947_s13 + $0x100] ss:$16 sps:$4 sm:$0xff]  }
0x1843   : > { %v7273_v46 = vpop.permute.xlu1 %7272 }
0x1844   : > { %v7275_v57 = vunpack.i.h.bf16 %v7273_v46  ;;  %v7274_v34 = vunpack.i.l.bf16 %v7273_v46  ;;  %v7489_v46 = vld [vmem:[%s9947_s13 + $0x108] ss:$16 sps:$4 sm:$0xff]  }
0x1846   : > { %v3782_v59 = vsel %vm1926_vm4, %v3780_v26, %v7275_v57  ;;  %v3781_v7 = vsel %vm1926_vm4, %v3779_v40, %v7274_v34 }
0x1847   : > { %v3800_v48 = vpack.c.bf16 %v3782_v59, %v3781_v7 }
0x1849   : > { %7074 = vmatmul.mubr.bf16.vlgmr.msra.gmra.mxu0 %v3800_v48  ;;  %v6370_v48 = vld [vmem:[%s10025_s0 + $0x1] ss:$0 sm:$0xff] }
0x184a   : > { %4236 = vmatprep.mubr.bf16.mxu0 %v8139_v47 }
0x1909   : > { %v3883_v41 = vpop.f32.mrf.mxu0 }
0x190a   : > { %v3890_v45 = vadd.f32 %v3883_v41, %v9101_v49  ;;  %v7446_v49 = vld [vmem:[%s9947_s13 + $0x1e4] ss:$16 sps:$4 sm:$0xff]  }
0x190b   : > { %v7075_v3 = vpop.f32.mrf.mxu0  ;;  %4161 = vmatprep.subr.bf16.mxu1 %v7446_v49  ;;  %v7492_v49 = vld [vmem:[%s9949_s15 + $0x178] sm:$0xff]  }
0x190c   : > { %v9309_v38 = vadd.f32 %v6367_v10, %v3890_v45  ;;  %4162 = vmatpush1.bf16.msra.mxu1 %v7444_v2  ;;  %v6371_v3 = vld [vmem:[%s9946_s12 + $0x1] ss:$0 sm:$0xff] }
0x190d   : > { %v3886_v51 = vpop.f32.mrf.mxu0  ;;  %4163 = vmatprep.subr.bf16.mxu1 %v7452_v44  ;;  %v7503_v44 = vld [vmem:[%s9949_s15 + $0x1a8] sm:$0xff]  }
0x190e   : > { %v3891_v27 = vadd.f32 %v3886_v51, %v9105_v53  ;;  %3906 = vadd.xlane.f32.xlu0 %v9309_v38  ;;  %v7449_v53 = vld [vmem:[%s9947_s13 + $0x1ec] ss:$16 sps:$4 sm:$0xff]  }
0x190f   : > { %v7076_v1 = vpop.f32.mrf.mxu0  ;;  %4204 = vmatprep.subr.bf16.mxu0 %v7449_v53  ;;  %v7494_v53 = vld [vmem:[%s9949_s15 + $0x138] sm:$0xff]  }
0x1910   : > { %v9313_v52 = vadd.f32 %v6367_v10, %v3891_v27  ;;  %4205 = vmatpush1.bf16.msra.mxu0 %v7447_v5  ;;  %4164 = vmatpush1.bf16.msra.mxu1 %v7450_v55  ;;  %v7493_v5 = vld [vmem:[%s9949_s15 + $0x1f8] sm:$0xff]   ;;  %v7505_v55 = vld [vmem:[%s9949_s15 + $0x1e0] sm:$0xff]  }
0x1911   : > { %4206 = vmatprep.subr.bf16.mxu0 %v7455_v14  ;;  %4165 = vmatprep.subr.bf16.mxu1 %v7458_v16  ;;  %v7504_v14 = vld [vmem:[%s9949_s15 + $0x160] sm:$0xff]  }
0x1912   : > { %3908 = vadd.xlane.f32.xlu1 %v9313_v52  ;;  %v7507_v16 = vld [vmem:[%s9949_s15 + $0x1a0] sm:$0xff]  }
0x1914   : > { %4207 = vmatpush1.bf16.msra.mxu0 %v7453_v15  ;;  %4166 = vmatpush1.bf16.msra.mxu1 %v7456_v11  ;;  %v7506_v15 = vld [vmem:[%s9949_s15 + $0x120] sm:$0xff]   ;;  %v7509_v11 = vld [vmem:[%s9949_s15 + $0x1d8] sm:$0xff]  }
0x1915   : > { %4208 = vmatprep.subr.bf16.mxu0 %v7461_v21  ;;  %4167 = vmatprep.subr.bf16.mxu1 %v7464_v19  ;;  %v7508_v21 = vld [vmem:[%s9949_s15 + $0x158] sm:$0xff]   ;;  %v7512_v19 = vld [vmem:[%s9949_s15 + $0x150] sm:$0xff]  }
0x1918   : > { %4209 = vmatpush1.bf16.msra.mxu0 %v7459_v18  ;;  %4168 = vmatpush1.bf16.msra.mxu1 %v7462_v61  ;;  %v7510_v18 = vld [vmem:[%s9949_s15 + $0x118] sm:$0xff]  }
0x1919   : > { %4210 = vmatprep.subr.bf16.mxu0 %v7467_v4  ;;  %4169 = vmatprep.subr.bf16.mxu1 %v7470_v33  ;;  %v7511_v61 = vld [vmem:[%s9949_s15 + $0x198] sm:$0xff]   ;;  %v7514_v4 = vld [vmem:[%s9949_s15 + $0x110] sm:$0xff]  }
0x191a   : > { %v7515_v33 = vld [vmem:[%s9949_s15 + $0x190] sm:$0xff]  }
0x191c   : > { %4211 = vmatpush1.bf16.msra.mxu0 %v7465_v23  ;;  %4170 = vmatpush1.bf16.msra.mxu1 %v7468_v54  ;;  %v7513_v23 = vld [vmem:[%s9949_s15 + $0x1d0] sm:$0xff]   ;;  %v7517_v54 = vld [vmem:[%s9949_s15 + $0x1c8] sm:$0xff]  }
0x191d   : > { %4212 = vmatprep.subr.bf16.mxu0 %v7473_v63  ;;  %4171 = vmatprep.subr.bf16.mxu1 %v7476_v62  ;;  %v7516_v63 = vld [vmem:[%s9949_s15 + $0x148] sm:$0xff]  }
0x191e   : > { %v7519_v62 = vld [vmem:[%s9949_s15 + $0x188] sm:$0xff]  }
0x1920   : > { %4213 = vmatpush1.bf16.msra.mxu0 %v7471_v30  ;;  %4172 = vmatpush1.bf16.msra.mxu1 %v7474_v50  ;;  %v7518_v30 = vld [vmem:[%s9949_s15 + $0x108] sm:$0xff]   ;;  %v7521_v50 = vld [vmem:[%s9949_s15 + $0x1c0] sm:$0xff]  }
0x1921   : > { %4214 = vmatprep.subr.bf16.mxu0 %v7479_v31  ;;  %4173 = vmatprep.subr.bf16.mxu1 %v7482_v17  ;;  %v7520_v31 = vld [vmem:[%s9949_s15 + $0x140] sm:$0xff]  }
0x1922   : > { %v7523_v17 = vld [vmem:[%s9949_s15 + $0x180] sm:$0xff]  }
0x1924   : > { %4215 = vmatpush1.bf16.msra.mxu0 %v7477_v29  ;;  %4174 = vmatpush1.bf16.msra.mxu1 %v7480_v22  ;;  %v7522_v29 = vld [vmem:[%s9949_s15 + $0x100] sm:$0xff]  }
0x1925   : > { %4216 = vmatprep.subr.bf16.mxu0 %v7485_v42  ;;  %4175 = vmatprep.subr.bf16.mxu1 %v7488_v20  ;;  %v6404_v42 = vld [vmem:[%s9948_s14 + $0x4] sm:$0xf] }
0x1926   : > { %v3984_v22 = vrot.slane %v6404_v42, %v8622_v25 }
0x1928   : > { %4217 = vmatpush1.bf16.msra.mxu0 %v7483_v24  ;;  %4176 = vmatpush1.bf16.msra.mxu1 %v7486_v36  ;;  %v3992_v24 = vrot.slane %v6404_v42, %v8625_v28  ;;  %v3988_v36 = vrot.slane %v6404_v42, %v8615_v12 }
0x1929   : > { %4218 = vmatprep.subr.bf16.mxu0 %v7491_v43  ;;  %6775 = vmatprep.subr.bf16.mxu1 %v7492_v49 }
0x192c   : > { %4219 = vmatpush1.bf16.msra.mxu0 %v7489_v46  ;;  %v3996_v46 = vrot.slane %v6404_v42, %v8964_v13 }
0x192d   : > { %6797 = vmatprep.subr.bf16.mxu0 %v7493_v5 }
0x1997   : > { %v3907_v8 = vpop.xlane.xlu0 %3906 }
0x1998   : > { %v3910_v56 = vmul.f32 0.0078125, %v3907_v8  ;;  %v7495_v8 = vld [vmem:[%s9949_s15 + $0x1b8] sm:$0xff]  }
0x199a   : > { %v9329_v58 = vsub.f32 %v9309_v38, %v3910_v56  ;;  %v7496_v56 = vld [vmem:[%s9949_s15 + $0x170] sm:$0xff]  }
0x199b   : > { %v3909_v6 = vpop.xlane.xlu1 %3908 }
0x199c   : > { %v3911_v60 = vmul.f32 0.0078125, %v3909_v6  ;;  %v3914_v9 = vmul.f32 %v9329_v58, %v9329_v58  ;;  %v7498_v6 = vld [vmem:[%s9949_s15 + $0x130] sm:$0xff]  }
0x199e   : > { %v9334_v32 = vsub.f32 %v9313_v52, %v3911_v60  ;;  %3916 = vadd.xlane.f32.xlu0 %v3914_v9  ;;  %v7499_v60 = vld [vmem:[%s9949_s15 + $0x1b0] sm:$0xff]   ;;  %v7500_v9 = vld [vmem:[%s9949_s15 + $0x168] sm:$0xff]  }
0x19a0   : > { %v3915_v37 = vmul.f32 %v9334_v32, %v9334_v32 }
0x19a2   : > { %3918 = vadd.xlane.f32.xlu0 %v3915_v37  ;;  %v7502_v37 = vld [vmem:[%s9949_s15 + $0x128] sm:$0xff]  }
0x1a27   : > { %v3917_v39 = vpop.xlane.xlu0 %3916 }
0x1a28   : > { %v3920_v35 = vmul.f32 0.0078125, %v3917_v39 }
0x1a2a   : > { %v3922_v57 = vadd.f32 1e-05, %v3920_v35 }
0x1a2b   : > { %v3919_v34 = vpop.xlane.xlu0 %3918 }
0x1a2c   : > { %7728 = vrsqrt.f32 %v3922_v57  ;;  %v3921_v26 = vmul.f32 0.0078125, %v3919_v34 }
0x1a2e   : > { %v3923_v40 = vadd.f32 1e-05, %v3921_v26 }
0x1a30   : > { %7730 = vrsqrt.f32 %v3923_v40 }
0x1a39   : > { %v7729_v59 = vpop.eup %7728 }
0x1a3a   : > { %v3926_v7 = vmul.f32 %v7729_v59, %v9329_v58  ;;  %v7497_v58 = vld [vmem:[%s9949_s15 + $0x1f0] sm:$0xff]  }
0x1a3c   : > { %v3934_v45 = vmul.f32 %v6370_v48, %v3926_v7 }
0x1a3d   : > { %v7731_v41 = vpop.eup %7730 }
0x1a3e   : > { %v3927_v10 = vmul.f32 %v7731_v41, %v9334_v32  ;;  %v3942_v27 = vadd.f32 %v6371_v3, %v3934_v45  ;;  %v7501_v32 = vld [vmem:[%s9949_s15 + $0x1e8] sm:$0xff]  }
0x1a40   : > { %v3935_v51 = vmul.f32 %v6370_v48, %v3927_v10 }
0x1a42   : > { %v3943_v1 = vadd.f32 %v6371_v3, %v3935_v51 }
0x1a44   : > { %v3977_v2 = vpack.c.bf16 %v3943_v1, %v3942_v27 }
0x1a46   : > { %4194 = vmatmul.mubr.bf16.vlgmr.msra.gmra.mxu1 %v3977_v2  ;;  %4237 = vmatmul.mubr.bf16.vlgmr.msra.gmra.mxu0 %v3977_v2 }
0x1a47   : > { %6776 = vmatpush3.bf16.msra.mxu1 %v7494_v53  ;;  %6798 = vmatpush3.bf16.msra.mxu0 %v7495_v8 }
0x1a48   : > { %6777 = vmatprep.subr.bf16.mxu1 %v7496_v56  ;;  %6799 = vmatprep.subr.bf16.mxu0 %v7497_v58 }
0x1a4b   : > { %6778 = vmatpush3.bf16.msra.mxu1 %v7498_v6  ;;  %6800 = vmatpush3.bf16.msra.mxu0 %v7499_v60 }
0x1a4c   : > { %6779 = vmatprep.subr.bf16.mxu1 %v7500_v9  ;;  %6801 = vmatprep.subr.bf16.mxu0 %v7501_v32 }
0x1a4f   : > { %6780 = vmatpush3.bf16.msra.mxu1 %v7502_v37  ;;  %6802 = vmatpush3.bf16.msra.mxu0 %v7503_v44 }
0x1a50   : > { %6781 = vmatprep.subr.bf16.mxu1 %v7504_v14  ;;  %6803 = vmatprep.subr.bf16.mxu0 %v7505_v55 }
0x1a53   : > { %6782 = vmatpush3.bf16.msra.mxu1 %v7506_v15  ;;  %6804 = vmatpush3.bf16.msra.mxu0 %v7507_v16 }
0x1a54   : > { %6783 = vmatprep.subr.bf16.mxu1 %v7508_v21  ;;  %6805 = vmatprep.subr.bf16.mxu0 %v7509_v11 }
0x1a57   : > { %6784 = vmatpush3.bf16.msra.mxu1 %v7510_v18  ;;  %6806 = vmatpush3.bf16.msra.mxu0 %v7511_v61 }
0x1a58   : > { %6785 = vmatprep.subr.bf16.mxu1 %v7512_v19  ;;  %6807 = vmatprep.subr.bf16.mxu0 %v7513_v23 }
0x1a5b   : > { %6786 = vmatpush3.bf16.msra.mxu1 %v7514_v4  ;;  %6808 = vmatpush3.bf16.msra.mxu0 %v7515_v33 }
0x1a5c   : > { %6787 = vmatprep.subr.bf16.mxu1 %v7516_v63  ;;  %6809 = vmatprep.subr.bf16.mxu0 %v7517_v54 }
0x1a5f   : > { %6788 = vmatpush3.bf16.msra.mxu1 %v7518_v30  ;;  %6810 = vmatpush3.bf16.msra.mxu0 %v7519_v62 }
0x1a60   : > { %6789 = vmatprep.subr.bf16.mxu1 %v7520_v31  ;;  %6811 = vmatprep.subr.bf16.mxu0 %v7521_v50 }
0x1a63   : > { %6790 = vmatpush3.bf16.msra.mxu1 %v7522_v29  ;;  %6812 = vmatpush3.bf16.msra.mxu0 %v7523_v17 }
0x1a64   : > { %7077 = vmatprep.subr.bf16.mxu1 %v8137_v0  ;;  %7097 = vmatprep.subr.bf16.mxu0 %v8137_v0 }
0x1b06   : > { %v4195_v20 = vpop.f32.mrf.mxu1  ;;  %v4238_v43 = vpop.f32.mrf.mxu0 }
0x1b07   : > { %v9535_v39 = vadd.f32 %v4195_v20, %v3984_v22  ;;  %v9537_v35 = vadd.f32 %v4238_v43, %v3992_v24 }
0x1b08   : > { %v4197_v57 = vpop.f32.mrf.mxu1  ;;  %v4240_v34 = vpop.f32.mrf.mxu0 }
0x1b09   : > { %v9540_v26 = vmul.f32 0.70710677, %v9535_v39  ;;  %v9543_v40 = vmul.f32 0.70710677, %v9537_v35  ;;  %v9545_v59 = vadd.f32 %v4197_v57, %v3988_v36  ;;  %v9547_v7 = vadd.f32 %v4240_v34, %v3996_v46 }
0x1b0a   : > { %v4199_v27 = vpop.f32.mrf.mxu1  ;;  %v4242_v58 = vpop.f32.mrf.mxu0 }
0x1b0b   : > { %v4263_v48 = vand.u32 2147483647, %v9540_v26  ;;  %v4265_v41 = vand.u32 2147483647, %v9543_v40  ;;  %v9552_v10 = vmul.f32 0.70710677, %v9545_v59  ;;  %v9559_v56 = vadd.f32 %v4199_v27, %v3984_v22 }
0x1b0c   : > { %v9555_v45 = vmul.f32 0.70710677, %v9547_v7  ;;  %v4201_v6 = vpop.f32.mrf.mxu1  ;;  %v9564_v37 = vadd.f32 %v4242_v58, %v3992_v24  ;;  %v4244_v55 = vpop.f32.mrf.mxu0  ;;  %vm4423_vm14 = vcmp.ge.f32.partialorder %v9540_v26, 0.0  ;;  %vm4425_vm1 = vcmp.ge.f32.partialorder %v9543_v40, 0.0 }
0x1b0d   : > { %v4271_v3 = vmul.f32 0.3275911, %v4263_v48  ;;  %v4273_v51 = vmul.f32 0.3275911, %v4265_v41  ;;  %v4264_v1 = vand.u32 2147483647, %v9552_v10  ;;  %v9566_v44 = vadd.f32 %v4201_v6, %v3988_v36 }
0x1b0e   : > { %v4266_v2 = vand.u32 2147483647, %v9555_v45  ;;  %v9562_v32 = vmul.f32 0.70710677, %v9559_v56  ;;  %v9570_v15 = vmul.f32 0.70710677, %v9564_v37  ;;  %v9576_v18 = vadd.f32 %v4244_v55, %v3996_v46 }
0x1b0f   : > { %v4279_v49 = vadd.f32 1.0, %v4271_v3  ;;  %v4281_v5 = vadd.f32 1.0, %v4273_v51  ;;  %v4272_v53 = vmul.f32 0.3275911, %v4264_v1  ;;  %v9573_v21 = vmul.f32 0.70710677, %v9566_v44 }
0x1b10   : > { %v4274_v8 = vmul.f32 0.3275911, %v4266_v2  ;;  %v4267_v14 = vand.u32 2147483647, %v9562_v32  ;;  %v4269_v11 = vand.u32 2147483647, %v9570_v15 }
0x1b11   : > { %7732 = vrcp.f32 %v4279_v49  ;;  %v4280_v60 = vadd.f32 1.0, %v4272_v53  ;;  %v4375_v61 = vsub.f32 0.0, %v4263_v48  ;;  %v4268_v23 = vand.u32 2147483647, %v9573_v21 }
0x1b12   : > { %7734 = vrcp.f32 %v4281_v5  ;;  %v4282_v9 = vadd.f32 1.0, %v4274_v8  ;;  %v4275_v16 = vmul.f32 0.3275911, %v4267_v14  ;;  %v4277_v4 = vmul.f32 0.3275911, %v4269_v11 }
0x1b13   : > { %7736 = vrcp.f32 %v4280_v60  ;;  %v9580_v33 = vmul.f32 0.70710677, %v9576_v18  ;;  %v4377_v63 = vsub.f32 0.0, %v4265_v41  ;;  %v4276_v54 = vmul.f32 0.3275911, %v4268_v23 }
0x1b14   : > { %7738 = vrcp.f32 %v4282_v9  ;;  %v4283_v19 = vadd.f32 1.0, %v4275_v16  ;;  %v4376_v30 = vsub.f32 0.0, %v4264_v1  ;;  %v4285_v62 = vadd.f32 1.0, %v4277_v4 }
0x1b15   : > { %v9583_v31 = vand.u32 2147483647, %v9580_v33  ;;  %v4383_v50 = vmul.f32 %v4375_v61, %v4263_v48  ;;  %v4284_v29 = vadd.f32 1.0, %v4276_v54  ;;  %v4378_v42 = vsub.f32 0.0, %v4266_v2 }
0x1b16   : > { %7740 = vrcp.f32 %v4283_v19  ;;  %v4385_v43 = vmul.f32 %v4377_v63, %v4265_v41  ;;  %v4384_v46 = vmul.f32 %v4376_v30, %v4264_v1  ;;  %v4379_v57 = vsub.f32 0.0, %v4267_v14 }
0x1b17   : > { %7742 = vrcp.f32 %v4285_v62  ;;  %v4278_v22 = vmul.f32 0.3275911, %v9583_v31  ;;  %v4391_v48 = vmul.f32 1.442695, %v4383_v50  ;;  %v4386_v49 = vmul.f32 %v4378_v42, %v4266_v2 }
0x1b18   : > { %7744 = vrcp.f32 %v4284_v29  ;;  %v4381_v5 = vsub.f32 0.0, %v4269_v11  ;;  %v4395_v8 = vmul.f32 1.442695, %v4385_v43  ;;  %v4393_v1 = vmul.f32 1.442695, %v4384_v46 }
0x1b19   : > { %v4286_v34 = vadd.f32 1.0, %v4278_v22  ;;  %v4387_v60 = vmul.f32 %v4379_v57, %v4267_v14  ;;  %v4380_v9 = vsub.f32 0.0, %v4268_v23  ;;  %v4397_v19 = vmul.f32 1.442695, %v4386_v49 }
0x1b1a   : > { %v4389_v4 = vmul.f32 %v4381_v5, %v4269_v11  ;;  %vm4427_vm13 = vcmp.ge.f32.partialorder %v9562_v32, 0.0  ;;  %vm4424_vm15 = vcmp.ge.f32.partialorder %v9552_v10, 0.0  ;;  %vm4426_vm2 = vcmp.ge.f32.partialorder %v9555_v45, 0.0 }
0x1b1b   : > { %7746 = vrcp.f32 %v4286_v34  ;;  %v4399_v14 = vmul.f32 1.442695, %v4387_v60  ;;  %v4388_v29 = vmul.f32 %v4380_v9, %v4268_v23  ;;  %vm4429_vm3 = vcmp.ge.f32.partialorder %v9570_v15, 0.0 }
0x1b1c   : > { %7748 = vpow2.f32 %v4391_v48  ;;  %v4403_v11 = vmul.f32 1.442695, %v4389_v4  ;;  %vm4428_vm4 = vcmp.ge.f32.partialorder %v9573_v21, 0.0  ;;  %v4247_v45 = vmul.f32 0.5, %v9535_v39 }
0x1b1d   : > { %7750 = vpow2.f32 %v4395_v8  ;;  %vm4430_vm5 = vcmp.ge.f32.partialorder %v9580_v33, 0.0  ;;  %v4250_v39 = vmul.f32 0.5, %v9547_v7  ;;  %v4254_v40 = vmul.f32 0.5, %v9576_v18  ;;  %v7527_v18 = vld [vmem:[#allocation9 + $0x20] sm:$0xff]  }
0x1b1e   : > { %v9585_v17 = vpop.eup %7732  ;;  %7752 = vpow2.f32 %v4393_v1 }
0x1b1f   : > { %v9588_v24 = vpop.eup %7734  ;;  %v4303_v20 = vmul.f32 1.0614054, %v9585_v17  ;;  %7754 = vpow2.f32 %v4397_v19 }
0x1b20   : > { %v4305_v36 = vmul.f32 1.0614054, %v9588_v24  ;;  %v9592_v51 = vpop.eup %7736  ;;  %7756 = vpow2.f32 %v4399_v14 }
0x1b21   : > { %v6437_v3 = vadd.f32 -1.4531521, %v4303_v20  ;;  %v4304_v58 = vmul.f32 1.0614054, %v9592_v51  ;;  %v9596_v41 = vpop.eup %7738  ;;  %7758 = vpow2.f32 %v4403_v11 }
0x1b22   : > { %v6439_v27 = vadd.f32 -1.4531521, %v4305_v36  ;;  %v4306_v61 = vmul.f32 1.0614054, %v9596_v41  ;;  %v4382_v36 = vsub.f32 0.0, %v9583_v31 }
0x1b23   : > { %v4319_v53 = vmul.f32 %v9585_v17, %v6437_v3  ;;  %v6438_v16 = vadd.f32 -1.4531521, %v4304_v58  ;;  %v9602_v62 = vpop.eup %7740  ;;  %v4401_v58 = vmul.f32 1.442695, %v4388_v29 }
0x1b24   : > { %v4321_v6 = vmul.f32 %v9588_v24, %v6439_v27  ;;  %v6440_v30 = vadd.f32 -1.4531521, %v4306_v61  ;;  %v4307_v43 = vmul.f32 1.0614054, %v9602_v62  ;;  %v9608_v46 = vpop.eup %7742  ;;  %v4390_v60 = vmul.f32 %v4382_v36, %v9583_v31 }
0x1b25   : > { %v4327_v55 = vadd.f32 1.4214138, %v4319_v53  ;;  %v4320_v54 = vmul.f32 %v9592_v51, %v6438_v16  ;;  %v9612_v27 = vpop.eup %7744  ;;  %v4309_v49 = vmul.f32 1.0614054, %v9608_v46  ;;  %7760 = vpow2.f32 %v4401_v58 }
0x1b26   : > { %v4329_v2 = vadd.f32 1.4214138, %v4321_v6  ;;  %v4322_v20 = vmul.f32 %v9596_v41, %v6440_v30  ;;  %v6441_v48 = vadd.f32 -1.4531521, %v4307_v43  ;;  %v4308_v1 = vmul.f32 1.0614054, %v9612_v27 }
0x1b27   : > { %v4335_v63 = vmul.f32 %v9585_v17, %v4327_v55  ;;  %v4328_v22 = vadd.f32 1.4214138, %v4320_v54  ;;  %v6443_v6 = vadd.f32 -1.4531521, %v4309_v49 }
0x1b28   : > { %v4337_v50 = vmul.f32 %v9588_v24, %v4329_v2  ;;  %v4330_v3 = vadd.f32 1.4214138, %v4322_v20  ;;  %v4323_v8 = vmul.f32 %v9602_v62, %v6441_v48  ;;  %v9619_v9 = vpop.eup %7746 }
0x1b29   : > { %v6445_v42 = vadd.f32 -0.28449672, %v4335_v63  ;;  %v4336_v34 = vmul.f32 %v9592_v51, %v4328_v22  ;;  %v4325_v4 = vmul.f32 %v9608_v46, %v6443_v6  ;;  %v6442_v63 = vadd.f32 -1.4531521, %v4308_v1  ;;  %v7749_v20 = vpop.eup %7748 }
0x1b2a   : > { %v6447_v23 = vadd.f32 -0.28449672, %v4337_v50  ;;  %v4338_v53 = vmul.f32 %v9596_v41, %v4330_v3  ;;  %v4331_v2 = vadd.f32 1.4214138, %v4323_v8  ;;  %v4310_v54 = vmul.f32 1.0614054, %v9619_v9 }
0x1b2b   : > { %v4351_v57 = vmul.f32 %v9585_v17, %v6445_v42  ;;  %v6446_v5 = vadd.f32 -0.28449672, %v4336_v34  ;;  %v4333_v31 = vadd.f32 1.4214138, %v4325_v4  ;;  %v4324_v29 = vmul.f32 %v9612_v27, %v6442_v63  ;;  %v7751_v34 = vpop.eup %7750 }
0x1b2c   : > { %v6448_v61 = vadd.f32 -0.28449672, %v4338_v53  ;;  %v4353_v19 = vmul.f32 %v9588_v24, %v6447_v23  ;;  %v4339_v14 = vmul.f32 %v9602_v62, %v4331_v2  ;;  %v6444_v42 = vadd.f32 -1.4531521, %v4310_v54 }
0x1b2d   : > { %v4359_v55 = vadd.f32 0.2548296, %v4351_v57  ;;  %v4352_v16 = vmul.f32 %v9592_v51, %v6446_v5  ;;  %v4405_v22 = vmul.f32 1.442695, %v4390_v60  ;;  %v4341_v48 = vmul.f32 %v9608_v46, %v4333_v31  ;;  %v7753_v5 = vpop.eup %7752 }
0x1b2e   : > { %v4354_v50 = vmul.f32 %v9596_v41, %v6448_v61  ;;  %v6449_v57 = vadd.f32 -0.28449672, %v4339_v14  ;;  %v4361_v3 = vadd.f32 0.2548296, %v4353_v19  ;;  %v4332_v23 = vadd.f32 1.4214138, %v4324_v29 }
0x1b2f   : > { %v4360_v30 = vadd.f32 0.2548296, %v4352_v16  ;;  %v4367_v43 = vmul.f32 %v9585_v17, %v4359_v55  ;;  %v4326_v49 = vmul.f32 %v9619_v9, %v6444_v42  ;;  %v6451_v58 = vadd.f32 -0.28449672, %v4341_v48  ;;  %v7755_v17 = vpop.eup %7754 }
0x1b30   : > { %v4362_v36 = vadd.f32 0.2548296, %v4354_v50  ;;  %v4355_v53 = vmul.f32 %v9602_v62, %v6449_v57  ;;  %v4340_v6 = vmul.f32 %v9612_v27, %v4332_v23  ;;  %7762 = vpow2.f32 %v4405_v22  ;;  %v7757_v19 = vpop.eup %7756 }
0x1b31   : > { %v4368_v11 = vmul.f32 %v9592_v51, %v4360_v30  ;;  %v4334_v1 = vadd.f32 1.4214138, %v4326_v49  ;;  %v4407_v60 = vmul.f32 %v7749_v20, %v4367_v43  ;;  %v4369_v16 = vmul.f32 %v9588_v24, %v4361_v3  ;;  %v7759_v14 = vpop.eup %7758 }
0x1b32   : > { %v4370_v51 = vmul.f32 %v9596_v41, %v4362_v36  ;;  %v4363_v55 = vadd.f32 0.2548296, %v4355_v53  ;;  %v4357_v61 = vmul.f32 %v9608_v46, %v6451_v58  ;;  %v6450_v2 = vadd.f32 -0.28449672, %v4340_v6 }
0x1b33   : > { %v4408_v8 = vmul.f32 %v7753_v5, %v4368_v11  ;;  %v4342_v50 = vmul.f32 %v9619_v9, %v4334_v1  ;;  %v4415_v31 = vsub.f32 1.0, %v4407_v60  ;;  %v4409_v42 = vmul.f32 %v7751_v34, %v4369_v16  ;;  %v7761_v11 = vpop.eup %7760 }
0x1b34   : > { %v4371_v4 = vmul.f32 %v9602_v62, %v4363_v55  ;;  %v4365_v54 = vadd.f32 0.2548296, %v4357_v61  ;;  %v4356_v30 = vmul.f32 %v9612_v27, %v6450_v2  ;;  %v4410_v29 = vmul.f32 %v7755_v17, %v4370_v51 }
0x1b35   : > { %v4416_v63 = vsub.f32 1.0, %v4408_v8  ;;  %v6452_v20 = vadd.f32 -0.28449672, %v4342_v50  ;;  %v4431_v3 = vsub.f32 0.0, %v4415_v31  ;;  %v4417_v5 = vsub.f32 1.0, %v4409_v42 }
0x1b36   : > { %v4411_v41 = vmul.f32 %v7757_v19, %v4371_v4  ;;  %v4373_v22 = vmul.f32 %v9608_v46, %v4365_v54  ;;  %v4364_v24 = vadd.f32 0.2548296, %v4356_v30  ;;  %v4418_v48 = vsub.f32 1.0, %v4410_v29 }
0x1b37   : > { %v4432_v36 = vsub.f32 0.0, %v4416_v63  ;;  %v4358_v49 = vmul.f32 %v9619_v9, %v6452_v20  ;;  %v4439_v1 = vsel %vm4423_vm14, %v4415_v31, %v4431_v3  ;;  %v4248_v17 = vmul.f32 0.5, %v9545_v59  ;;  %v7524_v20 = vld [vmem:[#allocation9 + $0x38] sm:$0xff]  }
0x1b38   : > { %v4419_v43 = vsub.f32 1.0, %v4411_v41  ;;  %v4413_v57 = vmul.f32 %v7759_v14, %v4373_v22  ;;  %v4372_v62 = vmul.f32 %v9612_v27, %v4364_v24  ;;  %v4434_v60 = vsub.f32 0.0, %v4418_v48 }
0x1b39   : > { %v4366_v8 = vadd.f32 0.2548296, %v4358_v49  ;;  %v4440_v58 = vsel %vm4424_vm15, %v4416_v63, %v4432_v36  ;;  %v4433_v55 = vsub.f32 0.0, %v4417_v5  ;;  %v4447_v2 = vadd.f32 1.0, %v4439_v1  ;;  %v7529_v49 = vld [vmem:[#allocation9 + $0x10] sm:$0xff]   ;;  %v7536_v1 = vld [vmem:[#allocation12 + $0x18] sm:$0xff]  }
0x1b3a   : > { %v4435_v23 = vsub.f32 0.0, %v4419_v43  ;;  %v4421_v53 = vsub.f32 1.0, %v4413_v57  ;;  %v4412_v34 = vmul.f32 %v7761_v11, %v4372_v62  ;;  %v4448_v10 = vadd.f32 1.0, %v4440_v58  ;;  %v7533_v58 = vld [vmem:[#allocation12 + $0x30] sm:$0xff]  }
0x1b3b   : > { %v4374_v51 = vmul.f32 %v9619_v9, %v4366_v8  ;;  %v4251_v19 = vmul.f32 0.5, %v9559_v56  ;;  %v4442_v63 = vsel %vm4426_vm2, %v4418_v48, %v4434_v60  ;;  %v4252_v9 = vmul.f32 0.5, %v9566_v44  ;;  %v7525_v48 = vld [vmem:[#allocation9 + $0x30] sm:$0xff]   ;;  %v7532_v8 = vld [vmem:[#allocation12 + $0x38] sm:$0xff]  }
0x1b3c   : > { %v4443_v46 = vsel %vm4427_vm13, %v4419_v43, %v4435_v23  ;;  %v4437_v27 = vsub.f32 0.0, %v4421_v53  ;;  %v4420_v6 = vsub.f32 1.0, %v4412_v34  ;;  %v4441_v50 = vsel %vm4425_vm1, %v4417_v5, %v4433_v55  ;;  %v7528_v23 = vld [vmem:[#allocation9 + $0x18] sm:$0xff]   ;;  %v7530_v5 = vld [vmem:[#allocation9 + $0x8] sm:$0xff]  }
0x1b3d   : > { %v7763_v32 = vpop.eup %7762  ;;  %v4451_v26 = vadd.f32 1.0, %v4443_v46  ;;  %v4456_v15 = vmul.f32 %v4448_v10, %v4248_v17  ;;  %v4455_v41 = vmul.f32 %v4447_v2, %v4247_v45  ;;  %v4450_v42 = vadd.f32 1.0, %v4442_v63  ;;  %v4858_v34 = vld [vmem:[%s975_s5] sm:$0x1]  ;;  %v7537_v17 = vld [vmem:[#allocation12 + $0x10] sm:$0xff]   ;;  %v7538_v60 = vld [vmem:[#allocation12 + $0x8] sm:$0xff]  }
0x1b3e   : > { %v4436_v16 = vsub.f32 0.0, %v4420_v6  ;;  %v4414_v61 = vmul.f32 %v7763_v32, %v4374_v51  ;;  %v4445_v4 = vsel %vm4429_vm3, %v4421_v53, %v4437_v27  ;;  %v4449_v56 = vadd.f32 1.0, %v4441_v50  ;;  %v7531_v53 = vld [vmem:[#allocation9] sm:$0xff]   ;;  %v7534_v27 = vld [vmem:[#allocation12 + $0x28] sm:$0xff]  }
0x1b3f   : > { %v4459_v14 = vmul.f32 %v4451_v26, %v4251_v19  ;;  %v4453_v31 = vadd.f32 1.0, %v4445_v4  ;;  %v4253_v22 = vmul.f32 0.5, %v9564_v37  ;;  %v4249_v36 = vmul.f32 0.5, %v9537_v35  ;;  %v7526_v35 = vld [vmem:[#allocation9 + $0x28] sm:$0xff]  }
0x1b40   : > { %v4444_v59 = vsel %vm4428_vm4, %v4420_v6, %v4436_v16  ;;  %v4422_v30 = vsub.f32 1.0, %v4414_v61  ;;  %v4458_v62 = vmul.f32 %v4450_v42, %v4250_v39  ;;  %v4875_v46 = vpack.c.bf16 %v4858_v34, %v4858_v34  ;;  %v7535_v6 = vld [vmem:[#allocation12 + $0x20] sm:$0xff]  }
0x1b41   : > { %v4452_v54 = vadd.f32 1.0, %v4444_v59  ;;  %v4528_v43 = vpack.c.bf16 %v4459_v14, %v4455_v41  ;;  %v4461_v57 = vmul.f32 %v4453_v31, %v4253_v22  ;;  %v4457_v33 = vmul.f32 %v4449_v56, %v4249_v36  ;;  %v7539_v51 = vld [vmem:[#allocation12] sm:$0xff]   ;;  %v4876_v31 = vld [vmem:[#allocation10] sm:$0x1] }
0x1b42   : > { %v4438_v29 = vsub.f32 0.0, %v4422_v30  ;;  %v7555_v34 = vld [vmem:[%s9957_s23 + $0xa8] ss:$16 sps:$4 sm:$0xff]  }
0x1b43   : > { %v4460_v21 = vmul.f32 %v4452_v54, %v4252_v9  ;;  %v4530_v7 = vpack.c.bf16 %v4461_v57, %v4457_v33  ;;  %v6549_v54 = vld [vmem:[#allocation4 + $0x1] ss:$0 sm:$0xff]  ;;  %v7545_v33 = vld [vmem:[%s9957_s23 + $0xec] ss:$16 sps:$4 sm:$0xff]  }
0x1b44   : > { %v4446_v44 = vsel %vm4430_vm5, %v4422_v30, %v4438_v29 }
0x1b45   : > { %v4529_v24 = vpack.c.bf16 %v4460_v21, %v4456_v15  ;;  %v4454_v11 = vadd.f32 1.0, %v4446_v44 }
0x1b47   : > { %4756 = vmatprep.mubr.bf16.mxu1 %v4529_v24  ;;  %v4462_v3 = vmul.f32 %v4454_v11, %v4254_v40 }
0x1b48   : > { %4757 = vmatmul.mubr.bf16.vlgmr.msra.gmra.mxu1 %v4528_v43 }
0x1b49   : > { %7078 = vmatpush3.bf16.msra.mxu1 %v7524_v20  ;;  %7093 = vmatprep.mubr.msk.bf16.mxu1 %vm8138_vm0, %v8137_v0  ;;  %v4531_v37 = vpack.c.bf16 %v4462_v3, %v4458_v62 }
0x1b4a   : > { %7079 = vmatprep.subr.bf16.mxu1 %v8137_v0 }
0x1b4b   : > { %4797 = vmatprep.mubr.bf16.mxu0 %v4531_v37  ;;  %v7543_v37 = vld [vmem:[%s9957_s23 + $0xe8] ss:$16 sps:$4 sm:$0xff]  }
0x1b4c   : > { %4798 = vmatmul.mubr.bf16.vlgmr.msra.gmra.mxu0 %v4530_v7  ;;  %v7548_v7 = vld [vmem:[%s9957_s23 + $0xc4] ss:$16 sps:$4 sm:$0xff]  }
0x1b4d   : > { %7080 = vmatpush3.bf16.msra.mxu1 %v7525_v48  ;;  %7113 = vmatprep.mubr.msk.bf16.mxu0 %vm8138_vm0, %v8137_v0  ;;  %v7540_v48 = vld [vmem:[%s9957_s23 + $0xe0] ss:$16 sps:$4 sm:$0xff]  }
0x1b4e   : > { %7081 = vmatprep.subr.bf16.mxu1 %v8137_v0  ;;  %7098 = vmatpush3.bf16.msra.mxu0 %v7532_v8  ;;  %v7563_v8 = vld [vmem:[%s9957_s23 + $0x8c] ss:$16 sps:$4 sm:$0xff]  }
0x1b4f   : > { %7099 = vmatprep.subr.bf16.mxu0 %v8137_v0 }
0x1b51   : > { %7082 = vmatpush3.bf16.msra.mxu1 %v7526_v35  ;;  %v7551_v35 = vld [vmem:[%s9957_s23 + $0xcc] ss:$16 sps:$4 sm:$0xff]  }
0x1b52   : > { %7083 = vmatprep.subr.bf16.mxu1 %v8137_v0  ;;  %7100 = vmatpush3.bf16.msra.mxu0 %v7533_v58  ;;  %v7558_v58 = vld [vmem:[%s9957_s23 + $0x80] ss:$16 sps:$4 sm:$0xff]  }
0x1b53   : > { %7101 = vmatprep.subr.bf16.mxu0 %v8137_v0 }
0x1b55   : > { %7084 = vmatpush3.bf16.msra.mxu1 %v7527_v18  ;;  %v7546_v18 = vld [vmem:[%s9957_s23 + $0xc0] ss:$16 sps:$4 sm:$0xff]  }
0x1b56   : > { %7085 = vmatprep.subr.bf16.mxu1 %v8137_v0  ;;  %7102 = vmatpush3.bf16.msra.mxu0 %v7534_v27  ;;  %v7561_v27 = vld [vmem:[%s9957_s23 + $0x88] ss:$16 sps:$4 sm:$0xff]  }
0x1b57   : > { %7103 = vmatprep.subr.bf16.mxu0 %v8137_v0 }
0x1b59   : > { %7086 = vmatpush3.bf16.msra.mxu1 %v7528_v23  ;;  %v7549_v23 = vld [vmem:[%s9957_s23 + $0xc8] ss:$16 sps:$4 sm:$0xff]  }
0x1b5a   : > { %7087 = vmatprep.subr.bf16.mxu1 %v8137_v0  ;;  %7104 = vmatpush3.bf16.msra.mxu0 %v7535_v6  ;;  %v7566_v6 = vld [vmem:[%s9957_s23 + $0x64] ss:$16 sps:$4 sm:$0xff]  }
0x1b5b   : > { %7105 = vmatprep.subr.bf16.mxu0 %v8137_v0 }
0x1b5d   : > { %7088 = vmatpush3.bf16.msra.mxu1 %v7529_v49  ;;  %v7554_v49 = vld [vmem:[%s9957_s23 + $0xa4] ss:$16 sps:$4 sm:$0xff]  }
0x1b5e   : > { %7089 = vmatprep.subr.bf16.mxu1 %v8137_v0  ;;  %7106 = vmatpush3.bf16.msra.mxu0 %v7536_v1  ;;  %v7569_v1 = vld [vmem:[%s9957_s23 + $0x6c] ss:$16 sps:$4 sm:$0xff]  }
0x1b5f   : > { %7107 = vmatprep.subr.bf16.mxu0 %v8137_v0 }
0x1b61   : > { %7090 = vmatpush3.bf16.msra.mxu1 %v7530_v5  ;;  %v7557_v5 = vld [vmem:[%s9957_s23 + $0xac] ss:$16 sps:$4 sm:$0xff]  }
0x1b62   : > { %7091 = vmatprep.subr.bf16.mxu1 %v8137_v0  ;;  %7108 = vmatpush3.bf16.msra.mxu0 %v7537_v17  ;;  %v7564_v17 = vld [vmem:[%s9957_s23 + $0x60] ss:$16 sps:$4 sm:$0xff]  }
0x1b63   : > { %7109 = vmatprep.subr.bf16.mxu0 %v8137_v0 }
0x1b65   : > { %7092 = vmatpush3.bf16.msra.mxu1 %v7531_v53  ;;  %v7552_v53 = vld [vmem:[%s9957_s23 + $0xa0] ss:$16 sps:$4 sm:$0xff]  }
0x1b66   : > { %7110 = vmatpush3.bf16.msra.mxu0 %v7538_v60  ;;  %v7567_v60 = vld [vmem:[%s9957_s23 + $0x68] ss:$16 sps:$4 sm:$0xff]  }
0x1b67   : > { %7111 = vmatprep.subr.bf16.mxu0 %v8137_v0 }
0x1b68   : > { %7094 = vmatmul.mubr.bf16.vlgmr.msra.gmra.mxu1 %v4875_v46  ;;  %v7560_v46 = vld [vmem:[%s9957_s23 + $0x84] ss:$16 sps:$4 sm:$0xff]  }
0x1b69   : > { %5331 = vmatprep.mubr.bf16.mxu1 %v8139_v47 }
0x1b6a   : > { %7112 = vmatpush3.bf16.msra.mxu0 %v7539_v51  ;;  %v7572_v51 = vld [vmem:[%s9957_s23 + $0x44] ss:$16 sps:$4 sm:$0xff]  }
0x1b6b   : > { %5342 = vmatprep.subr.bf16.mxu0 %v7545_v33  ;;  %v7589_v33 = vld [vmem:[#allocation16 + $0xf8] sm:$0xff]  }
0x1c08   : > { %v6791_v32 = vpop.f32.mrf.mxu1 }
0x1c0a   : > { %v6792_v55 = vpop.f32.mrf.mxu1 }
0x1c0b   : > { %v6793_v10 = vadd.f32 %v6792_v55, %v6791_v32  ;;  %v7575_v32 = vld [vmem:[%s9957_s23 + $0x4c] ss:$16 sps:$4 sm:$0xff]   ;;  %v7570_v55 = vld [vmem:[%s9957_s23 + $0x40] ss:$16 sps:$4 sm:$0xff]  }
0x1c0c   : > { %v6794_v26 = vpop.f32.mrf.mxu1  ;;  %v6813_v16 = vpop.f32.mrf.mxu0 }
0x1c0e   : > { %v6814_v61 = vpop.f32.mrf.mxu0  ;;  %v6795_v2 = vpop.f32.mrf.mxu1 }
0x1c0f   : > { %v6815_v19 = vadd.f32 %v6814_v61, %v6813_v16  ;;  %v6796_v63 = vadd.f32 %v6795_v2, %v6794_v26  ;;  %v7573_v26 = vld [vmem:[%s9957_s23 + $0x48] ss:$16 sps:$4 sm:$0xff]   ;;  %v7576_v16 = vld [vmem:[%s9957_s23 + $0x20] ss:$16 sps:$4 sm:$0xff]   ;;  %v7581_v2 = vld [vmem:[%s9957_s23 + $0x2c] ss:$16 sps:$4 sm:$0xff]  }
0x1c10   : > { %v6816_v4 = vpop.f32.mrf.mxu0  ;;  %v7579_v61 = vld [vmem:[%s9957_s23 + $0x28] ss:$16 sps:$4 sm:$0xff]  }
0x1c11   : > { %v4800_v59 = vadd.f32 %v6815_v19, %v6793_v10  ;;  %v7578_v10 = vld [vmem:[%s9957_s23 + $0x24] ss:$16 sps:$4 sm:$0xff]  }
0x1c12   : > { %v6817_v9 = vpop.f32.mrf.mxu0  ;;  %v7584_v19 = vld [vmem:[%s9957_s23 + $0x4] ss:$16 sps:$4 sm:$0xff]  }
0x1c13   : > { %v6818_v30 = vadd.f32 %v6817_v9, %v6816_v4  ;;  %v4806_v45 = vadd.f32 %v4800_v59, %v9309_v38  ;;  %v7587_v4 = vld [vmem:[%s9957_s23 + $0xc] ss:$16 sps:$4 sm:$0xff]   ;;  %v7582_v59 = vld [vmem:[%s9957_s23] ss:$16 sps:$4 sm:$0xff]  }
0x1c15   : > { %v4803_v50 = vadd.f32 %v6818_v30, %v6796_v63  ;;  %v4816_v14 = vadd.f32 %v6549_v54, %v4806_v45  ;;  %v7585_v63 = vld [vmem:[%s9957_s23 + $0x8] ss:$16 sps:$4 sm:$0xff]  }
0x1c17   : > { %4820 = vadd.xlane.f32.xlu0 %v4816_v14  ;;  %v4807_v0 = vadd.f32 %v4803_v50, %v9313_v52 }
0x1c19   : > { %v4817_v15 = vadd.f32 %v6549_v54, %v4807_v0 }
0x1c1b   : > { %4822 = vadd.xlane.f32.xlu1 %v4817_v15 }
0x1c28   : > { %v4959_v21 = vpop.f32.mrf.mxu1 }
0x1c29   : > { %v4960_v29 = vadd.f32 %v4959_v21, %v4876_v31 }
0x1c2a   : > { %v7095_v41 = vpop.f32.mrf.mxu1 }
0x1c2b   : > { %v6560_v42 = vmul.f32 -1.442695, %v4960_v29  ;;  %v6550_v41 = vld [vmem:[#allocation6] ss:$0 sm:$0xff] }
0x1c2c   : > { %v4962_v56 = vpop.f32.mrf.mxu1 }
0x1c2d   : > { %7764 = vpow2.f32 %v6560_v42  ;;  %v4989_v56 = vld [vmem:[#allocation13] sm:$0x1] }
0x1c2e   : > { %v7096_v22 = vpop.f32.mrf.mxu1 }
0x1c3a   : > { %v7765_v44 = vpop.eup %7764 }
0x1c3b   : > { %v4968_v24 = vadd.f32 1.0, %v7765_v44 }
0x1c3d   : > { %7766 = vrcp.f32 %v4968_v24  ;;  %v6551_v24 = vld [vmem:[#allocation7] ss:$0 sm:$0xff] }
0x1c4a   : > { %v7767_v20 = vpop.eup %7766 }
0x1c4b   : > { %v4971_v38 = vmul.f32 %v7767_v20, %v4960_v29 }
0x1c4d   : > { %v4988_v39 = vpack.c.bf16 %v4971_v38, %v4971_v38 }
0x1c4f   : > { %7114 = vmatmul.mubr.bf16.vlgmr.msra.gmra.mxu0 %v4988_v39 }
0x1c50   : > { %5374 = vmatprep.mubr.bf16.mxu0 %v8139_v47  ;;  %v7542_v47 = vld [vmem:[%s9957_s23 + $0xe4] ss:$16 sps:$4 sm:$0xff]   ;;  %5343 = vmatpush1.bf16.msra.mxu0 %v7543_v37 }
0x1c51   : > { %5299 = vmatprep.subr.bf16.mxu1 %v7542_v47  ;;  %5344 = vmatprep.subr.bf16.mxu0 %v7551_v35  ;;  %v7588_v47 = vld [vmem:[#allocation16 + $0x78] sm:$0xff]   ;;  %v7592_v37 = vld [vmem:[#allocation16 + $0x70] sm:$0xff]  }
0x1c52   : > { %5300 = vmatpush1.bf16.msra.mxu1 %v7540_v48  ;;  %v7591_v48 = vld [vmem:[#allocation16 + $0xb8] sm:$0xff]   ;;  %v7595_v35 = vld [vmem:[#allocation16 + $0xb0] sm:$0xff]  }
0x1c53   : > { %5301 = vmatprep.subr.bf16.mxu1 %v7548_v7  ;;  %v7594_v7 = vld [vmem:[#allocation16 + $0x30] sm:$0xff]  }
0x1c54   : > { %5345 = vmatpush1.bf16.msra.mxu0 %v7549_v23  ;;  %v7597_v23 = vld [vmem:[#allocation16 + $0xe8] sm:$0xff]  }
0x1c55   : > { %5346 = vmatprep.subr.bf16.mxu0 %v7557_v5  ;;  %v7599_v5 = vld [vmem:[#allocation16 + $0xa8] sm:$0xff]  }
0x1c56   : > { %5302 = vmatpush1.bf16.msra.mxu1 %v7546_v18  ;;  %v7596_v18 = vld [vmem:[#allocation16 + $0x68] sm:$0xff]  }
0x1c57   : > { %5303 = vmatprep.subr.bf16.mxu1 %v7554_v49  ;;  %v7598_v49 = vld [vmem:[#allocation16 + $0x28] sm:$0xff]  }
0x1c58   : > { %5347 = vmatpush1.bf16.msra.mxu0 %v7555_v34  ;;  %v7601_v34 = vld [vmem:[#allocation16 + $0xe0] sm:$0xff]  }
0x1c59   : > { %5348 = vmatprep.subr.bf16.mxu0 %v7563_v8  ;;  %v7603_v8 = vld [vmem:[#allocation16 + $0xa0] sm:$0xff]  }
0x1c5a   : > { %5304 = vmatpush1.bf16.msra.mxu1 %v7552_v53  ;;  %v7600_v53 = vld [vmem:[#allocation16 + $0x60] sm:$0xff]  }
0x1c5b   : > { %5305 = vmatprep.subr.bf16.mxu1 %v7560_v46  ;;  %v7602_v46 = vld [vmem:[#allocation16 + $0x20] sm:$0xff]  }
0x1c5c   : > { %5349 = vmatpush1.bf16.msra.mxu0 %v7561_v27  ;;  %v7605_v27 = vld [vmem:[#allocation16 + $0xd8] sm:$0xff]  }
0x1c5d   : > { %5350 = vmatprep.subr.bf16.mxu0 %v7569_v1  ;;  %v7607_v1 = vld [vmem:[#allocation16 + $0x98] sm:$0xff]  }
0x1c5e   : > { %5306 = vmatpush1.bf16.msra.mxu1 %v7558_v58  ;;  %v7604_v58 = vld [vmem:[#allocation16 + $0x58] sm:$0xff]  }
0x1c5f   : > { %5307 = vmatprep.subr.bf16.mxu1 %v7566_v6  ;;  %v7606_v6 = vld [vmem:[#allocation16 + $0x18] sm:$0xff]  }
0x1c60   : > { %5351 = vmatpush1.bf16.msra.mxu0 %v7567_v60  ;;  %v7609_v60 = vld [vmem:[#allocation16 + $0xd0] sm:$0xff]  }
0x1c61   : > { %5352 = vmatprep.subr.bf16.mxu0 %v7575_v32  ;;  %v7611_v32 = vld [vmem:[#allocation16 + $0x90] sm:$0xff]  }
0x1c62   : > { %5308 = vmatpush1.bf16.msra.mxu1 %v7564_v17  ;;  %v7608_v17 = vld [vmem:[#allocation16 + $0x50] sm:$0xff]  }
0x1c63   : > { %5309 = vmatprep.subr.bf16.mxu1 %v7572_v51  ;;  %v7610_v51 = vld [vmem:[#allocation16 + $0x10] sm:$0xff]  }
0x1c64   : > { %5353 = vmatpush1.bf16.msra.mxu0 %v7573_v26  ;;  %v7613_v26 = vld [vmem:[#allocation16 + $0xc8] sm:$0xff]  }
0x1c65   : > { %5354 = vmatprep.subr.bf16.mxu0 %v7581_v2  ;;  %v7617_v2 = vld [vmem:[#allocation16 + $0xc0] sm:$0xff]  }
0x1c66   : > { %5310 = vmatpush1.bf16.msra.mxu1 %v7570_v55  ;;  %v7612_v55 = vld [vmem:[#allocation16 + $0x48] sm:$0xff]  }
0x1c67   : > { %5311 = vmatprep.subr.bf16.mxu1 %v7578_v10  ;;  %v7615_v10 = vld [vmem:[#allocation16 + $0x88] sm:$0xff]  }
0x1c68   : > { %5355 = vmatpush1.bf16.msra.mxu0 %v7579_v61  ;;  %v7616_v61 = vld [vmem:[#allocation16 + $0x40] sm:$0xff]  }
0x1c69   : > { %5356 = vmatprep.subr.bf16.mxu0 %v7587_v4  ;;  %v7619_v4 = vld [vmem:[#allocation16 + $0x80] sm:$0xff]  }
0x1c6a   : > { %5312 = vmatpush1.bf16.msra.mxu1 %v7576_v16  ;;  %v7614_v16 = vld [vmem:[#allocation16 + $0x8] sm:$0xff]  }
0x1c6b   : > { %5313 = vmatprep.subr.bf16.mxu1 %v7584_v19  ;;  %v7618_v19 = vld [vmem:[#allocation16] sm:$0xff]  }
0x1c6c   : > { %5357 = vmatpush1.bf16.msra.mxu0 %v7585_v63 }
0x1c6d   : > { %6859 = vmatprep.subr.bf16.mxu0 %v7589_v33 }
0x1c6e   : > { %5314 = vmatpush1.bf16.msra.mxu1 %v7582_v59  ;;  %v5117_v59 = vld [vmem:[#allocation15] sm:$0xf] }
0x1c6f   : > { %6837 = vmatprep.subr.bf16.mxu1 %v7588_v47  ;;  %v5122_v63 = vrot.slane %v5117_v59, %v8622_v25 }
0x1ca0   : > { %v4821_v52 = vpop.xlane.xlu0 %4820 }
0x1ca1   : > { %v4824_v43 = vmul.f32 0.0078125, %v4821_v52 }
0x1ca3   : > { %v9688_v40 = vsub.f32 %v4816_v14, %v4824_v43 }
0x1ca4   : > { %v4823_v11 = vpop.xlane.xlu1 %4822 }
0x1ca5   : > { %v4825_v36 = vmul.f32 0.0078125, %v4823_v11  ;;  %v4828_v57 = vmul.f32 %v9688_v40, %v9688_v40 }
0x1ca7   : > { %v9692_v62 = vsub.f32 %v4817_v15, %v4825_v36  ;;  %4830 = vadd.xlane.f32.xlu0 %v4828_v57 }
0x1ca9   : > { %v4829_v3 = vmul.f32 %v9692_v62, %v9692_v62 }
0x1cab   : > { %4832 = vadd.xlane.f32.xlu1 %v4829_v3 }
0x1d0f   : > { %v5072_v9 = vpop.f32.mrf.mxu0 }
0x1d10   : > { %v5073_v20 = vadd.f32 %v5072_v9, %v4989_v56  ;;  %v5130_v9 = vrot.slane %v5117_v59, %v8625_v28 }
0x1d11   : > { %v7115_v54 = vpop.f32.mrf.mxu0 }
0x1d12   : > { %v5081_v43 = vrot.slane %v5073_v20, %v8622_v25 }
0x1d13   : > { %v5075_v30 = vpop.f32.mrf.mxu0 }
0x1d15   : > { %v7116_v45 = vpop.f32.mrf.mxu0 }
0x1d16   : > { %v5126_v45 = vrot.slane %v5117_v59, %v8615_v12 }
0x1d30   : > { %v4831_v50 = vpop.xlane.xlu0 %4830 }
0x1d31   : > { %v4834_v14 = vmul.f32 0.0078125, %v4831_v50  ;;  %v5134_v50 = vrot.slane %v5117_v59, %v8964_v13 }
0x1d33   : > { %v4836_v0 = vadd.f32 1e-05, %v4834_v14 }
0x1d34   : > { %v4833_v15 = vpop.xlane.xlu1 %4832 }
0x1d35   : > { %7768 = vrsqrt.f32 %v4836_v0  ;;  %v4835_v31 = vmul.f32 0.0078125, %v4833_v15 }
0x1d37   : > { %v4837_v21 = vadd.f32 1e-05, %v4835_v31 }
0x1d39   : > { %7770 = vrsqrt.f32 %v4837_v21 }
0x1d42   : > { %v7769_v29 = vpop.eup %7768 }
0x1d43   : > { %v4840_v42 = vmul.f32 %v7769_v29, %v9688_v40  ;;  %v7590_v40 = vld [vmem:[#allocation16 + $0x38] sm:$0xff]  }
0x1d45   : > { %v4848_v22 = vmul.f32 %v6550_v41, %v4840_v42 }
0x1d46   : > { %v7771_v44 = vpop.eup %7770 }
0x1d47   : > { %v4841_v38 = vmul.f32 %v7771_v44, %v9692_v62  ;;  %v4856_v52 = vadd.f32 %v6551_v24, %v4848_v22  ;;  %v7593_v62 = vld [vmem:[#allocation16 + $0xf0] sm:$0xff]  }
0x1d49   : > { %v4849_v39 = vmul.f32 %v6550_v41, %v4841_v38  ;;  %v5082_v36 = vadd.f32 %v5081_v43, %v4856_v52 }
0x1d4b   : > { %v4857_v11 = vadd.f32 %v6551_v24, %v4849_v39 }
0x1d4d   : > { %v5083_v57 = vadd.f32 %v5081_v43, %v4857_v11 }
0x1d4f   : > { %v5116_v3 = vpack.c.bf16 %v5083_v57, %v5082_v36 }
0x1d51   : > { %5332 = vmatmul.mubr.bf16.vlgmr.msra.gmra.mxu1 %v5116_v3  ;;  %5375 = vmatmul.mubr.bf16.vlgmr.msra.gmra.mxu0 %v5116_v3 }
0x1d52   : > { %6838 = vmatpush3.bf16.msra.mxu1 %v7590_v40  ;;  %6860 = vmatpush3.bf16.msra.mxu0 %v7591_v48 }
0x1d53   : > { %6839 = vmatprep.subr.bf16.mxu1 %v7592_v37  ;;  %6861 = vmatprep.subr.bf16.mxu0 %v7593_v62 }
0x1d56   : > { %6840 = vmatpush3.bf16.msra.mxu1 %v7594_v7  ;;  %6862 = vmatpush3.bf16.msra.mxu0 %v7595_v35 }
0x1d57   : > { %6841 = vmatprep.subr.bf16.mxu1 %v7596_v18  ;;  %6863 = vmatprep.subr.bf16.mxu0 %v7597_v23 }
0x1d5a   : > { %6842 = vmatpush3.bf16.msra.mxu1 %v7598_v49  ;;  %6864 = vmatpush3.bf16.msra.mxu0 %v7599_v5 }
0x1d5b   : > { %6843 = vmatprep.subr.bf16.mxu1 %v7600_v53  ;;  %6865 = vmatprep.subr.bf16.mxu0 %v7601_v34 }
0x1d5e   : > { %6844 = vmatpush3.bf16.msra.mxu1 %v7602_v46  ;;  %6866 = vmatpush3.bf16.msra.mxu0 %v7603_v8 }
0x1d5f   : > { %6845 = vmatprep.subr.bf16.mxu1 %v7604_v58  ;;  %6867 = vmatprep.subr.bf16.mxu0 %v7605_v27 }
0x1d62   : > { %6846 = vmatpush3.bf16.msra.mxu1 %v7606_v6  ;;  %6868 = vmatpush3.bf16.msra.mxu0 %v7607_v1 }
0x1d63   : > { %6847 = vmatprep.subr.bf16.mxu1 %v7608_v17  ;;  %6869 = vmatprep.subr.bf16.mxu0 %v7609_v60 }
0x1d66   : > { %6848 = vmatpush3.bf16.msra.mxu1 %v7610_v51  ;;  %6870 = vmatpush3.bf16.msra.mxu0 %v7611_v32 }
0x1d67   : > { %6849 = vmatprep.subr.bf16.mxu1 %v7612_v55  ;;  %6871 = vmatprep.subr.bf16.mxu0 %v7613_v26 }
0x1d6a   : > { %6850 = vmatpush3.bf16.msra.mxu1 %v7614_v16  ;;  %6872 = vmatpush3.bf16.msra.mxu0 %v7615_v10 }
0x1d6b   : > { %6851 = vmatprep.subr.bf16.mxu1 %v7616_v61  ;;  %6873 = vmatprep.subr.bf16.mxu0 %v7617_v2 }
0x1d6e   : > { %6852 = vmatpush3.bf16.msra.mxu1 %v7618_v19  ;;  %6874 = vmatpush3.bf16.msra.mxu0 %v7619_v4 }
0x1e11   : > { %v5333_v54 = vpop.f32.mrf.mxu1  ;;  %v5376_v30 = vpop.f32.mrf.mxu0 }
0x1e12   : > { %v9799_v14 = vadd.f32 %v5333_v54, %v5122_v63  ;;  %v9801_v0 = vadd.f32 %v5376_v30, %v5130_v9 }
0x1e13   : > { %v5335_v15 = vpop.f32.mrf.mxu1  ;;  %v5378_v31 = vpop.f32.mrf.mxu0 }
0x1e14   : > { %v9804_v21 = vmul.f32 0.70710677, %v9799_v14  ;;  %v9807_v29 = vmul.f32 0.70710677, %v9801_v0  ;;  %v9809_v25 = vadd.f32 %v5335_v15, %v5126_v45  ;;  %v9811_v28 = vadd.f32 %v5378_v31, %v5134_v50 }
0x1e15   : > { %v5337_v44 = vpop.f32.mrf.mxu1  ;;  %v5380_v36 = vpop.f32.mrf.mxu0 }
0x1e16   : > { %v5401_v12 = vand.u32 2147483647, %v9804_v21  ;;  %v5403_v13 = vand.u32 2147483647, %v9807_v29  ;;  %v9816_v41 = vmul.f32 0.70710677, %v9809_v25  ;;  %v9823_v11 = vadd.f32 %v5337_v44, %v5122_v63 }
0x1e17   : > { %v9819_v42 = vmul.f32 0.70710677, %v9811_v28  ;;  %v5339_v57 = vpop.f32.mrf.mxu1  ;;  %v9828_v40 = vadd.f32 %v5380_v36, %v5130_v9  ;;  %v5382_v62 = vpop.f32.mrf.mxu0  ;;  %vm5561_vm6 = vcmp.ge.f32.partialorder %v9804_v21, 0.0  ;;  %vm5563_vm8 = vcmp.ge.f32.partialorder %v9807_v29, 0.0 }
0x1e18   : > { %v5409_v56 = vmul.f32 0.3275911, %v5401_v12  ;;  %v5411_v22 = vmul.f32 0.3275911, %v5403_v13  ;;  %v5402_v24 = vand.u32 2147483647, %v9816_v41  ;;  %v9830_v48 = vadd.f32 %v5339_v57, %v5126_v45 }
0x1e19   : > { %v5404_v20 = vand.u32 2147483647, %v9819_v42  ;;  %v9826_v33 = vmul.f32 0.70710677, %v9823_v11  ;;  %v9834_v7 = vmul.f32 0.70710677, %v9828_v40  ;;  %v9840_v49 = vadd.f32 %v5382_v62, %v5134_v50 }
0x1e1a   : > { %v5417_v38 = vadd.f32 1.0, %v5409_v56  ;;  %v5419_v39 = vadd.f32 1.0, %v5411_v22  ;;  %v5410_v52 = vmul.f32 0.3275911, %v5402_v24  ;;  %v9837_v18 = vmul.f32 0.70710677, %v9830_v48 }
0x1e1b   : > { %v5412_v43 = vmul.f32 0.3275911, %v5404_v20  ;;  %v5405_v37 = vand.u32 2147483647, %v9826_v33  ;;  %v5407_v23 = vand.u32 2147483647, %v9834_v7 }
0x1e1c   : > { %7772 = vrcp.f32 %v5417_v38  ;;  %v5418_v3 = vadd.f32 1.0, %v5410_v52  ;;  %v5513_v5 = vsub.f32 0.0, %v5401_v12  ;;  %v5406_v34 = vand.u32 2147483647, %v9837_v18 }
0x1e1d   : > { %7774 = vrcp.f32 %v5419_v39  ;;  %v5420_v47 = vadd.f32 1.0, %v5412_v43  ;;  %v5413_v35 = vmul.f32 0.3275911, %v5405_v37  ;;  %v5415_v46 = vmul.f32 0.3275911, %v5407_v23 }
0x1e1e   : > { %7776 = vrcp.f32 %v5418_v3  ;;  %v9844_v8 = vmul.f32 0.70710677, %v9840_v49  ;;  %v5515_v58 = vsub.f32 0.0, %v5403_v13  ;;  %v5414_v27 = vmul.f32 0.3275911, %v5406_v34 }
0x1e1f   : > { %7778 = vrcp.f32 %v5420_v47  ;;  %v5421_v53 = vadd.f32 1.0, %v5413_v35  ;;  %v5514_v6 = vsub.f32 0.0, %v5402_v24  ;;  %v5423_v1 = vadd.f32 1.0, %v5415_v46 }
0x1e20   : > { %v9847_v17 = vand.u32 2147483647, %v9844_v8  ;;  %v5521_v60 = vmul.f32 %v5513_v5, %v5401_v12  ;;  %v5422_v51 = vadd.f32 1.0, %v5414_v27  ;;  %v5516_v55 = vsub.f32 0.0, %v5404_v20 }
0x1e21   : > { %7780 = vrcp.f32 %v5421_v53  ;;  %v5523_v61 = vmul.f32 %v5515_v58, %v5403_v13  ;;  %v5522_v19 = vmul.f32 %v5514_v6, %v5402_v24  ;;  %v5517_v4 = vsub.f32 0.0, %v5405_v37 }
0x1e22   : > { %7782 = vrcp.f32 %v5423_v1  ;;  %v5416_v26 = vmul.f32 0.3275911, %v9847_v17  ;;  %v5529_v9 = vmul.f32 1.442695, %v5521_v60  ;;  %v5524_v45 = vmul.f32 %v5516_v55, %v5404_v20 }
0x1e23   : > { %7784 = vrcp.f32 %v5422_v51  ;;  %v5519_v50 = vsub.f32 0.0, %v5407_v23  ;;  %v5533_v31 = vmul.f32 1.442695, %v5523_v61  ;;  %v5531_v22 = vmul.f32 1.442695, %v5522_v19 }
0x1e24   : > { %v5424_v59 = vadd.f32 1.0, %v5416_v26  ;;  %v5525_v44 = vmul.f32 %v5517_v4, %v5405_v37  ;;  %v5518_v24 = vsub.f32 0.0, %v5406_v34  ;;  %v5535_v43 = vmul.f32 1.442695, %v5524_v45 }
0x1e25   : > { %v5527_v36 = vmul.f32 %v5519_v50, %v5407_v23  ;;  %v5520_v6 = vsub.f32 0.0, %v9847_v17  ;;  %vm5565_vm0 = vcmp.ge.f32.partialorder %v9826_v33, 0.0  ;;  %vm5562_vm7 = vcmp.ge.f32.partialorder %v9816_v41, 0.0 }
0x1e26   : > { %7786 = vrcp.f32 %v5424_v59  ;;  %v5537_v37 = vmul.f32 1.442695, %v5525_v44  ;;  %v5526_v5 = vmul.f32 %v5518_v24, %v5406_v34  ;;  %vm5564_vm9 = vcmp.ge.f32.partialorder %v9819_v42, 0.0 }
0x1e27   : > { %7788 = vpow2.f32 %v5529_v9  ;;  %v5541_v23 = vmul.f32 1.442695, %v5527_v36  ;;  %vm5567_vm10 = vcmp.ge.f32.partialorder %v9834_v7, 0.0  ;;  %vm5566_vm11 = vcmp.ge.f32.partialorder %v9837_v18, 0.0 }
0x1e28   : > { %7790 = vpow2.f32 %v5533_v31  ;;  %v5539_v59 = vmul.f32 1.442695, %v5526_v5  ;;  %v5385_v42 = vmul.f32 0.5, %v9799_v14  ;;  %vm5568_vm12 = vcmp.ge.f32.partialorder %v9844_v8, 0.0 }
0x1e29   : > { %v9849_v32 = vpop.eup %7772  ;;  %7792 = vpow2.f32 %v5531_v22  ;;  %v5392_v29 = vmul.f32 0.5, %v9840_v49 }
0x1e2a   : > { %v9852_v16 = vpop.eup %7774  ;;  %v5441_v10 = vmul.f32 1.0614054, %v9849_v32  ;;  %7794 = vpow2.f32 %v5535_v43 }
0x1e2b   : > { %v5443_v2 = vmul.f32 1.0614054, %v9852_v16  ;;  %v9856_v54 = vpop.eup %7776  ;;  %7796 = vpow2.f32 %v5537_v37 }
0x1e2c   : > { %v6601_v63 = vadd.f32 -1.4531521, %v5441_v10  ;;  %v5442_v12 = vmul.f32 1.0614054, %v9856_v54  ;;  %v9860_v13 = vpop.eup %7778  ;;  %7798 = vpow2.f32 %v5541_v23 }
0x1e2d   : > { %v6603_v30 = vadd.f32 -1.4531521, %v5443_v2  ;;  %v5444_v52 = vmul.f32 1.0614054, %v9860_v13  ;;  %7800 = vpow2.f32 %v5539_v59 }
0x1e2e   : > { %v5457_v15 = vmul.f32 %v9849_v32, %v6601_v63  ;;  %v6602_v39 = vadd.f32 -1.4531521, %v5442_v12  ;;  %v9866_v62 = vpop.eup %7780 }
0x1e2f   : > { %v5459_v56 = vmul.f32 %v9852_v16, %v6603_v30  ;;  %v6604_v47 = vadd.f32 -1.4531521, %v5444_v52  ;;  %v5445_v27 = vmul.f32 1.0614054, %v9866_v62  ;;  %v9872_v1 = vpop.eup %7782  ;;  %v5528_v30 = vmul.f32 %v5520_v6, %v9847_v17 }
0x1e30   : > { %v5465_v38 = vadd.f32 1.4214138, %v5457_v15  ;;  %v5458_v3 = vmul.f32 %v9856_v54, %v6602_v39  ;;  %v9876_v10 = vpop.eup %7784  ;;  %v5447_v61 = vmul.f32 1.0614054, %v9872_v1 }
0x1e31   : > { %v5467_v20 = vadd.f32 1.4214138, %v5459_v56  ;;  %v5460_v58 = vmul.f32 %v9860_v13, %v6604_v47  ;;  %v6605_v26 = vadd.f32 -1.4531521, %v5445_v27  ;;  %v5446_v9 = vmul.f32 1.0614054, %v9876_v10 }
0x1e32   : > { %v5473_v57 = vmul.f32 %v9849_v32, %v5465_v38  ;;  %v5466_v46 = vadd.f32 1.4214138, %v5458_v3  ;;  %v6607_v63 = vadd.f32 -1.4531521, %v5447_v61  ;;  %v5543_v36 = vmul.f32 1.442695, %v5528_v30 }
0x1e33   : > { %v5475_v35 = vmul.f32 %v9852_v16, %v5467_v20  ;;  %v5468_v55 = vadd.f32 1.4214138, %v5460_v58  ;;  %v5461_v4 = vmul.f32 %v9866_v62, %v6605_v26  ;;  %v9883_v45 = vpop.eup %7786  ;;  %v6606_v44 = vadd.f32 -1.4531521, %v5446_v9 }
0x1e34   : > { %v6609_v53 = vadd.f32 -0.28449672, %v5473_v57  ;;  %v5474_v51 = vmul.f32 %v9856_v54, %v5466_v46  ;;  %v5463_v22 = vmul.f32 %v9872_v1, %v6607_v63  ;;  %v5448_v24 = vmul.f32 1.0614054, %v9883_v45  ;;  %v7789_v57 = vpop.eup %7788 }
0x1e35   : > { %v6611_v34 = vadd.f32 -0.28449672, %v5475_v35  ;;  %v5476_v19 = vmul.f32 %v9860_v13, %v5468_v55  ;;  %v5469_v12 = vadd.f32 1.4214138, %v5461_v4  ;;  %v5462_v20 = vmul.f32 %v9876_v10, %v6606_v44  ;;  %v7791_v5 = vpop.eup %7790 }
0x1e36   : > { %v5489_v60 = vmul.f32 %v9849_v32, %v6609_v53  ;;  %v6610_v2 = vadd.f32 -0.28449672, %v5474_v51  ;;  %v5471_v17 = vadd.f32 1.4214138, %v5463_v22  ;;  %v6608_v43 = vadd.f32 -1.4531521, %v5448_v24  ;;  %v7793_v23 = vpop.eup %7792 }
0x1e37   : > { %v6612_v31 = vadd.f32 -0.28449672, %v5476_v19  ;;  %v5491_v56 = vmul.f32 %v9852_v16, %v6611_v34  ;;  %v5477_v52 = vmul.f32 %v9866_v62, %v5469_v12  ;;  %v5470_v58 = vadd.f32 1.4214138, %v5462_v20 }
0x1e38   : > { %v5497_v50 = vadd.f32 0.2548296, %v5489_v60  ;;  %v5490_v15 = vmul.f32 %v9856_v54, %v6610_v2  ;;  %v5479_v46 = vmul.f32 %v9872_v1, %v5471_v17  ;;  %v5464_v27 = vmul.f32 %v9883_v45, %v6608_v43 }
0x1e39   : > { %v5492_v39 = vmul.f32 %v9860_v13, %v6612_v31  ;;  %v6613_v37 = vadd.f32 -0.28449672, %v5477_v52  ;;  %v5499_v53 = vadd.f32 0.2548296, %v5491_v56  ;;  %v5478_v55 = vmul.f32 %v9876_v10, %v5470_v58 }
0x1e3a   : > { %v5498_v38 = vadd.f32 0.2548296, %v5490_v15  ;;  %v5505_v3 = vmul.f32 %v9849_v32, %v5497_v50  ;;  %v6615_v51 = vadd.f32 -0.28449672, %v5479_v46  ;;  %v5472_v26 = vadd.f32 1.4214138, %v5464_v27  ;;  %v7795_v32 = vpop.eup %7794 }
0x1e3b   : > { %v5500_v35 = vadd.f32 0.2548296, %v5492_v39  ;;  %v5493_v6 = vmul.f32 %v9866_v62, %v6613_v37  ;;  %7802 = vpow2.f32 %v5543_v36  ;;  %v5507_v2 = vmul.f32 %v9852_v16, %v5499_v53  ;;  %v7797_v59 = vpop.eup %7796 }
0x1e3c   : > { %v5506_v47 = vmul.f32 %v9856_v54, %v5498_v38  ;;  %v5545_v34 = vmul.f32 %v7789_v57, %v5505_v3  ;;  %v5495_v19 = vmul.f32 %v9872_v1, %v6615_v51  ;;  %v6614_v4 = vadd.f32 -0.28449672, %v5478_v55  ;;  %v7799_v31 = vpop.eup %7798 }
0x1e3d   : > { %v5508_v54 = vmul.f32 %v9860_v13, %v5500_v35  ;;  %v5501_v61 = vadd.f32 0.2548296, %v5493_v6  ;;  %v5480_v15 = vmul.f32 %v9883_v45, %v5472_v26  ;;  %v5547_v22 = vmul.f32 %v7791_v5, %v5507_v2  ;;  %v7801_v39 = vpop.eup %7800 }
0x1e3e   : > { %v5546_v60 = vmul.f32 %v7793_v23, %v5506_v47  ;;  %v5503_v30 = vadd.f32 0.2548296, %v5495_v19  ;;  %v5494_v50 = vmul.f32 %v9876_v10, %v6614_v4  ;;  %v5553_v12 = vsub.f32 1.0, %v5545_v34 }
0x1e3f   : > { %v5509_v63 = vmul.f32 %v9866_v62, %v5501_v61  ;;  %v5548_v56 = vmul.f32 %v7795_v32, %v5508_v54  ;;  %v6616_v24 = vadd.f32 -0.28449672, %v5480_v15  ;;  %v5555_v3 = vsub.f32 1.0, %v5547_v22 }
0x1e40   : > { %v5554_v9 = vsub.f32 1.0, %v5546_v60  ;;  %v5511_v44 = vmul.f32 %v9872_v1, %v5503_v30  ;;  %v5502_v16 = vadd.f32 0.2548296, %v5494_v50  ;;  %v5569_v20 = vsub.f32 0.0, %v5553_v12 }
0x1e41   : > { %v5549_v13 = vmul.f32 %v7797_v59, %v5509_v63  ;;  %v5556_v43 = vsub.f32 1.0, %v5548_v56  ;;  %v5496_v57 = vmul.f32 %v9883_v45, %v6616_v24  ;;  %v5386_v58 = vmul.f32 0.5, %v9809_v25 }
0x1e42   : > { %v5570_v52 = vsub.f32 0.0, %v5554_v9  ;;  %v5551_v17 = vmul.f32 %v7799_v31, %v5511_v44  ;;  %v5510_v62 = vmul.f32 %v9876_v10, %v5502_v16  ;;  %v5577_v46 = vsel %vm5561_vm6, %v5553_v12, %v5569_v20 }
0x1e43   : > { %v5557_v38 = vsub.f32 1.0, %v5549_v13  ;;  %v5504_v37 = vadd.f32 0.2548296, %v5496_v57  ;;  %v5572_v27 = vsub.f32 0.0, %v5556_v43  ;;  %v5571_v6 = vsub.f32 0.0, %v5555_v3 }
0x1e44   : > { %v5559_v47 = vsub.f32 1.0, %v5551_v17  ;;  %v5550_v35 = vmul.f32 %v7801_v39, %v5510_v62  ;;  %v5578_v5 = vsel %vm5562_vm7, %v5554_v9, %v5570_v52  ;;  %v5585_v55 = vadd.f32 1.0, %v5577_v46 }
0x1e45   : > { %v5573_v36 = vsub.f32 0.0, %v5557_v38  ;;  %v5512_v23 = vmul.f32 %v9883_v45, %v5504_v37  ;;  %v5586_v41 = vadd.f32 1.0, %v5578_v5  ;;  %v5389_v26 = vmul.f32 0.5, %v9823_v11 }
0x1e46   : > { %v5575_v10 = vsub.f32 0.0, %v5559_v47  ;;  %v5558_v53 = vsub.f32 1.0, %v5550_v35  ;;  %v5580_v34 = vsel %vm5564_vm9, %v5556_v43, %v5572_v27  ;;  %v5390_v45 = vmul.f32 0.5, %v9830_v48 }
0x1e47   : > { %v5581_v1 = vsel %vm5565_vm0, %v5557_v38, %v5573_v36  ;;  %v5579_v2 = vsel %vm5563_vm8, %v5555_v3, %v5571_v6  ;;  %v5594_v7 = vmul.f32 %v5586_v41, %v5386_v58  ;;  %v5593_v63 = vmul.f32 %v5585_v55, %v5385_v42 }
0x1e48   : > { %v7803_v33 = vpop.eup %7802  ;;  %v5589_v21 = vadd.f32 1.0, %v5581_v1  ;;  %v5574_v60 = vsub.f32 0.0, %v5558_v53  ;;  %v5583_v32 = vsel %vm5567_vm10, %v5559_v47, %v5575_v10  ;;  %v5588_v9 = vadd.f32 1.0, %v5580_v34 }
0x1e49   : > { %v5552_v51 = vmul.f32 %v7803_v33, %v5512_v23  ;;  %v5591_v4 = vadd.f32 1.0, %v5583_v32  ;;  %v5587_v11 = vadd.f32 1.0, %v5579_v2  ;;  %v5391_v30 = vmul.f32 0.5, %v9828_v40 }
0x1e4a   : > { %v5582_v25 = vsel %vm5566_vm11, %v5558_v53, %v5574_v60  ;;  %v5597_v19 = vmul.f32 %v5589_v21, %v5389_v26  ;;  %v5388_v15 = vmul.f32 0.5, %v9811_v28  ;;  %v5387_v12 = vmul.f32 0.5, %v9801_v0  ;;  %v6617_v28 = vld [vmem:[#allocation18] ss:$0 sm:$0xff] }
0x1e4b   : > { %v5590_v54 = vadd.f32 1.0, %v5582_v25  ;;  %v5560_v61 = vsub.f32 1.0, %v5552_v51  ;;  %v5599_v56 = vmul.f32 %v5591_v4, %v5391_v30 }
0x1e4c   : > { %v5665_v14 = vpack.c.bf16 %v5597_v19, %v5593_v63  ;;  %v5596_v13 = vmul.f32 %v5588_v9, %v5388_v15  ;;  %v5595_v44 = vmul.f32 %v5587_v11, %v5387_v12 }
0x1e4d   : > { %v5598_v18 = vmul.f32 %v5590_v54, %v5390_v45  ;;  %v5576_v59 = vsub.f32 0.0, %v5560_v61 }
0x1e4e   : > { %v5667_v16 = vpack.c.bf16 %v5599_v56, %v5595_v44 }
0x1e4f   : > { %v5584_v48 = vsel %vm5568_vm12, %v5560_v61, %v5576_v59  ;;  %v5666_v50 = vpack.c.bf16 %v5598_v18, %v5594_v7 }
0x1e50   : > { %v5592_v31 = vadd.f32 1.0, %v5584_v48 }
0x1e51   : > { %5900 = vmatprep.mubr.bf16.mxu1 %v5666_v50 }
0x1e52   : > { %v5600_v22 = vmul.f32 %v5592_v31, %v5392_v29  ;;  %5901 = vmatmul.mubr.bf16.vlgmr.msra.gmra.mxu1 %v5665_v14 }
0x1e54   : > { %v5668_v8 = vpack.c.bf16 %v5600_v22, %v5596_v13 }
0x1e56   : > { %5941 = vmatprep.mubr.bf16.mxu0 %v5668_v8 }
0x1e57   : > { %5942 = vmatmul.mubr.bf16.vlgmr.msra.gmra.mxu0 %v5667_v16 }
0x1f12   : > { %v6853_v40 = vpop.f32.mrf.mxu1 }
0x1f14   : > { %v6854_v24 = vpop.f32.mrf.mxu1 }
0x1f15   : > { %v6855_v38 = vadd.f32 %v6854_v24, %v6853_v40 }
0x1f16   : > { %v6856_v39 = vpop.f32.mrf.mxu1 }
0x1f17   : > { %v6875_v49 = vpop.f32.mrf.mxu0  ;;  %v5903_v52 = vadd.f32 %v6855_v38, %v6617_v28 }
0x1f18   : > { %v6857_v17 = vpop.f32.mrf.mxu1 }
0x1f19   : > { %v6876_v0 = vpop.f32.mrf.mxu0  ;;  %v6858_v62 = vadd.f32 %v6857_v17, %v6856_v39 }
0x1f1a   : > { %v6877_v20 = vadd.f32 %v6876_v0, %v6875_v49 }
0x1f1b   : > { %v6878_v43 = vpop.f32.mrf.mxu0  ;;  %v5906_v57 = vadd.f32 %v6858_v62, %v6617_v28 }
0x1f1c   : > { %v5944_v36 = vadd.f32 %v6877_v20, %v5903_v52 }
0x1f1d   : > { %v6879_v3 = vpop.f32.mrf.mxu0 }
0x1f1e   : > { %5950 = vst [vmem:[%s980_s29] sm:$0xff] %v5944_v36  ;;  %v6880_v47 = vadd.f32 %v6879_v3, %v6878_v43 }
0x1f20   : > { %v5947_v35 = vadd.f32 %v6880_v47, %v5906_v57 }
0x1f22   : > { %5951 = vst [vmem:[%s980_s29 + $0x8] sm:$0xff] %v5947_v35 }
0x1f23 PF: > { %s10032_s1 = sld [smem:[#allocation25_spill]] }
0x1f29   : > { %s43_s7 = sadd.s32 1, %s10032_s1  }
0x1f2a   : > { %p40_p8 = scmp.ge.s32.totalorder %s43_s7, 4  }
0x1f2c   :  { %42 = sbr.rel (!%p40_p8) target bundleno = 21 (0x15), region = 218 }
0x1f31   :  { %5973 = vsyncpa [#allocation3], 1 }
0x1f32   :  { %5975 = vsyncpa [#allocation3 + $0x1], 1 }
0x1f33   :  { %5976 = vsyncpa [#allocation5], 1 }
0x1f34   :  { %5977 = vsyncpa [#allocation8], 1 }
0x1f35   :  { %5978 = vsyncpa [#allocation11], 1 }
0x1f36   :  { %5979 = vsyncpa [#allocation14], 1 }
0x1f37   :  { %5980 = vsyncpa [#allocation17], 1 }

</bundles_post_ra>
